<compile_context>
chip_gen: v6e
topology: v6e:2x2x1
jax: 0.10.0
libtpu: 0.0.40
codegen_flags: <defaults>
</compile_context>

<pallas_src>
import functools

import jax
import jax.numpy as jnp
from jax.experimental import pallas as pl
from jax.experimental.pallas import tpu as pltpu


# -----------------------------------------------------------------------------
# Pallas kernel: tiled matmul + fused bias (+ skip-add) (+ ReLU) epilogue
# -----------------------------------------------------------------------------
def _mm_kernel(*refs, relu, has_skip):
    if has_skip:
        a_ref, b_ref, bias_ref, skip_ref, o_ref, acc_ref = refs
    else:
        a_ref, b_ref, bias_ref, o_ref, acc_ref = refs
        skip_ref = None

    k = pl.program_id(2)

    @pl.when(k == 0)
    def _():
        acc_ref[...] = jnp.zeros_like(acc_ref)

    # bf16 x bf16 -> f32 accumulate on the MXU.
    acc_ref[...] += jnp.dot(a_ref[...], b_ref[...],
                            preferred_element_type=jnp.float32)

    @pl.when(k == pl.num_programs(2) - 1)
    def _():
        out = acc_ref[...] + bias_ref[...]
        if has_skip:
            out = out + skip_ref[...].astype(jnp.float32)
        if relu:
            out = jnp.maximum(out, 0.0)
        o_ref[...] = out.astype(o_ref.dtype)


def _cdiv(a, b):
    return (a + b - 1) // b


def _round_up(x, m):
    return ((x + m - 1) // m) * m


def _small_matmul(a, b, bias, skip, relu, out_dtype):
    # Tiny / lane-sparse GEMMs: a pallas_call launch + tiling overhead exceeds
    # the compute; XLA handles these fine.
    out = jnp.dot(a.astype(jnp.float32), b.astype(jnp.float32),
                  preferred_element_type=jnp.float32) + bias.astype(jnp.float32)
    if skip is not None:
        out = out + skip.astype(jnp.float32)
    if relu:
        out = jnp.maximum(out, 0.0)
    return out.astype(out_dtype)


def pallas_matmul_bias(a, b, bias, *, skip=None, relu=False,
                       out_dtype=jnp.bfloat16):
    """out = relu?(a @ b + bias (+ skip)).  a: (M,K), b: (K,N), bias: (N,)."""
    M, K = a.shape
    K2, N = b.shape
    assert K == K2

    # Tiny GEMMs, sub-tile M, or lane-sparse outputs -> plain XLA dot.
    if M * N * K < (1 << 20) or M < 8 or N < 16:
        return _small_matmul(a, b, bias, skip, relu, out_dtype)

    # bf16 operands (MXU-native); f32 accumulator lives in VMEM scratch.
    a = a.astype(jnp.bfloat16)
    b = b.astype(jnp.bfloat16)
    bias2 = bias.reshape(1, N).astype(jnp.float32)
    if skip is not None:
        skip = skip.astype(jnp.bfloat16)

    # ---- tile selection -----------------------------------------------------
    # Block dims are either a multiple of the native tile or the full array dim
    # (so no M/N padding copies are needed; boundary blocks are masked).
    tm = M if M <= 256 else 256
    tn = N if N <= 512 else 512

    # K tiling: zero-pad K only if it is large and has no 128-aligned divisor
    # (padding with zeros keeps the accumulation exact).
    if K <= 1024:
        tk, Kp = K, K
    else:
        tk = next((c for c in (512, 384, 256, 128) if K % c == 0), None)
        if tk is None:
            tk = 512
            Kp = _round_up(K, 512)
            a = jnp.pad(a, ((0, 0), (0, Kp - K)))
            b = jnp.pad(b, ((0, Kp - K), (0, 0)))
        else:
            Kp = K

    # Give dual-TC (v7x) / megacore >= 2 blocks along a parallel axis.
    while _cdiv(M, tm) * _cdiv(N, tn) < 2 and tn >= 256 and tn % 256 == 0:
        tn //= 2
    if _cdiv(M, tm) * _cdiv(N, tn) < 2 and tm >= 32 and tm % 32 == 0:
        tm //= 2

    grid = (_cdiv(M, tm), _cdiv(N, tn), Kp // tk)

    in_specs = [
        pl.BlockSpec((tm, tk), lambda i, j, k: (i, k)),
        pl.BlockSpec((tk, tn), lambda i, j, k: (k, j)),
        pl.BlockSpec((1, tn), lambda i, j, k: (0, j)),
    ]
    operands = [a, b, bias2]
    if skip is not None:
        in_specs.append(pl.BlockSpec((tm, tn), lambda i, j, k: (i, j)))
        operands.append(skip)

    out = pl.pallas_call(
        functools.partial(_mm_kernel, relu=relu, has_skip=skip is not None),
        out_shape=jax.ShapeDtypeStruct((M, N), out_dtype),
        grid_spec=pltpu.PrefetchScalarGridSpec(
            num_scalar_prefetch=0,
            grid=grid,
            in_specs=in_specs,
            out_specs=pl.BlockSpec((tm, tn), lambda i, j, k: (i, j)),
            scratch_shapes=[pltpu.VMEM((tm, tn), jnp.float32)],
        ),
        compiler_params=pltpu.CompilerParams(
            dimension_semantics=("parallel", "parallel", "arbitrary"),
            vmem_limit_bytes=32 * 1024 * 1024,
        ),
    )(*operands)
    return out


# -----------------------------------------------------------------------------
# Conv2d = im2col gather (plain-JAX glue, NHWC, bf16) + Pallas fused GEMM
# -----------------------------------------------------------------------------
def _gather_patches(xp, row_idx, col_idx):
    """xp: (Nb,Hp,Wp,C) padded input; row_idx: (Ho,kh); col_idx: (Wo,kw).

    Returns (Nb*Ho*Wo, kh*kw*C) patches in (kh,kw,C) K-order via a single flat
    gather (no big-tensor transposes or concatenates)."""
    Nb, Hp, Wp, C = xp.shape
    Ho, kh = row_idx.shape
    Wo, kw = col_idx.shape
    flat_idx = (row_idx[:, None, :, None] * Wp
                + col_idx[None, :, None, :])                # (Ho,Wo,kh,kw)
    t = jnp.take(xp.reshape(Nb, Hp * Wp, C),
                 flat_idx.reshape(-1), axis=1)              # (Nb,Ho*Wo*kh*kw,C)
    return t.reshape(Nb * Ho * Wo, kh * kw * C)


def conv2d(x, w, b, *, stride=1, padding=0, relu=False, skip=None,
           upsample=1, out_dtype=jnp.bfloat16):
    """2-D conv, NHWC activations, OIHW weights, optional fused skip/ReLU.

    upsample=2 fuses a nearest-neighbor 2x upsample (k=3, s=1, p=1 only) into
    the patch gather, so the upsampled tensor is never materialized in HBM."""
    Nb, H, W, C = x.shape
    O, Ci, kh, kw = w.shape
    assert Ci == C
    x = x.astype(jnp.bfloat16)

    if upsample == 1:
        Ho = (H + 2 * padding - kh) // stride + 1
        Wo = (W + 2 * padding - kw) // stride + 1
        if kh == 1 and kw == 1 and stride == 1 and padding == 0:
            patches = x.reshape(Nb * Ho * Wo, C)
        else:
            xp = (jnp.pad(x, ((0, 0), (padding, padding),
                              (padding, padding), (0, 0)))
                  if padding else x)
            row_idx = (jnp.arange(Ho)[:, None] * stride
                       + jnp.arange(kh)[None, :])
            col_idx = (jnp.arange(Wo)[:, None] * stride
                       + jnp.arange(kw)[None, :])
            patches = _gather_patches(xp, row_idx, col_idx)
    else:
        # Fused nearest-2x upsample + pad=1 + 3x3 s1 conv:
        # source index into the pre-upsample padded map is (p + i + 1)//2.
        assert upsample == 2 and stride == 1 and padding == 1 and kh == 3 and kw == 3
        Ho, Wo = 2 * H, 2 * W
        xp = jnp.pad(x, ((0, 0), (1, 1), (1, 1), (0, 0)))
        row_idx = (jnp.arange(Ho)[:, None] + jnp.arange(kh)[None, :] + 1) // 2
        col_idx = (jnp.arange(Wo)[:, None] + jnp.arange(kw)[None, :] + 1) // 2
        patches = _gather_patches(xp, row_idx, col_idx)

    # Weight K-order (kh,kw,C) matches the patch K-order above.
    wmat = w.transpose(2, 3, 1, 0).reshape(kh * kw * C, O)
    skip_mat = None if skip is None else skip.reshape(Nb * Ho * Wo, O)

    out = pallas_matmul_bias(patches, wmat, b, skip=skip_mat, relu=relu,
                             out_dtype=out_dtype)
    return out.reshape(Nb, Ho, Wo, O)


# -----------------------------------------------------------------------------
# Parameter construction (deterministic, PyTorch-Conv2d-style uniform init)
# -----------------------------------------------------------------------------
def conv_params(key, cout, cin, k):
    kw_, kb_ = jax.random.split(key)
    scale = 1.0 / float(cin * k * k) ** 0.5
    w = jax.random.uniform(kw_, (cout, cin, k, k), jnp.float32, -scale, scale)
    b = jax.random.uniform(kb_, (cout,), jnp.float32, -scale, scale)
    return w.astype(jnp.bfloat16), b  # bf16 weights, f32 bias


def init_params(key, num_classes=6, num_channels=3):
    keys = jax.random.split(key, 12)
    p = {}
    # synthetic UResNet encoder (resnet18-style, bottleneck -> 1024 channels)
    p["enc1"] = conv_params(keys[0], 64, num_channels, 3)
    p["enc2"] = conv_params(keys[1], 256, 64, 3)
    p["enc3"] = conv_params(keys[2], 1024, 256, 3)
    # synthetic UResNet decoder (skip connections, 3-channel output)
    p["dec1"] = conv_params(keys[3], 256, 1024, 3)
    p["dec2"] = conv_params(keys[4], 64, 256, 3)
    p["dec3"] = conv_params(keys[5], 3, 64, 3)
    # neck (resnet18/34 branch): Conv2d(1024, 512, 3, padding=1)
    p["neck"] = conv_params(keys[6], 512, 1024, 3)
    # classifier: Conv2d(512,512,3,p=1) -> ReLU -> AvgPool(1,1) -> Conv2d(512,num_classes,1)
    p["cls1"] = conv_params(keys[7], 512, 512, 3)
    p["cls2"] = conv_params(keys[8], num_classes, 512, 1)
    # regressor: Conv2d(512,512,3,p=1) -> ReLU -> AvgPool(1,1) -> Conv2d(512,1,1)
    p["reg1"] = conv_params(keys[9], 512, 512, 3)
    p["reg2"] = conv_params(keys[10], 1, 512, 1)
    return p


# -----------------------------------------------------------------------------
# BrixColorNet forward (external interface NCHW, internal NHWC/bf16)
# -----------------------------------------------------------------------------
def brixcolornet_forward(params, x_nchw):
    x = x_nchw.transpose(0, 2, 3, 1)  # NCHW -> NHWC once at the boundary

    # --- auto_encoder.encode(x) -> (features, sc) ---
    sc1 = conv2d(x, *params["enc1"], stride=2, padding=1, relu=True)         # (N,H/2,W/2,64)
    sc2 = conv2d(sc1, *params["enc2"], stride=2, padding=1, relu=True)       # (N,H/4,W/4,256)
    features = conv2d(sc2, *params["enc3"], stride=2, padding=1, relu=True)  # (N,H/8,W/8,1024)

    # --- auto_encoder.decode(features, sc) -> ae_out ---
    # 2x upsample fused into the patch gather; skip-add + ReLU fused into the
    # matmul epilogue (no HBM round-trips).
    d1 = conv2d(features, *params["dec1"], padding=1, upsample=2,
                relu=True, skip=sc2)                                         # (N,H/4,W/4,256)
    d2 = conv2d(d1, *params["dec2"], padding=1, upsample=2,
                relu=True, skip=sc1)                                         # (N,H/2,W/2,64)
    ae_out = conv2d(d2, *params["dec3"], padding=1, upsample=2,
                    out_dtype=jnp.float32)                                   # (N,H,W,3)

    # --- neck(features) ---
    bc = conv2d(features, *params["neck"], padding=1)                        # (N,H/8,W/8,512)

    # --- classifier / regressor heads: first 3x3 convs share input `bc`,
    #     merged into one GEMM (shared im2col patches, one launch) ---
    w_cls1, b_cls1 = params["cls1"]
    w_reg1, b_reg1 = params["reg1"]
    w_heads = jnp.concatenate([w_cls1, w_reg1], axis=0)                      # (1024,512,3,3)
    b_heads = jnp.concatenate([b_cls1, b_reg1], axis=0)
    heads = conv2d(bc, w_heads, b_heads, padding=1, relu=True)               # (N,H/8,W/8,1024)
    c, r = heads[..., :512], heads[..., 512:]

    # AdaptiveAvgPool2d((1,1)) then 1x1 conv heads (tiny -> XLA dot path).
    c = jnp.mean(c.astype(jnp.float32), axis=(1, 2), keepdims=True)
    cls_out = conv2d(c, *params["cls2"], padding=0, out_dtype=jnp.float32)   # (N,1,1,num_classes)

    r = jnp.mean(r.astype(jnp.float32), axis=(1, 2), keepdims=True)
    reg_out = conv2d(r, *params["reg2"], padding=0, out_dtype=jnp.float32)   # (N,1,1,1)

    # back to PyTorch NCHW layout at the boundary
    return (ae_out.transpose(0, 3, 1, 2),
            cls_out.transpose(0, 3, 1, 2),
            reg_out.transpose(0, 3, 1, 2))


if __name__ == "__main__":
    key = jax.random.PRNGKey(0)
    k_param, k_x = jax.random.split(key)

    params = init_params(k_param, num_classes=6, num_channels=3)
    x = jax.random.normal(k_x, (2, 3, 16, 16), dtype=jnp.float32)  # NCHW

    fwd = jax.jit(brixcolornet_forward)
    ae_out, cls_out, reg_out = fwd(params, x)
    jax.block_until_ready((ae_out, cls_out, reg_out))

    assert ae_out.shape == (2, 3, 16, 16)
    assert cls_out.shape == (2, 6, 1, 1)
    assert reg_out.shape == (2, 1, 1, 1)
    print("KERNEL_OK")
</pallas_src>

<mosaic_0001>
module attributes {stable_mosaic.version = 11 : i64} {
  func.func @_mm_kernel(%arg0: i32, %arg1: i32, %arg2: i32, %arg3: memref<32x576xbf16, #tpu.memory_space<vmem>>, %arg4: memref<576x128xbf16, #tpu.memory_space<vmem>>, %arg5: memref<1x128xf32, #tpu.memory_space<vmem>>, %arg6: memref<32x128xbf16, #tpu.memory_space<vmem>>, %arg7: memref<32x128xf32, #tpu.memory_space<vmem>>) attributes {dimension_semantics = [#tpu.dimension_semantics<parallel>, #tpu.dimension_semantics<parallel>, #tpu.dimension_semantics<arbitrary>], iteration_bounds = array<i64: 1, 2, 1>, scalar_prefetch = 0 : i64, scratch_operands = 1 : i64, tpu.core_type = #tpu.core_type<tc>, window_params = [{transform_indices = @transform_0, window_bounds = array<i64: 32, 576>}, {transform_indices = @transform_1, window_bounds = array<i64: 576, 128>}, {transform_indices = @transform_2, window_bounds = array<i64: 1, 128>}, {transform_indices = @transform_3, window_bounds = array<i64: 32, 128>}]} {
    %c0_i32 = arith.constant 0 : i32
    %0 = arith.cmpi eq, %arg2, %c0_i32 : i32
    %1 = arith.extui %0 : i1 to i32
    %c0_i32_0 = arith.constant 0 : i32
    %2 = arith.cmpi ne, %1, %c0_i32_0 : i32
    scf.if %2 {
      %cst_10 = arith.constant 0.000000e+00 : f32
      %12 = vector.broadcast %cst_10 : f32 to vector<32x128xf32>
      %c0_11 = arith.constant 0 : index
      %c0_12 = arith.constant 0 : index
      %13 = vector.load %arg7[%c0_11, %c0_12] : memref<32x128xf32, #tpu.memory_space<vmem>>, vector<32x128xf32>
      tpu.vector_store %arg7[%c0_11, %c0_12], %12 {strides = array<i32>} : memref<32x128xf32, #tpu.memory_space<vmem>>, vector<32x128xf32>,
    } else {
    }
    %c0 = arith.constant 0 : index
    %c0_1 = arith.constant 0 : index
    %3 = vector.load %arg7[%c0, %c0_1] : memref<32x128xf32, #tpu.memory_space<vmem>>, vector<32x128xf32>
    %c0_2 = arith.constant 0 : index
    %c0_3 = arith.constant 0 : index
    %4 = vector.load %arg3[%c0_2, %c0_3] : memref<32x576xbf16, #tpu.memory_space<vmem>>, vector<32x576xbf16>
    %c0_4 = arith.constant 0 : index
    %c0_5 = arith.constant 0 : index
    %5 = vector.load %arg4[%c0_4, %c0_5] : memref<576x128xbf16, #tpu.memory_space<vmem>>, vector<576x128xbf16>
    %cst = arith.constant dense<0.000000e+00> : vector<32x128xf32>
    %6 = tpu.matmul %4, %5, %cst {dimension_numbers = #tpu.dot_dimension_numbers<[1], [0], [0], [1], [0, 0, 1, 1], [], []>} : vector<32x576xbf16>, vector<576x128xbf16>, vector<32x128xf32> -> vector<32x128xf32>
    %7 = arith.addf %3, %6 : vector<32x128xf32>
    %c0_6 = arith.constant 0 : index
    %c0_7 = arith.constant 0 : index
    %8 = vector.load %arg7[%c0_6, %c0_7] : memref<32x128xf32, #tpu.memory_space<vmem>>, vector<32x128xf32>
    tpu.vector_store %arg7[%c0_6, %c0_7], %7 {strides = array<i32>} : memref<32x128xf32, #tpu.memory_space<vmem>>, vector<32x128xf32>,
    %c0_i32_8 = arith.constant 0 : i32
    %9 = arith.cmpi eq, %arg2, %c0_i32_8 : i32
    %10 = arith.extui %9 : i1 to i32
    %c0_i32_9 = arith.constant 0 : i32
    %11 = arith.cmpi ne, %10, %c0_i32_9 : i32
    scf.if %11 {
      %c0_10 = arith.constant 0 : index
      %c0_11 = arith.constant 0 : index
      %12 = vector.load %arg7[%c0_10, %c0_11] : memref<32x128xf32, #tpu.memory_space<vmem>>, vector<32x128xf32>
      %c0_12 = arith.constant 0 : index
      %c0_13 = arith.constant 0 : index
      %13 = vector.load %arg5[%c0_12, %c0_13] : memref<1x128xf32, #tpu.memory_space<vmem>>, vector<1x128xf32>
      %14 = vector.broadcast %13 : vector<1x128xf32> to vector<32x128xf32>
      %15 = arith.addf %12, %14 : vector<32x128xf32>
      %cst_14 = arith.constant 0.000000e+00 : f32
      %16 = vector.broadcast %cst_14 : f32 to vector<32x128xf32>
      %17 = arith.maximumf %15, %16 : vector<32x128xf32>
      %18 = arith.truncf %17 : vector<32x128xf32> to vector<32x128xbf16>
      %c0_15 = arith.constant 0 : index
      %c0_16 = arith.constant 0 : index
      %19 = vector.load %arg6[%c0_15, %c0_16] : memref<32x128xbf16, #tpu.memory_space<vmem>>, vector<32x128xbf16>
      tpu.vector_store %arg6[%c0_15, %c0_16], %18 {strides = array<i32>} : memref<32x128xbf16, #tpu.memory_space<vmem>>, vector<32x128xbf16>,
    } else {
    }
    return
  }
  func.func @transform_0(%arg0: i32, %arg1: i32, %arg2: i32) -> (i32, i32) {
    %c0_i32 = arith.constant 0 : i32
    return %arg0, %arg2 : i32, i32
  }
  func.func @transform_1(%arg0: i32, %arg1: i32, %arg2: i32) -> (i32, i32) {
    %c0_i32 = arith.constant 0 : i32
    return %arg2, %arg1 : i32, i32
  }
  func.func @transform_2(%arg0: i32, %arg1: i32, %arg2: i32) -> (i32, i32) {
    %c0_i32 = arith.constant 0 : i32
    %c0_i32_0 = arith.constant 0 : i32
    return %c0_i32, %arg1 : i32, i32
  }
  func.func @transform_3(%arg0: i32, %arg1: i32, %arg2: i32) -> (i32, i32) {
    %c0_i32 = arith.constant 0 : i32
    return %arg0, %arg1 : i32, i32
  }
}

module attributes {stable_mosaic.version = 11 : i64} {
  func.func @_mm_kernel(%arg0: i32, %arg1: i32, %arg2: i32, %arg3: memref<8x384xbf16, #tpu.memory_space<vmem>>, %arg4: memref<384x512xbf16, #tpu.memory_space<vmem>>, %arg5: memref<1x512xf32, #tpu.memory_space<vmem>>, %arg6: memref<8x512xbf16, #tpu.memory_space<vmem>>, %arg7: memref<8x512xf32, #tpu.memory_space<vmem>>) attributes {dimension_semantics = [#tpu.dimension_semantics<parallel>, #tpu.dimension_semantics<parallel>, #tpu.dimension_semantics<arbitrary>], iteration_bounds = array<i64: 1, 2, 6>, scalar_prefetch = 0 : i64, scratch_operands = 1 : i64, tpu.core_type = #tpu.core_type<tc>, window_params = [{transform_indices = @transform_0, window_bounds = array<i64: 8, 384>}, {transform_indices = @transform_1, window_bounds = array<i64: 384, 512>}, {transform_indices = @transform_2, window_bounds = array<i64: 1, 512>}, {transform_indices = @transform_3, window_bounds = array<i64: 8, 512>}]} {
    %c0_i32 = arith.constant 0 : i32
    %0 = arith.cmpi eq, %arg2, %c0_i32 : i32
    %1 = arith.extui %0 : i1 to i32
    %c0_i32_0 = arith.constant 0 : i32
    %2 = arith.cmpi ne, %1, %c0_i32_0 : i32
    scf.if %2 {
      %cst_9 = arith.constant 0.000000e+00 : f32
      %12 = vector.broadcast %cst_9 : f32 to vector<8x512xf32>
      %c0_10 = arith.constant 0 : index
      %c0_11 = arith.constant 0 : index
      %13 = vector.load %arg7[%c0_10, %c0_11] : memref<8x512xf32, #tpu.memory_space<vmem>>, vector<8x512xf32>
      tpu.vector_store %arg7[%c0_10, %c0_11], %12 {strides = array<i32>} : memref<8x512xf32, #tpu.memory_space<vmem>>, vector<8x512xf32>,
    } else {
    }
    %c0 = arith.constant 0 : index
    %c0_1 = arith.constant 0 : index
    %3 = vector.load %arg7[%c0, %c0_1] : memref<8x512xf32, #tpu.memory_space<vmem>>, vector<8x512xf32>
    %c0_2 = arith.constant 0 : index
    %c0_3 = arith.constant 0 : index
    %4 = vector.load %arg3[%c0_2, %c0_3] : memref<8x384xbf16, #tpu.memory_space<vmem>>, vector<8x384xbf16>
    %c0_4 = arith.constant 0 : index
    %c0_5 = arith.constant 0 : index
    %5 = vector.load %arg4[%c0_4, %c0_5] : memref<384x512xbf16, #tpu.memory_space<vmem>>, vector<384x512xbf16>
    %cst = arith.constant dense<0.000000e+00> : vector<8x512xf32>
    %6 = tpu.matmul %4, %5, %cst {dimension_numbers = #tpu.dot_dimension_numbers<[1], [0], [0], [1], [0, 0, 1, 1], [], []>} : vector<8x384xbf16>, vector<384x512xbf16>, vector<8x512xf32> -> vector<8x512xf32>
    %7 = arith.addf %3, %6 : vector<8x512xf32>
    %c0_6 = arith.constant 0 : index
    %c0_7 = arith.constant 0 : index
    %8 = vector.load %arg7[%c0_6, %c0_7] : memref<8x512xf32, #tpu.memory_space<vmem>>, vector<8x512xf32>
    tpu.vector_store %arg7[%c0_6, %c0_7], %7 {strides = array<i32>} : memref<8x512xf32, #tpu.memory_space<vmem>>, vector<8x512xf32>,
    %c5_i32 = arith.constant 5 : i32
    %9 = arith.cmpi eq, %arg2, %c5_i32 : i32
    %10 = arith.extui %9 : i1 to i32
    %c0_i32_8 = arith.constant 0 : i32
    %11 = arith.cmpi ne, %10, %c0_i32_8 : i32
    scf.if %11 {
      %c0_9 = arith.constant 0 : index
      %c0_10 = arith.constant 0 : index
      %12 = vector.load %arg7[%c0_9, %c0_10] : memref<8x512xf32, #tpu.memory_space<vmem>>, vector<8x512xf32>
      %c0_11 = arith.constant 0 : index
      %c0_12 = arith.constant 0 : index
      %13 = vector.load %arg5[%c0_11, %c0_12] : memref<1x512xf32, #tpu.memory_space<vmem>>, vector<1x512xf32>
      %14 = vector.broadcast %13 : vector<1x512xf32> to vector<8x512xf32>
      %15 = arith.addf %12, %14 : vector<8x512xf32>
      %cst_13 = arith.constant 0.000000e+00 : f32
      %16 = vector.broadcast %cst_13 : f32 to vector<8x512xf32>
      %17 = arith.maximumf %15, %16 : vector<8x512xf32>
      %18 = arith.truncf %17 : vector<8x512xf32> to vector<8x512xbf16>
      %c0_14 = arith.constant 0 : index
      %c0_15 = arith.constant 0 : index
      %19 = vector.load %arg6[%c0_14, %c0_15] : memref<8x512xbf16, #tpu.memory_space<vmem>>, vector<8x512xbf16>
      tpu.vector_store %arg6[%c0_14, %c0_15], %18 {strides = array<i32>} : memref<8x512xbf16, #tpu.memory_space<vmem>>, vector<8x512xbf16>,
    } else {
    }
    return
  }
  func.func @transform_0(%arg0: i32, %arg1: i32, %arg2: i32) -> (i32, i32) {
    %c0_i32 = arith.constant 0 : i32
    return %arg0, %arg2 : i32, i32
  }
  func.func @transform_1(%arg0: i32, %arg1: i32, %arg2: i32) -> (i32, i32) {
    %c0_i32 = arith.constant 0 : i32
    return %arg2, %arg1 : i32, i32
  }
  func.func @transform_2(%arg0: i32, %arg1: i32, %arg2: i32) -> (i32, i32) {
    %c0_i32 = arith.constant 0 : i32
    %c0_i32_0 = arith.constant 0 : i32
    return %c0_i32, %arg1 : i32, i32
  }
  func.func @transform_3(%arg0: i32, %arg1: i32, %arg2: i32) -> (i32, i32) {
    %c0_i32 = arith.constant 0 : i32
    return %arg0, %arg1 : i32, i32
  }
}

module attributes {stable_mosaic.version = 11 : i64} {
  func.func @_mm_kernel(%arg0: i32, %arg1: i32, %arg2: i32, %arg3: memref<32x512xbf16, #tpu.memory_space<vmem>>, %arg4: memref<512x128xbf16, #tpu.memory_space<vmem>>, %arg5: memref<1x128xf32, #tpu.memory_space<vmem>>, %arg6: memref<32x128xbf16, #tpu.memory_space<vmem>>, %arg7: memref<32x128xbf16, #tpu.memory_space<vmem>>, %arg8: memref<32x128xf32, #tpu.memory_space<vmem>>) attributes {dimension_semantics = [#tpu.dimension_semantics<parallel>, #tpu.dimension_semantics<parallel>, #tpu.dimension_semantics<arbitrary>], iteration_bounds = array<i64: 1, 2, 18>, scalar_prefetch = 0 : i64, scratch_operands = 1 : i64, tpu.core_type = #tpu.core_type<tc>, window_params = [{transform_indices = @transform_0, window_bounds = array<i64: 32, 512>}, {transform_indices = @transform_1, window_bounds = array<i64: 512, 128>}, {transform_indices = @transform_2, window_bounds = array<i64: 1, 128>}, {transform_indices = @transform_3, window_bounds = array<i64: 32, 128>}, {transform_indices = @transform_4, window_bounds = array<i64: 32, 128>}]} {
    %c0_i32 = arith.constant 0 : i32
    %0 = arith.cmpi eq, %arg2, %c0_i32 : i32
    %1 = arith.extui %0 : i1 to i32
    %c0_i32_0 = arith.constant 0 : i32
    %2 = arith.cmpi ne, %1, %c0_i32_0 : i32
    scf.if %2 {
      %cst_9 = arith.constant 0.000000e+00 : f32
      %12 = vector.broadcast %cst_9 : f32 to vector<32x128xf32>
      %c0_10 = arith.constant 0 : index
      %c0_11 = arith.constant 0 : index
      %13 = vector.load %arg8[%c0_10, %c0_11] : memref<32x128xf32, #tpu.memory_space<vmem>>, vector<32x128xf32>
      tpu.vector_store %arg8[%c0_10, %c0_11], %12 {strides = array<i32>} : memref<32x128xf32, #tpu.memory_space<vmem>>, vector<32x128xf32>,
    } else {
    }
    %c0 = arith.constant 0 : index
    %c0_1 = arith.constant 0 : index
    %3 = vector.load %arg8[%c0, %c0_1] : memref<32x128xf32, #tpu.memory_space<vmem>>, vector<32x128xf32>
    %c0_2 = arith.constant 0 : index
    %c0_3 = arith.constant 0 : index
    %4 = vector.load %arg3[%c0_2, %c0_3] : memref<32x512xbf16, #tpu.memory_space<vmem>>, vector<32x512xbf16>
    %c0_4 = arith.constant 0 : index
    %c0_5 = arith.constant 0 : index
    %5 = vector.load %arg4[%c0_4, %c0_5] : memref<512x128xbf16, #tpu.memory_space<vmem>>, vector<512x128xbf16>
    %cst = arith.constant dense<0.000000e+00> : vector<32x128xf32>
    %6 = tpu.matmul %4, %5, %cst {dimension_numbers = #tpu.dot_dimension_numbers<[1], [0], [0], [1], [0, 0, 1, 1], [], []>} : vector<32x512xbf16>, vector<512x128xbf16>, vector<32x128xf32> -> vector<32x128xf32>
    %7 = arith.addf %3, %6 : vector<32x128xf32>
    %c0_6 = arith.constant 0 : index
    %c0_7 = arith.constant 0 : index
    %8 = vector.load %arg8[%c0_6, %c0_7] : memref<32x128xf32, #tpu.memory_space<vmem>>, vector<32x128xf32>
    tpu.vector_store %arg8[%c0_6, %c0_7], %7 {strides = array<i32>} : memref<32x128xf32, #tpu.memory_space<vmem>>, vector<32x128xf32>,
    %c17_i32 = arith.constant 17 : i32
    %9 = arith.cmpi eq, %arg2, %c17_i32 : i32
    %10 = arith.extui %9 : i1 to i32
    %c0_i32_8 = arith.constant 0 : i32
    %11 = arith.cmpi ne, %10, %c0_i32_8 : i32
    scf.if %11 {
      %c0_9 = arith.constant 0 : index
      %c0_10 = arith.constant 0 : index
      %12 = vector.load %arg8[%c0_9, %c0_10] : memref<32x128xf32, #tpu.memory_space<vmem>>, vector<32x128xf32>
      %c0_11 = arith.constant 0 : index
      %c0_12 = arith.constant 0 : index
      %13 = vector.load %arg5[%c0_11, %c0_12] : memref<1x128xf32, #tpu.memory_space<vmem>>, vector<1x128xf32>
      %14 = vector.broadcast %13 : vector<1x128xf32> to vector<32x128xf32>
      %15 = arith.addf %12, %14 : vector<32x128xf32>
      %c0_13 = arith.constant 0 : index
      %c0_14 = arith.constant 0 : index
      %16 = vector.load %arg6[%c0_13, %c0_14] : memref<32x128xbf16, #tpu.memory_space<vmem>>, vector<32x128xbf16>
      %17 = arith.extf %16 : vector<32x128xbf16> to vector<32x128xf32>
      %18 = arith.addf %15, %17 : vector<32x128xf32>
      %cst_15 = arith.constant 0.000000e+00 : f32
      %19 = vector.broadcast %cst_15 : f32 to vector<32x128xf32>
      %20 = arith.maximumf %18, %19 : vector<32x128xf32>
      %21 = arith.truncf %20 : vector<32x128xf32> to vector<32x128xbf16>
      %c0_16 = arith.constant 0 : index
      %c0_17 = arith.constant 0 : index
      %22 = vector.load %arg7[%c0_16, %c0_17] : memref<32x128xbf16, #tpu.memory_space<vmem>>, vector<32x128xbf16>
      tpu.vector_store %arg7[%c0_16, %c0_17], %21 {strides = array<i32>} : memref<32x128xbf16, #tpu.memory_space<vmem>>, vector<32x128xbf16>,
    } else {
    }
    return
  }
  func.func @transform_0(%arg0: i32, %arg1: i32, %arg2: i32) -> (i32, i32) {
    %c0_i32 = arith.constant 0 : i32
    return %arg0, %arg2 : i32, i32
  }
  func.func @transform_1(%arg0: i32, %arg1: i32, %arg2: i32) -> (i32, i32) {
    %c0_i32 = arith.constant 0 : i32
    return %arg2, %arg1 : i32, i32
  }
  func.func @transform_2(%arg0: i32, %arg1: i32, %arg2: i32) -> (i32, i32) {
    %c0_i32 = arith.constant 0 : i32
    %c0_i32_0 = arith.constant 0 : i32
    return %c0_i32, %arg1 : i32, i32
  }
  func.func @transform_3(%arg0: i32, %arg1: i32, %arg2: i32) -> (i32, i32) {
    %c0_i32 = arith.constant 0 : i32
    return %arg0, %arg1 : i32, i32
  }
  func.func @transform_4(%arg0: i32, %arg1: i32, %arg2: i32) -> (i32, i32) {
    %c0_i32 = arith.constant 0 : i32
    return %arg0, %arg1 : i32, i32
  }
}

module attributes {stable_mosaic.version = 11 : i64} {
  func.func @_mm_kernel(%arg0: i32, %arg1: i32, %arg2: i32, %arg3: memref<64x384xbf16, #tpu.memory_space<vmem>>, %arg4: memref<384x64xbf16, #tpu.memory_space<vmem>>, %arg5: memref<1x64xf32, #tpu.memory_space<vmem>>, %arg6: memref<64x64xbf16, #tpu.memory_space<vmem>>, %arg7: memref<64x64xbf16, #tpu.memory_space<vmem>>, %arg8: memref<64x64xf32, #tpu.memory_space<vmem>>) attributes {dimension_semantics = [#tpu.dimension_semantics<parallel>, #tpu.dimension_semantics<parallel>, #tpu.dimension_semantics<arbitrary>], iteration_bounds = array<i64: 2, 1, 6>, scalar_prefetch = 0 : i64, scratch_operands = 1 : i64, tpu.core_type = #tpu.core_type<tc>, window_params = [{transform_indices = @transform_0, window_bounds = array<i64: 64, 384>}, {transform_indices = @transform_1, window_bounds = array<i64: 384, 64>}, {transform_indices = @transform_2, window_bounds = array<i64: 1, 64>}, {transform_indices = @transform_3, window_bounds = array<i64: 64, 64>}, {transform_indices = @transform_4, window_bounds = array<i64: 64, 64>}]} {
    %c0_i32 = arith.constant 0 : i32
    %0 = arith.cmpi eq, %arg2, %c0_i32 : i32
    %1 = arith.extui %0 : i1 to i32
    %c0_i32_0 = arith.constant 0 : i32
    %2 = arith.cmpi ne, %1, %c0_i32_0 : i32
    scf.if %2 {
      %cst_9 = arith.constant 0.000000e+00 : f32
      %12 = vector.broadcast %cst_9 : f32 to vector<64x64xf32>
      %c0_10 = arith.constant 0 : index
      %c0_11 = arith.constant 0 : index
      %13 = vector.load %arg8[%c0_10, %c0_11] : memref<64x64xf32, #tpu.memory_space<vmem>>, vector<64x64xf32>
      tpu.vector_store %arg8[%c0_10, %c0_11], %12 {strides = array<i32>} : memref<64x64xf32, #tpu.memory_space<vmem>>, vector<64x64xf32>,
    } else {
    }
    %c0 = arith.constant 0 : index
    %c0_1 = arith.constant 0 : index
    %3 = vector.load %arg8[%c0, %c0_1] : memref<64x64xf32, #tpu.memory_space<vmem>>, vector<64x64xf32>
    %c0_2 = arith.constant 0 : index
    %c0_3 = arith.constant 0 : index
    %4 = vector.load %arg3[%c0_2, %c0_3] : memref<64x384xbf16, #tpu.memory_space<vmem>>, vector<64x384xbf16>
    %c0_4 = arith.constant 0 : index
    %c0_5 = arith.constant 0 : index
    %5 = vector.load %arg4[%c0_4, %c0_5] : memref<384x64xbf16, #tpu.memory_space<vmem>>, vector<384x64xbf16>
    %cst = arith.constant dense<0.000000e+00> : vector<64x64xf32>
    %6 = tpu.matmul %4, %5, %cst {dimension_numbers = #tpu.dot_dimension_numbers<[1], [0], [0], [1], [0, 0, 1, 1], [], []>} : vector<64x384xbf16>, vector<384x64xbf16>, vector<64x64xf32> -> vector<64x64xf32>
    %7 = arith.addf %3, %6 : vector<64x64xf32>
    %c0_6 = arith.constant 0 : index
    %c0_7 = arith.constant 0 : index
    %8 = vector.load %arg8[%c0_6, %c0_7] : memref<64x64xf32, #tpu.memory_space<vmem>>, vector<64x64xf32>
    tpu.vector_store %arg8[%c0_6, %c0_7], %7 {strides = array<i32>} : memref<64x64xf32, #tpu.memory_space<vmem>>, vector<64x64xf32>,
    %c5_i32 = arith.constant 5 : i32
    %9 = arith.cmpi eq, %arg2, %c5_i32 : i32
    %10 = arith.extui %9 : i1 to i32
    %c0_i32_8 = arith.constant 0 : i32
    %11 = arith.cmpi ne, %10, %c0_i32_8 : i32
    scf.if %11 {
      %c0_9 = arith.constant 0 : index
      %c0_10 = arith.constant 0 : index
      %12 = vector.load %arg8[%c0_9, %c0_10] : memref<64x64xf32, #tpu.memory_space<vmem>>, vector<64x64xf32>
      %c0_11 = arith.constant 0 : index
      %c0_12 = arith.constant 0 : index
      %13 = vector.load %arg5[%c0_11, %c0_12] : memref<1x64xf32, #tpu.memory_space<vmem>>, vector<1x64xf32>
      %14 = vector.broadcast %13 : vector<1x64xf32> to vector<64x64xf32>
      %15 = arith.addf %12, %14 : vector<64x64xf32>
      %c0_13 = arith.constant 0 : index
      %c0_14 = arith.constant 0 : index
      %16 = vector.load %arg6[%c0_13, %c0_14] : memref<64x64xbf16, #tpu.memory_space<vmem>>, vector<64x64xbf16>
      %17 = arith.extf %16 : vector<64x64xbf16> to vector<64x64xf32>
      %18 = arith.addf %15, %17 : vector<64x64xf32>
      %cst_15 = arith.constant 0.000000e+00 : f32
      %19 = vector.broadcast %cst_15 : f32 to vector<64x64xf32>
      %20 = arith.maximumf %18, %19 : vector<64x64xf32>
      %21 = arith.truncf %20 : vector<64x64xf32> to vector<64x64xbf16>
      %c0_16 = arith.constant 0 : index
      %c0_17 = arith.constant 0 : index
      %22 = vector.load %arg7[%c0_16, %c0_17] : memref<64x64xbf16, #tpu.memory_space<vmem>>, vector<64x64xbf16>
      tpu.vector_store %arg7[%c0_16, %c0_17], %21 {strides = array<i32>} : memref<64x64xbf16, #tpu.memory_space<vmem>>, vector<64x64xbf16>,
    } else {
    }
    return
  }
  func.func @transform_0(%arg0: i32, %arg1: i32, %arg2: i32) -> (i32, i32) {
    %c0_i32 = arith.constant 0 : i32
    return %arg0, %arg2 : i32, i32
  }
  func.func @transform_1(%arg0: i32, %arg1: i32, %arg2: i32) -> (i32, i32) {
    %c0_i32 = arith.constant 0 : i32
    return %arg2, %arg1 : i32, i32
  }
  func.func @transform_2(%arg0: i32, %arg1: i32, %arg2: i32) -> (i32, i32) {
    %c0_i32 = arith.constant 0 : i32
    %c0_i32_0 = arith.constant 0 : i32
    return %c0_i32, %arg1 : i32, i32
  }
  func.func @transform_3(%arg0: i32, %arg1: i32, %arg2: i32) -> (i32, i32) {
    %c0_i32 = arith.constant 0 : i32
    return %arg0, %arg1 : i32, i32
  }
  func.func @transform_4(%arg0: i32, %arg1: i32, %arg2: i32) -> (i32, i32) {
    %c0_i32 = arith.constant 0 : i32
    return %arg0, %arg1 : i32, i32
  }
}

module attributes {stable_mosaic.version = 11 : i64} {
  func.func @_mm_kernel(%arg0: i32, %arg1: i32, %arg2: i32, %arg3: memref<8x512xbf16, #tpu.memory_space<vmem>>, %arg4: memref<512x256xbf16, #tpu.memory_space<vmem>>, %arg5: memref<1x256xf32, #tpu.memory_space<vmem>>, %arg6: memref<8x256xbf16, #tpu.memory_space<vmem>>, %arg7: memref<8x256xf32, #tpu.memory_space<vmem>>) attributes {dimension_semantics = [#tpu.dimension_semantics<parallel>, #tpu.dimension_semantics<parallel>, #tpu.dimension_semantics<arbitrary>], iteration_bounds = array<i64: 1, 2, 18>, scalar_prefetch = 0 : i64, scratch_operands = 1 : i64, tpu.core_type = #tpu.core_type<tc>, window_params = [{transform_indices = @transform_0, window_bounds = array<i64: 8, 512>}, {transform_indices = @transform_1, window_bounds = array<i64: 512, 256>}, {transform_indices = @transform_2, window_bounds = array<i64: 1, 256>}, {transform_indices = @transform_3, window_bounds = array<i64: 8, 256>}]} {
    %c0_i32 = arith.constant 0 : i32
    %0 = arith.cmpi eq, %arg2, %c0_i32 : i32
    %1 = arith.extui %0 : i1 to i32
    %c0_i32_0 = arith.constant 0 : i32
    %2 = arith.cmpi ne, %1, %c0_i32_0 : i32
    scf.if %2 {
      %cst_9 = arith.constant 0.000000e+00 : f32
      %12 = vector.broadcast %cst_9 : f32 to vector<8x256xf32>
      %c0_10 = arith.constant 0 : index
      %c0_11 = arith.constant 0 : index
      %13 = vector.load %arg7[%c0_10, %c0_11] : memref<8x256xf32, #tpu.memory_space<vmem>>, vector<8x256xf32>
      tpu.vector_store %arg7[%c0_10, %c0_11], %12 {strides = array<i32>} : memref<8x256xf32, #tpu.memory_space<vmem>>, vector<8x256xf32>,
    } else {
    }
    %c0 = arith.constant 0 : index
    %c0_1 = arith.constant 0 : index
    %3 = vector.load %arg7[%c0, %c0_1] : memref<8x256xf32, #tpu.memory_space<vmem>>, vector<8x256xf32>
    %c0_2 = arith.constant 0 : index
    %c0_3 = arith.constant 0 : index
    %4 = vector.load %arg3[%c0_2, %c0_3] : memref<8x512xbf16, #tpu.memory_space<vmem>>, vector<8x512xbf16>
    %c0_4 = arith.constant 0 : index
    %c0_5 = arith.constant 0 : index
    %5 = vector.load %arg4[%c0_4, %c0_5] : memref<512x256xbf16, #tpu.memory_space<vmem>>, vector<512x256xbf16>
    %cst = arith.constant dense<0.000000e+00> : vector<8x256xf32>
    %6 = tpu.matmul %4, %5, %cst {dimension_numbers = #tpu.dot_dimension_numbers<[1], [0], [0], [1], [0, 0, 1, 1], [], []>} : vector<8x512xbf16>, vector<512x256xbf16>, vector<8x256xf32> -> vector<8x256xf32>
    %7 = arith.addf %3, %6 : vector<8x256xf32>
    %c0_6 = arith.constant 0 : index
    %c0_7 = arith.constant 0 : index
    %8 = vector.load %arg7[%c0_6, %c0_7] : memref<8x256xf32, #tpu.memory_space<vmem>>, vector<8x256xf32>
    tpu.vector_store %arg7[%c0_6, %c0_7], %7 {strides = array<i32>} : memref<8x256xf32, #tpu.memory_space<vmem>>, vector<8x256xf32>,
    %c17_i32 = arith.constant 17 : i32
    %9 = arith.cmpi eq, %arg2, %c17_i32 : i32
    %10 = arith.extui %9 : i1 to i32
    %c0_i32_8 = arith.constant 0 : i32
    %11 = arith.cmpi ne, %10, %c0_i32_8 : i32
    scf.if %11 {
      %c0_9 = arith.constant 0 : index
      %c0_10 = arith.constant 0 : index
      %12 = vector.load %arg7[%c0_9, %c0_10] : memref<8x256xf32, #tpu.memory_space<vmem>>, vector<8x256xf32>
      %c0_11 = arith.constant 0 : index
      %c0_12 = arith.constant 0 : index
      %13 = vector.load %arg5[%c0_11, %c0_12] : memref<1x256xf32, #tpu.memory_space<vmem>>, vector<1x256xf32>
      %14 = vector.broadcast %13 : vector<1x256xf32> to vector<8x256xf32>
      %15 = arith.addf %12, %14 : vector<8x256xf32>
      %16 = arith.truncf %15 : vector<8x256xf32> to vector<8x256xbf16>
      %c0_13 = arith.constant 0 : index
      %c0_14 = arith.constant 0 : index
      %17 = vector.load %arg6[%c0_13, %c0_14] : memref<8x256xbf16, #tpu.memory_space<vmem>>, vector<8x256xbf16>
      tpu.vector_store %arg6[%c0_13, %c0_14], %16 {strides = array<i32>} : memref<8x256xbf16, #tpu.memory_space<vmem>>, vector<8x256xbf16>,
    } else {
    }
    return
  }
  func.func @transform_0(%arg0: i32, %arg1: i32, %arg2: i32) -> (i32, i32) {
    %c0_i32 = arith.constant 0 : i32
    return %arg0, %arg2 : i32, i32
  }
  func.func @transform_1(%arg0: i32, %arg1: i32, %arg2: i32) -> (i32, i32) {
    %c0_i32 = arith.constant 0 : i32
    return %arg2, %arg1 : i32, i32
  }
  func.func @transform_2(%arg0: i32, %arg1: i32, %arg2: i32) -> (i32, i32) {
    %c0_i32 = arith.constant 0 : i32
    %c0_i32_0 = arith.constant 0 : i32
    return %c0_i32, %arg1 : i32, i32
  }
  func.func @transform_3(%arg0: i32, %arg1: i32, %arg2: i32) -> (i32, i32) {
    %c0_i32 = arith.constant 0 : i32
    return %arg0, %arg1 : i32, i32
  }
}

module attributes {stable_mosaic.version = 11 : i64} {
  func.func @_mm_kernel(%arg0: i32, %arg1: i32, %arg2: i32, %arg3: memref<8x512xbf16, #tpu.memory_space<vmem>>, %arg4: memref<512x512xbf16, #tpu.memory_space<vmem>>, %arg5: memref<1x512xf32, #tpu.memory_space<vmem>>, %arg6: memref<8x512xbf16, #tpu.memory_space<vmem>>, %arg7: memref<8x512xf32, #tpu.memory_space<vmem>>) attributes {dimension_semantics = [#tpu.dimension_semantics<parallel>, #tpu.dimension_semantics<parallel>, #tpu.dimension_semantics<arbitrary>], iteration_bounds = array<i64: 1, 2, 9>, scalar_prefetch = 0 : i64, scratch_operands = 1 : i64, tpu.core_type = #tpu.core_type<tc>, window_params = [{transform_indices = @transform_0, window_bounds = array<i64: 8, 512>}, {transform_indices = @transform_1, window_bounds = array<i64: 512, 512>}, {transform_indices = @transform_2, window_bounds = array<i64: 1, 512>}, {transform_indices = @transform_3, window_bounds = array<i64: 8, 512>}]} {
    %c0_i32 = arith.constant 0 : i32
    %0 = arith.cmpi eq, %arg2, %c0_i32 : i32
    %1 = arith.extui %0 : i1 to i32
    %c0_i32_0 = arith.constant 0 : i32
    %2 = arith.cmpi ne, %1, %c0_i32_0 : i32
    scf.if %2 {
      %cst_9 = arith.constant 0.000000e+00 : f32
      %12 = vector.broadcast %cst_9 : f32 to vector<8x512xf32>
      %c0_10 = arith.constant 0 : index
      %c0_11 = arith.constant 0 : index
      %13 = vector.load %arg7[%c0_10, %c0_11] : memref<8x512xf32, #tpu.memory_space<vmem>>, vector<8x512xf32>
      tpu.vector_store %arg7[%c0_10, %c0_11], %12 {strides = array<i32>} : memref<8x512xf32, #tpu.memory_space<vmem>>, vector<8x512xf32>,
    } else {
    }
    %c0 = arith.constant 0 : index
    %c0_1 = arith.constant 0 : index
    %3 = vector.load %arg7[%c0, %c0_1] : memref<8x512xf32, #tpu.memory_space<vmem>>, vector<8x512xf32>
    %c0_2 = arith.constant 0 : index
    %c0_3 = arith.constant 0 : index
    %4 = vector.load %arg3[%c0_2, %c0_3] : memref<8x512xbf16, #tpu.memory_space<vmem>>, vector<8x512xbf16>
    %c0_4 = arith.constant 0 : index
    %c0_5 = arith.constant 0 : index
    %5 = vector.load %arg4[%c0_4, %c0_5] : memref<512x512xbf16, #tpu.memory_space<vmem>>, vector<512x512xbf16>
    %cst = arith.constant dense<0.000000e+00> : vector<8x512xf32>
    %6 = tpu.matmul %4, %5, %cst {dimension_numbers = #tpu.dot_dimension_numbers<[1], [0], [0], [1], [0, 0, 1, 1], [], []>} : vector<8x512xbf16>, vector<512x512xbf16>, vector<8x512xf32> -> vector<8x512xf32>
    %7 = arith.addf %3, %6 : vector<8x512xf32>
    %c0_6 = arith.constant 0 : index
    %c0_7 = arith.constant 0 : index
    %8 = vector.load %arg7[%c0_6, %c0_7] : memref<8x512xf32, #tpu.memory_space<vmem>>, vector<8x512xf32>
    tpu.vector_store %arg7[%c0_6, %c0_7], %7 {strides = array<i32>} : memref<8x512xf32, #tpu.memory_space<vmem>>, vector<8x512xf32>,
    %c8_i32 = arith.constant 8 : i32
    %9 = arith.cmpi eq, %arg2, %c8_i32 : i32
    %10 = arith.extui %9 : i1 to i32
    %c0_i32_8 = arith.constant 0 : i32
    %11 = arith.cmpi ne, %10, %c0_i32_8 : i32
    scf.if %11 {
      %c0_9 = arith.constant 0 : index
      %c0_10 = arith.constant 0 : index
      %12 = vector.load %arg7[%c0_9, %c0_10] : memref<8x512xf32, #tpu.memory_space<vmem>>, vector<8x512xf32>
      %c0_11 = arith.constant 0 : index
      %c0_12 = arith.constant 0 : index
      %13 = vector.load %arg5[%c0_11, %c0_12] : memref<1x512xf32, #tpu.memory_space<vmem>>, vector<1x512xf32>
      %14 = vector.broadcast %13 : vector<1x512xf32> to vector<8x512xf32>
      %15 = arith.addf %12, %14 : vector<8x512xf32>
      %cst_13 = arith.constant 0.000000e+00 : f32
      %16 = vector.broadcast %cst_13 : f32 to vector<8x512xf32>
      %17 = arith.maximumf %15, %16 : vector<8x512xf32>
      %18 = arith.truncf %17 : vector<8x512xf32> to vector<8x512xbf16>
      %c0_14 = arith.constant 0 : index
      %c0_15 = arith.constant 0 : index
      %19 = vector.load %arg6[%c0_14, %c0_15] : memref<8x512xbf16, #tpu.memory_space<vmem>>, vector<8x512xbf16>
      tpu.vector_store %arg6[%c0_14, %c0_15], %18 {strides = array<i32>} : memref<8x512xbf16, #tpu.memory_space<vmem>>, vector<8x512xbf16>,
    } else {
    }
    return
  }
  func.func @transform_0(%arg0: i32, %arg1: i32, %arg2: i32) -> (i32, i32) {
    %c0_i32 = arith.constant 0 : i32
    return %arg0, %arg2 : i32, i32
  }
  func.func @transform_1(%arg0: i32, %arg1: i32, %arg2: i32) -> (i32, i32) {
    %c0_i32 = arith.constant 0 : i32
    return %arg2, %arg1 : i32, i32
  }
  func.func @transform_2(%arg0: i32, %arg1: i32, %arg2: i32) -> (i32, i32) {
    %c0_i32 = arith.constant 0 : i32
    %c0_i32_0 = arith.constant 0 : i32
    return %c0_i32, %arg1 : i32, i32
  }
  func.func @transform_3(%arg0: i32, %arg1: i32, %arg2: i32) -> (i32, i32) {
    %c0_i32 = arith.constant 0 : i32
    return %arg0, %arg1 : i32, i32
  }
}

</mosaic_0001>

<bundles_post_ra>
// kernel: brixcolornet_forward.6
= control target key start
LH: loop header
LB: loop body
LE: loop exit
PB: predicated region body
PF: predicated region fallthrough
CT: control target
= control target key end

     0   :  { %8 = vsyncpa [#allocation4], 0  ;;  %s1652_s0 = inlined_call_operand.vmem [shape: bf16[32,576], index: 0, kind: input, shape index: {}]   ;;  %s1653_s1 = inlined_call_operand.hbm [shape: bf16[576,256], index: 1, kind: input, shape index: {}]   ;;  %s1654_s2 = inlined_call_operand.hbm [shape: f32[1,256], index: 2, kind: input, shape index: {}]   ;;  %s1655_s3 = inlined_call_operand.vmem [shape: bf16[32,256], index: 3, kind: output, shape index: {}]  }
   0x1   :  { %10 = vsyncpa [#allocation4 + $0x1], 0 }
   0x2   :  { %11 = vsyncpa [#allocation6], 0 }
   0x3   :  { %13 = vsyncpa [#allocation6 + $0x1], 0  ;;  %s1444_s12 = smov 0   ;;  %s1446_s13 = smov 0  }
   0x4   :  { %s1448_s14 = smov 0   ;;  %s1450_s15 = smov 0  }
   0x5   :  { %s1452_s16 = smov 0   ;;  %s1454_s17 = smov 0  }
   0x6 LB: > { %s1037_s18 = sadd.s32 4294967295, %s1417_s17   ;;  %s34_s19 = sadd.s32 1, %s1413_s16  ;;  %s1417_s17 = sphi %s1454_s17, %s19_s17   ;;  %s1413_s16 = sphi %s1452_s16, %s1665_s16   ;;  %s1409_s15 = sphi %s1450_s15, %s1664_s15   ;;  %s1405_s14 = sphi %s1448_s14, %s1663_s14   ;;  %s1401_s13 = sphi %s1446_s13, %s1662_s13   ;;  %s1397_s12 = sphi %s1444_s12, %s1661_s12  }
   0x7   : > { %p36_p0 = scmp.ge.s32.totalorder %s34_s19, 2  ;;  %s75_s20 = sadd.s32 1, %s1405_s14 }
   0x8   : > { %p82_p1 = scmp.ne.s32.totalorder %s1405_s14, %s1401_s13  ;;  %p83_p2 = scmp.eq.s32.totalorder %s1417_s17, 0 }
   0x9   : > { %s1667_s19 = smov (%p36_p0, %s34_s19), 0  ;;  %p88_p4 = scmp.ne.s32.totalorder %s1401_s13, %s1397_s12 }
   0xa   : > { %p1480_p3 = por %p83_p2, %p82_p1  ;;  %s71_s22 = ssub.s32 %s1413_s16, %s1667_s19 }
   0xb   : > { %p89_p5 = scmp.eq.s32.totalorder %s1037_s18, 0  ;;  %p73_p6 = scmp.eq.s32.totalorder %s71_s22, 0 }
   0xc   : > { %p140_p7 = scmp.eq.s32.totalorder %s1037_s18, 1  ;;  %p1205_p10 = scmp.lt.s32.totalorder %s1417_s17, 2 }
   0xd   : > { %p1487_p8 = por %p89_p5, %p88_p4  ;;  %s1500_s26 = sand.u32 1, %s1405_s14  }
   0xe   : > { %s1492_s24 = scalar_select %p73_p6, %s1405_s14, %s75_s20  }
   0xf   : > { %p1494_p9 = por %p140_p7, %p82_p1  ;;  %s1042_s27 = sshll.u32 %s1413_s16, 6 }
  0x10   : > { %s1192_s28 = smul.u32 288, %s1500_s26  ;;  %s193_s4 = scalar_lea.hbm %s1653_s1, %s1042_s27 }
  0x11   : > { %p1509_p11 = pnand %p1205_p10, %p1480_p3  ;;  %p1044_p12 = scmp.ge.s32.totalorder %s1417_s17, 1 }
  0x12   : > { %s185_s6 = scalar_lea.vmem [#allocation3], %s1192_s28  ;;  %s182_s8 = scalar_lea.sflag [#allocation4], %s1500_s26 }
  0x13   : > { %s194_s7 = sshll.u32 %s185_s6, 4  ;;  %p1309_p13 = pneg %p1509_p11  ;;  %s195_s7 = int_to_ptr.vmem [resolvable:$true] %s194_s7 }
  0x14   : > { %s1320_s9 = scalar_lea.vmem %s195_s7, 4608  ;;  %s1419_s10 = smov [#allocation3]  }
  0x15   : > { %p1321_p0 = scmp.ne.s32.totalorder %s195_s7, %s1320_s9  ;;  %s1325_s11 = sshll.u32 %s1419_s10, 4  ;;  %s1326_s11 = int_to_ptr.vmem [resolvable:$false] %s1325_s11 }
  0x16   : > { %s1327_s12 = scalar_lea.vmem %s1326_s11, 9216  ;;  %p1328_p3 = scmp.lt.s32.totalorder %s195_s7, %s1326_s11 }
  0x17   : > { %p1323_p1 = pnand %p1321_p0, %p1309_p13  ;;  %p1329_p4 = scmp.lt.s32.totalorder %s1327_s12, %s1320_s9 }
  0x19   : > { %p1324_p2 = pneg %p1323_p1  ;;  %p1330_p5 = por %p1329_p4, %p1328_p3 }
  0x1b   : > { %p1331_p6 = pnand %p1330_p5, %p1324_p2 }
  0x1d   : > { %1334 = shalt.err (!%p1331_p6)
}
  0x1e   : > { %s1420_s18 = smov 128   ;;  %s1421_s20 = smov 64  }
  0x1f   : > { %s1422_s21 = smov 4   ;;  %p219_p7 = scmp.lt.s32.totalorder %s1417_s17, 3 }
  0x20   : > { %1201 = dma.hbm_to_vmem [thread:$0]  (!%p1509_p11), %s193_s4, 4608, %s195_s7, %s182_s8, %s1420_s18, %s1421_s20, %s1422_s21  }
  0x21   : > { %s1043_s22 = sshll.u32 %s1413_s16, 4  ;;  %p1526_p10 = pnand %p1044_p12, %p219_p7 }
  0x22   : > { %s212_s30 = scalar_lea.hbm %s1654_s2, %s1043_s22  ;;  %s207_s6 = scalar_lea.vmem [#allocation5], %s1500_s26 }
  0x23   : > { %s214_s9 = sshll.u32 %s207_s6, 4  ;;  %s205_s10 = scalar_lea.sflag [#allocation6], %s1500_s26  ;;  %s215_s9 = int_to_ptr.vmem [resolvable:$true] %s214_s9 }
  0x24   : > { %s1348_s11 = scalar_lea.vmem %s215_s9, 16  ;;  %s1423_s4 = smov [#allocation5]  }
  0x25   : > { %p1349_p0 = scmp.ne.s32.totalorder %s215_s9, %s1348_s11  ;;  %s1353_s7 = sshll.u32 %s1423_s4, 4  ;;  %s1354_s7 = int_to_ptr.vmem [resolvable:$false] %s1353_s7 }
  0x26   : > { %s1355_s8 = scalar_lea.vmem %s1354_s7, 32  ;;  %p1356_p12 = scmp.lt.s32.totalorder %s215_s9, %s1354_s7 }
  0x27   : > { %p1351_p1 = pnand %p1349_p0, %p1309_p13  ;;  %p1357_p3 = scmp.lt.s32.totalorder %s1355_s8, %s1348_s11 }
  0x29   : > { %p1352_p2 = pneg %p1351_p1  ;;  %p1358_p4 = por %p1357_p3, %p1356_p12 }
  0x2b   : > { %p1359_p5 = pnand %p1358_p4, %p1352_p2 }
  0x2d   : > { %1362 = shalt.err (!%p1359_p5)
}
  0x2e   : > { %1204 = dma.hbm_to_vmem [thread:$0]  (!%p1509_p11), %s212_s30, 16, %s215_s9, %s205_s10  }
  0x2f   : > { %223 = sbr.rel (%p1526_p10) target bundleno = 322 (0x142), region = 32  ;;  %s1543_s26 = sand.u32 (!%p1526_p10), 1, %s1401_s13  }
  0x30   : > { %s1193_s12 = smul.u32 (!%p1526_p10), 288, %s1543_s26  ;;  %s226_s18 = scalar_lea.sflag (!%p1526_p10), [#allocation4], %s1543_s26 }
  0x32   : > { %s1547_s20 = scalar_lea.vmem (!%p1526_p10), [#allocation3], %s1193_s12 }
  0x34   : > { %1388 = dma.done.wait (%p1487_p8), %s226_s18, 4608  }
  0x35   : > { %1390 = vsyncadd (%p1487_p8), %s226_s18, 4294962688  ;;  %s235_s5 = scalar_lea.sflag [#allocation6], %s1543_s26  ;;  %s237_s21 = scalar_lea.vmem [#allocation5], %s1543_s26 }
  0x36   : > { %1392 = dma.done.wait (%p1487_p8), %s235_s5, 16  }
  0x37   : > { %1394 = vsyncadd (%p1487_p8), %s235_s5, 4294967280  ;;  %v1257_v0 = vld [vmem:[%s1547_s20 + $0x78] sm:$0xff]   ;;  %v1261_v4 = vld [vmem:[%s1547_s20 + $0x70] sm:$0xff]   ;;  %vm650_vm0 = vcmask 523264  }
  0x38   : > { %v1258_v1 = vld [vmem:[%s1547_s20 + $0xf8] sm:$0xff]   ;;  %1118 = vmatprep.subr.bf16.mxu0 %v1257_v0  ;;  %v1262_v5 = vld [vmem:[%s1547_s20 + $0xf0] sm:$0xff]   ;;  %v1265_v8 = vld [vmem:[%s1547_s20 + $0x68] sm:$0xff]  }
  0x39   : > { %v1259_v2 = vld [vmem:[%s1547_s20 + $0x38] sm:$0xff]   ;;  %1146 = vmatprep.subr.bf16.mxu1 %v1258_v1  ;;  %v1263_v6 = vld [vmem:[%s1547_s20 + $0x30] sm:$0xff]   ;;  %v1266_v9 = vld [vmem:[%s1547_s20 + $0xe8] sm:$0xff]  }
  0x3a   : > { %v1260_v3 = vld [vmem:[%s1547_s20 + $0xb8] sm:$0xff]   ;;  %1119 = vmatpush3.bf16.msra.mxu0 %v1259_v2  ;;  %v1264_v7 = vld [vmem:[%s1547_s20 + $0xb0] sm:$0xff]   ;;  %v1267_v10 = vld [vmem:[%s1547_s20 + $0x28] sm:$0xff]  }
  0x3b   : > { %1147 = vmatpush3.bf16.msra.mxu1 %v1260_v3  ;;  %1120 = vmatprep.subr.bf16.mxu0 %v1261_v4  ;;  %v1268_v11 = vld [vmem:[%s1547_s20 + $0xa8] sm:$0xff]   ;;  %v1269_v12 = vld [vmem:[%s1547_s20 + $0x60] sm:$0xff]   ;;  %v1273_v16 = vld [vmem:[%s1547_s20 + $0x58] sm:$0xff]  }
  0x3c   : > { %1148 = vmatprep.subr.bf16.mxu1 %v1262_v5  ;;  %v1270_v13 = vld [vmem:[%s1547_s20 + $0xe0] sm:$0xff]   ;;  %v1274_v17 = vld [vmem:[%s1547_s20 + $0xd8] sm:$0xff]   ;;  %v1277_v20 = vld [vmem:[%s1547_s20 + $0x50] sm:$0xff]  }
  0x3d   : > { %v1271_v14 = vld [vmem:[%s1547_s20 + $0x20] sm:$0xff]   ;;  %v1275_v18 = vld [vmem:[%s1547_s20 + $0x18] sm:$0xff]   ;;  %v1278_v21 = vld [vmem:[%s1547_s20 + $0xd0] sm:$0xff]  }
  0x3e   : > { %1121 = vmatpush3.bf16.msra.mxu0 %v1263_v6  ;;  %v1272_v15 = vld [vmem:[%s1547_s20 + $0xa0] sm:$0xff]   ;;  %v1276_v19 = vld [vmem:[%s1547_s20 + $0x98] sm:$0xff]   ;;  %v1279_v22 = vld [vmem:[%s1547_s20 + $0x10] sm:$0xff]  }
  0x3f   : > { %1149 = vmatpush3.bf16.msra.mxu1 %v1264_v7  ;;  %1122 = vmatprep.subr.bf16.mxu0 %v1265_v8  ;;  %v1280_v23 = vld [vmem:[%s1547_s20 + $0x90] sm:$0xff]   ;;  %v1281_v24 = vld [vmem:[%s1547_s20 + $0x48] sm:$0xff]   ;;  %v1285_v28 = vld [vmem:[%s1547_s20 + $0x40] sm:$0xff]  }
  0x40   : > { %1150 = vmatprep.subr.bf16.mxu1 %v1266_v9  ;;  %v1282_v25 = vld [vmem:[%s1547_s20 + $0xc8] sm:$0xff]   ;;  %v1286_v29 = vld [vmem:[%s1547_s20 + $0xc0] sm:$0xff]   ;;  %v1295_v36 = vld [vmem:[%s1547_s20 + $0x118] sm:$0xff]  }
  0x41   : > { %v1283_v26 = vld [vmem:[%s1547_s20 + $0x8] sm:$0xff]   ;;  %v1287_v30 = vld [vmem:[%s1547_s20] sm:$0xff]   ;;  %v1296_v37 = vld [vmem:[%s1547_s20 + $0x110] sm:$0xff]  }
  0x42   : > { %1123 = vmatpush3.bf16.msra.mxu0 %v1267_v10  ;;  %v1284_v27 = vld [vmem:[%s1547_s20 + $0x88] sm:$0xff]   ;;  %v1288_v31 = vld [vmem:[%s1547_s20 + $0x80] sm:$0xff]  }
  0x43   : > { %1151 = vmatpush3.bf16.msra.mxu1 %v1268_v11  ;;  %1124 = vmatprep.subr.bf16.mxu0 %v1269_v12  ;;  %v1289_v32 = vld [vmem:[%s1652_s0] ss:$20 sps:$4 sm:$0xff]   ;;  %v1291_v33 = vld [vmem:[%s1652_s0 + $0x4] ss:$20 sps:$4 sm:$0xff]   ;;  %v1292_v34 = vld [vmem:[%s1652_s0 + $0x8] ss:$20 sps:$4 sm:$0xff]  }
  0x44   : > { %1152 = vmatprep.subr.bf16.mxu1 %v1270_v13  ;;  %v1294_v35 = vld [vmem:[%s1652_s0 + $0xc] ss:$20 sps:$4 sm:$0xff]   ;;  %689 = vmatprep.mubr.bf16.mxu0 %v1291_v33  ;;  %v1299_v39 = vld [vmem:[%s1652_s0 + $0x34] ss:$20 sps:$4 sm:$0xff]   ;;  %v1302_v42 = vld [vmem:[%s1652_s0 + $0x30] ss:$20 sps:$4 sm:$0xff]  }
  0x45   : > { %738 = vmatprep.mubr.bf16.mxu1 %v1294_v35  ;;  %v1297_v38 = vld [vmem:[%s1652_s0 + $0x2c] ss:$20 sps:$4 sm:$0xff]   ;;  %v1301_v40 = vld [vmem:[%s1652_s0 + $0x28] ss:$20 sps:$4 sm:$0xff]   ;;  %v1305_v43 = vld [vmem:[%s1652_s0 + $0x10] ss:$20 sps:$4 sm:$0xff]  }
  0x46   : > { %1125 = vmatpush3.bf16.msra.mxu0 %v1271_v14  ;;  %v1303_v41 = vld [vmem:[%s1547_s20 + $0x108] sm:$0xff]   ;;  %v1304_v44 = vld [vmem:[%s1547_s20 + $0x100] sm:$0xff]   ;;  %s1045_s20 = sshll.u32 %s1543_s26, 4 }
  0x47   : > { %1153 = vmatpush3.bf16.msra.mxu1 %v1272_v15  ;;  %1126 = vmatprep.subr.bf16.mxu0 %v1273_v16  ;;  %v1306_v45 = vld [vmem:[%s1652_s0 + $0x38] ss:$20 sps:$4 sm:$0xff]   ;;  %v1094_v10 = vld [vmem:[%s237_s21] ss:$0 sm:$0xff]  ;;  %s272_s29 = scalar_lea.vmem [#allocation7], %s1045_s20  ;;  %s1100_s21 = sshll.u32 (%p1494_p9), %s1409_s15, 2 }
  0x48   : > { %1154 = vmatprep.subr.bf16.mxu1 %v1274_v17  ;;  %s865_s6 = scalar_lea.vmem (%p1494_p9), %s1655_s3, %s1100_s21 }
  0x4a   : > { %1127 = vmatpush3.bf16.msra.mxu0 %v1275_v18 }
  0x4b   : > { %1155 = vmatpush3.bf16.msra.mxu1 %v1276_v19  ;;  %1128 = vmatprep.subr.bf16.mxu0 %v1277_v20 }
  0x4c   : > { %1156 = vmatprep.subr.bf16.mxu1 %v1278_v21 }
  0x4e   : > { %1129 = vmatpush3.bf16.msra.mxu0 %v1279_v22 }
  0x4f   : > { %1157 = vmatpush3.bf16.msra.mxu1 %v1280_v23  ;;  %1130 = vmatprep.subr.bf16.mxu0 %v1281_v24 }
  0x50   : > { %1158 = vmatprep.subr.bf16.mxu1 %v1282_v25 }
  0x52   : > { %1131 = vmatpush3.bf16.msra.mxu0 %v1283_v26 }
  0x53   : > { %1159 = vmatpush3.bf16.msra.mxu1 %v1284_v27  ;;  %1132 = vmatprep.subr.bf16.mxu0 %v1285_v28 }
  0x54   : > { %1160 = vmatprep.subr.bf16.mxu1 %v1286_v29 }
  0x56   : > { %1133 = vmatpush3.bf16.msra.mxu0 %v1287_v30 }
  0x57   : > { %1161 = vmatpush3.bf16.msra.mxu1 %v1288_v31  ;;  %1180 = vmatprep.subr.bf16.mxu0 %v1295_v36 }
  0x59   : > { %690 = vmatmul.mubr.bf16.vlgmr.msra.gmra.mxu0 %v1289_v32 }
  0x5a   : > { %739 = vmatmul.mubr.bf16.vlgmr.msra.gmra.mxu1 %v1292_v34  ;;  %1181 = vmatpush3.bf16.msra.mxu0 %v1295_v36 }
  0x5b   : > { %1182 = vmatprep.subr.bf16.mxu0 %v1296_v37  ;;  %697 = vmatprep.mubr.bf16.mxu0 %v1297_v38 }
  0x5c   : > { %746 = vmatprep.mubr.bf16.mxu1 %v1299_v39 }
  0x5e   : > { %1183 = vmatpush3.bf16.msra.mxu0 %v1296_v37 }
  0x5f   : > { %1184 = vmatprep.subr.bf16.mxu0 %v1303_v41 }
  0x61   : > { %698 = vmatmul.mubr.bf16.gmra.mxu0 %v1301_v40 }
  0x62   : > { %747 = vmatmul.mubr.bf16.gmra.mxu1 %v1302_v42  ;;  %1188 = vmatprep.mubr.msk.bf16.mxu0 %vm650_vm0, %v1305_v43 }
  0x63   : > { %1185 = vmatpush3.bf16.msra.mxu0 %v1303_v41 }
  0x64   : > { %1186 = vmatprep.subr.bf16.mxu0 %v1304_v44 }
  0x67   : > { %1187 = vmatpush3.bf16.msra.mxu0 %v1304_v44 }
  0x6a   : > { %1189 = vmatmul.mubr.msk.bf16.vlgmr.msra.gmra.mxu0 %vm650_vm0, %v1306_v45 }
 0x119   : > { %v1134_v46 = vpop.f32.mrf.mxu0 }
 0x11a   : > { %v1162_v47 = vpop.f32.mrf.mxu1 }
 0x11b   : > { %v1135_v48 = vpop.f32.mrf.mxu0 }
 0x11c   : > { %v1163_v49 = vpop.f32.mrf.mxu1  ;;  %v1136_v62 = vadd.f32 %v1135_v48, %v1134_v46 }
 0x11d   : > { %v1137_v50 = vpop.f32.mrf.mxu0  ;;  %v1164_v63 = vadd.f32 %v1163_v49, %v1162_v47 }
 0x11e   : > { %v1165_v51 = vpop.f32.mrf.mxu1 }
 0x11f   : > { %v1138_v52 = vpop.f32.mrf.mxu0  ;;  %v741_v9 = vadd.f32 %v1164_v63, %v1136_v62 }
 0x120   : > { %v1166_v53 = vpop.f32.mrf.mxu1  ;;  %v1139_v6 = vadd.f32 %v1138_v52, %v1137_v50 }
 0x121   : > { %v1140_v54 = vpop.f32.mrf.mxu0  ;;  %v1167_v7 = vadd.f32 %v1166_v53, %v1165_v51 }
 0x122   : > { %v1168_v55 = vpop.f32.mrf.mxu1 }
 0x123   : > { %v1141_v56 = vpop.f32.mrf.mxu0  ;;  %v744_v17 = vadd.f32 %v1167_v7, %v1139_v6 }
 0x124   : > { %v1169_v57 = vpop.f32.mrf.mxu1  ;;  %v1142_v58 = vadd.f32 %v1141_v56, %v1140_v54 }
 0x125   : > { %v1170_v59 = vadd.f32 %v1169_v57, %v1168_v55  ;;  %v1143_v60 = vpop.f32.mrf.mxu0 }
 0x126   : > { %v1171_v61 = vpop.f32.mrf.mxu1 }
 0x127   : > { %v1144_v0 = vpop.f32.mrf.mxu0  ;;  %v749_v4 = vadd.f32 %v1170_v59, %v1142_v58 }
 0x128   : > { %v1172_v1 = vpop.f32.mrf.mxu1  ;;  %v1145_v2 = vadd.f32 %v1144_v0, %v1143_v60 }
 0x129   : > { %v1173_v3 = vadd.f32 %v1172_v1, %v1171_v61 }
 0x12a   : > { %v1190_v5 = vpop.f32.mrf.mxu0 }
 0x12b   : > { %v798_v8 = vadd.f32 %v1190_v5, %v749_v4  ;;  %v752_v13 = vadd.f32 %v1173_v3, %v1145_v2 }
 0x12c   : > { %v789_v11 = vpop.f32.mrf.mxu0 }
 0x12d   : > { %v790_v12 = vadd.f32 %v789_v11, %v741_v9  ;;  %v828_v15 = vadd.f32 %v1094_v10, %v798_v8 }
 0x12e   : > { %v1191_v14 = vpop.f32.mrf.mxu0 }
 0x12f   : > { %v801_v16 = vadd.f32 %v1191_v14, %v752_v13  ;;  %v826_v19 = vadd.f32 %v1094_v10, %v790_v12  ;;  %v832_v22 = vmax.f32 %v828_v15, 0.0 }
 0x130   : > { %v792_v18 = vpop.f32.mrf.mxu0 }
 0x131   : > { %v829_v20 = vadd.f32 %v1094_v10, %v801_v16  ;;  %v793_v21 = vadd.f32 %v792_v18, %v744_v17  ;;  %v830_v25 = vmax.f32 %v826_v19, 0.0 }
 0x133   : > { %v833_v23 = vmax.f32 %v829_v20, 0.0  ;;  %v827_v24 = vadd.f32 %v1094_v10, %v793_v21 }
 0x135   : > { %v1115_v26 = vpack.c.bf16 %v833_v23, %v832_v22  ;;  %v831_v27 = vmax.f32 %v827_v24, 0.0  ;;  %860 = sbr.rel (!%p1494_p9) target bundleno = 322 (0x142), region = 52 }
 0x137   : > { %1117 = vst [vmem:[%s272_s29 + $0x8] sm:$0xff] %v1115_v26   ;;  %v1110_v28 = vpack.c.bf16 %v831_v27, %v830_v25 }
 0x139   : > { %1111 = vst [vmem:[%s272_s29] sm:$0xff] %v1110_v28  }
 0x13e   : > { %v886_v31 = vld [vmem:[%s272_s29 + $0x8] sm:$0xf]  ;;  %v888_v32 = vld [vmem:[%s272_s29 + $0xc] sm:$0xf] }
 0x13f   : > { %887 = vst [vmem:[%s865_s6 + $0x10] sm:$0xf] %v886_v31  ;;  %889 = vst [vmem:[%s865_s6 + $0x18] sm:$0xf] %v888_v32 }
 0x140   : > { %v882_v29 = vld [vmem:[%s272_s29] sm:$0xf]  ;;  %v884_v30 = vld [vmem:[%s272_s29 + $0x4] sm:$0xf] }
 0x141   : > { %883 = vst [vmem:[%s865_s6] sm:$0xf] %v882_v29  ;;  %885 = vst [vmem:[%s865_s6 + $0x8] sm:$0xf] %v884_v30 }
 0x142 PF: > { %s19_s17 = sadd.s32 1, %s1417_s17   ;;  %s1661_s12 = smov %s1401_s13 }
 0x143   : > { %p16_p8 = scmp.ge.s32.totalorder %s19_s17, 4   ;;  %s1662_s13 = smov %s1405_s14 }
 0x144   : > { %s1663_s14 = smov %s1492_s24  ;;  %s1664_s15 = smov %s1413_s16 }
 0x145   : > { %s1665_s16 = smov %s1667_s19  ;;  %18 = sbr.rel (!%p16_p8) target bundleno = 6 (0x6), region = 137 }
 0x14a   :  { %931 = vsyncpa [#allocation4], 1 }
 0x14b   :  { %933 = vsyncpa [#allocation4 + $0x1], 1 }
 0x14c   :  { %934 = vsyncpa [#allocation6], 1 }
 0x14d   :  { %936 = vsyncpa [#allocation6 + $0x1], 1 }

// kernel: brixcolornet_forward.7
= control target key start
LH: loop header
LB: loop body
LE: loop exit
PB: predicated region body
PF: predicated region fallthrough
CT: control target
= control target key end

     0   :  { %s1831_s12 = smov 0   ;;  %s1833_s13 = smov 0   ;;  %s2249_s0 = inlined_call_operand.vmem [shape: bf16[8,2304], index: 0, kind: input, shape index: {}]   ;;  %s2250_s1 = inlined_call_operand.vmem [shape: bf16[2304,1024], index: 1, kind: input, shape index: {}]   ;;  %s2251_s2 = inlined_call_operand.vmem [shape: f32[1,1024], index: 2, kind: input, shape index: {}]   ;;  %s2252_s3 = inlined_call_operand.vmem [shape: bf16[8,1024], index: 3, kind: output, shape index: {}]  }
   0x1   :  { %s1835_s14 = smov 0   ;;  %s1837_s15 = smov 0  }
   0x2   :  { %s1839_s16 = smov 0   ;;  %s1841_s17 = smov 0  }
   0x3   :  { %s1843_s18 = smov 0  }
   0x4 LB: > { %s25_s19 = sadd.s32 1, %s1799_s16  ;;  %s28_s20 = sadd.s32 1, %s1803_s17  ;;  %s1807_s18 = sphi %s1843_s18, %s13_s18   ;;  %s1803_s17 = sphi %s1841_s17, %s2258_s17   ;;  %s1799_s16 = sphi %s1839_s16, %s2257_s16   ;;  %s1795_s15 = sphi %s1837_s15, %s2256_s15   ;;  %s1791_s14 = sphi %s1835_s14, %s2255_s14   ;;  %s1787_s13 = sphi %s1833_s13, %s2254_s13   ;;  %s1783_s12 = sphi %s1831_s12, %s2253_s12  }
   0x5   : > { %p26_p0 = scmp.ge.s32.totalorder %s25_s19, 6  ;;  %p76_p1 = scmp.ne.s32.totalorder %s1787_s13, %s1783_s12 }
   0x6   : > { %p77_p2 = scmp.eq.s32.totalorder %s1807_s18, 0  ;;  %s69_s24 = sadd.s32 1, %s1787_s13 }
   0x7   : > { %s2260_s19 = smov (%p26_p0, %s25_s19), 0  ;;  %s2262_s20 = smov (!%p26_p0, %s28_s20), %s1803_s17 }
   0x8   : > { %p78_p3 = por %p77_p2, %p76_p1  ;;  %p30_p4 = scmp.ge.s32.totalorder %s2262_s20, 2 }
   0x9   : > { %s64_s21 = ssub.s32 %s1799_s16, %s2260_s19  ;;  %p1429_p6 = scmp.ge.s32.totalorder %s1807_s18, 12 }
   0xa   : > { %s2264_s20 = smov (%p30_p4, %s2262_s20), 0 }
   0xb   : > { %s65_s22 = ssub.s32 %s1803_s17, %s2264_s20  ;;  %156 = sbr.rel (%p1429_p6) target bundleno = 72 (0x48), region = 16 }
   0xc   : > { %s66_s23 = sor.u32 %s65_s22, %s64_s21 }
   0xd   : > { %p67_p5 = scmp.eq.s32.totalorder %s66_s23, 0 }
   0xf   : > { %s1882_s25 = scalar_select %p67_p5, %s1787_s13, %s69_s24  }
  0x10   : > { %172 = sbr.rel (!%p78_p3) target bundleno = 72 (0x48), region = 24  ;;  %s174_s26 = sand.u32 (%p78_p3), 1, %s1787_s13  }
  0x11   : > { %s1546_s27 = smul.u32 (%p78_p3), 768, %s174_s26  ;;  %s1430_s28 = sshll.u32 (%p78_p3), %s1803_s17, 2 }
  0x12   : > { %s1543_s29 = smul.u32 (%p78_p3), 384, %s1799_s16 }
  0x13   : > { %s1896_s8 = scalar_lea.vmem (%p78_p3), [#allocation3], %s1546_s27 }
  0x14   : > { %s180_s30 = sadd.s32 (%p78_p3), %s1543_s29, %s1430_s28 }
  0x15   : > { %s1432_s4 = sshll.u32 %s180_s30, 2 }
  0x16   : > { %s1891_s7 = scalar_lea.vmem %s2250_s1, %s1432_s4 }
  0x17   : > { %v195_v0 = vld [vmem:[%s1891_s7] sm:$0xff]  ;;  %v197_v1 = vld [vmem:[%s1891_s7 + $0x8] sm:$0xff] }
  0x18   : > { %v199_v2 = vld [vmem:[%s1891_s7 + $0x20] sm:$0xff]  ;;  %196 = vst [vmem:[%s1896_s8] sm:$0xff] %v195_v0  ;;  %198 = vst [vmem:[%s1896_s8 + $0x8] sm:$0xff] %v197_v1  ;;  %v201_v3 = vld [vmem:[%s1891_s7 + $0x28] sm:$0xff] }
  0x19   : > { %200 = vst [vmem:[%s1896_s8 + $0x10] sm:$0xff] %v199_v2  ;;  %v203_v4 = vld [vmem:[%s1891_s7 + $0x40] sm:$0xff]  ;;  %v205_v5 = vld [vmem:[%s1891_s7 + $0x48] sm:$0xff]  ;;  %202 = vst [vmem:[%s1896_s8 + $0x18] sm:$0xff] %v201_v3 }
  0x1a   : > { %204 = vst [vmem:[%s1896_s8 + $0x20] sm:$0xff] %v203_v4  ;;  %206 = vst [vmem:[%s1896_s8 + $0x28] sm:$0xff] %v205_v5  ;;  %v207_v6 = vld [vmem:[%s1891_s7 + $0x60] sm:$0xff]  ;;  %v209_v7 = vld [vmem:[%s1891_s7 + $0x68] sm:$0xff] }
  0x1b   : > { %v211_v8 = vld [vmem:[%s1891_s7 + $0x80] sm:$0xff]  ;;  %208 = vst [vmem:[%s1896_s8 + $0x30] sm:$0xff] %v207_v6  ;;  %210 = vst [vmem:[%s1896_s8 + $0x38] sm:$0xff] %v209_v7  ;;  %v213_v9 = vld [vmem:[%s1891_s7 + $0x88] sm:$0xff] }
  0x1c   : > { %212 = vst [vmem:[%s1896_s8 + $0x40] sm:$0xff] %v211_v8  ;;  %v215_v10 = vld [vmem:[%s1891_s7 + $0xa0] sm:$0xff]  ;;  %v217_v11 = vld [vmem:[%s1891_s7 + $0xa8] sm:$0xff]  ;;  %214 = vst [vmem:[%s1896_s8 + $0x48] sm:$0xff] %v213_v9 }
  0x1d   : > { %216 = vst [vmem:[%s1896_s8 + $0x50] sm:$0xff] %v215_v10  ;;  %218 = vst [vmem:[%s1896_s8 + $0x58] sm:$0xff] %v217_v11  ;;  %v219_v12 = vld [vmem:[%s1891_s7 + $0xc0] sm:$0xff]  ;;  %v221_v13 = vld [vmem:[%s1891_s7 + $0xc8] sm:$0xff] }
  0x1e   : > { %v223_v14 = vld [vmem:[%s1891_s7 + $0xe0] sm:$0xff]  ;;  %220 = vst [vmem:[%s1896_s8 + $0x60] sm:$0xff] %v219_v12  ;;  %222 = vst [vmem:[%s1896_s8 + $0x68] sm:$0xff] %v221_v13  ;;  %v225_v15 = vld [vmem:[%s1891_s7 + $0xe8] sm:$0xff] }
  0x1f   : > { %224 = vst [vmem:[%s1896_s8 + $0x70] sm:$0xff] %v223_v14  ;;  %v227_v16 = vld [vmem:[%s1891_s7 + $0x100] sm:$0xff]  ;;  %v229_v17 = vld [vmem:[%s1891_s7 + $0x108] sm:$0xff]  ;;  %226 = vst [vmem:[%s1896_s8 + $0x78] sm:$0xff] %v225_v15 }
  0x20   : > { %228 = vst [vmem:[%s1896_s8 + $0x80] sm:$0xff] %v227_v16  ;;  %230 = vst [vmem:[%s1896_s8 + $0x88] sm:$0xff] %v229_v17  ;;  %v231_v18 = vld [vmem:[%s1891_s7 + $0x120] sm:$0xff]  ;;  %v233_v19 = vld [vmem:[%s1891_s7 + $0x128] sm:$0xff] }
  0x21   : > { %v235_v20 = vld [vmem:[%s1891_s7 + $0x140] sm:$0xff]  ;;  %232 = vst [vmem:[%s1896_s8 + $0x90] sm:$0xff] %v231_v18  ;;  %234 = vst [vmem:[%s1896_s8 + $0x98] sm:$0xff] %v233_v19  ;;  %v237_v21 = vld [vmem:[%s1891_s7 + $0x148] sm:$0xff] }
  0x22   : > { %236 = vst [vmem:[%s1896_s8 + $0xa0] sm:$0xff] %v235_v20  ;;  %v239_v22 = vld [vmem:[%s1891_s7 + $0x160] sm:$0xff]  ;;  %v241_v23 = vld [vmem:[%s1891_s7 + $0x168] sm:$0xff]  ;;  %238 = vst [vmem:[%s1896_s8 + $0xa8] sm:$0xff] %v237_v21 }
  0x23   : > { %240 = vst [vmem:[%s1896_s8 + $0xb0] sm:$0xff] %v239_v22  ;;  %242 = vst [vmem:[%s1896_s8 + $0xb8] sm:$0xff] %v241_v23  ;;  %v243_v24 = vld [vmem:[%s1891_s7 + $0x180] sm:$0xff]  ;;  %v245_v25 = vld [vmem:[%s1891_s7 + $0x188] sm:$0xff] }
  0x24   : > { %v247_v26 = vld [vmem:[%s1891_s7 + $0x1a0] sm:$0xff]  ;;  %244 = vst [vmem:[%s1896_s8 + $0xc0] sm:$0xff] %v243_v24  ;;  %246 = vst [vmem:[%s1896_s8 + $0xc8] sm:$0xff] %v245_v25  ;;  %v249_v27 = vld [vmem:[%s1891_s7 + $0x1a8] sm:$0xff] }
  0x25   : > { %248 = vst [vmem:[%s1896_s8 + $0xd0] sm:$0xff] %v247_v26  ;;  %v251_v28 = vld [vmem:[%s1891_s7 + $0x1c0] sm:$0xff]  ;;  %v253_v29 = vld [vmem:[%s1891_s7 + $0x1c8] sm:$0xff]  ;;  %250 = vst [vmem:[%s1896_s8 + $0xd8] sm:$0xff] %v249_v27 }
  0x26   : > { %252 = vst [vmem:[%s1896_s8 + $0xe0] sm:$0xff] %v251_v28  ;;  %254 = vst [vmem:[%s1896_s8 + $0xe8] sm:$0xff] %v253_v29  ;;  %v255_v30 = vld [vmem:[%s1891_s7 + $0x1e0] sm:$0xff]  ;;  %v257_v31 = vld [vmem:[%s1891_s7 + $0x1e8] sm:$0xff] }
  0x27   : > { %v259_v32 = vld [vmem:[%s1891_s7 + $0x200] sm:$0xff]  ;;  %256 = vst [vmem:[%s1896_s8 + $0xf0] sm:$0xff] %v255_v30  ;;  %258 = vst [vmem:[%s1896_s8 + $0xf8] sm:$0xff] %v257_v31  ;;  %v261_v33 = vld [vmem:[%s1891_s7 + $0x208] sm:$0xff] }
  0x28   : > { %260 = vst [vmem:[%s1896_s8 + $0x100] sm:$0xff] %v259_v32  ;;  %v263_v34 = vld [vmem:[%s1891_s7 + $0x220] sm:$0xff]  ;;  %v265_v35 = vld [vmem:[%s1891_s7 + $0x228] sm:$0xff]  ;;  %262 = vst [vmem:[%s1896_s8 + $0x108] sm:$0xff] %v261_v33 }
  0x29   : > { %264 = vst [vmem:[%s1896_s8 + $0x110] sm:$0xff] %v263_v34  ;;  %266 = vst [vmem:[%s1896_s8 + $0x118] sm:$0xff] %v265_v35  ;;  %v267_v36 = vld [vmem:[%s1891_s7 + $0x240] sm:$0xff]  ;;  %v269_v37 = vld [vmem:[%s1891_s7 + $0x248] sm:$0xff] }
  0x2a   : > { %v271_v38 = vld [vmem:[%s1891_s7 + $0x260] sm:$0xff]  ;;  %268 = vst [vmem:[%s1896_s8 + $0x120] sm:$0xff] %v267_v36  ;;  %270 = vst [vmem:[%s1896_s8 + $0x128] sm:$0xff] %v269_v37  ;;  %v273_v39 = vld [vmem:[%s1891_s7 + $0x268] sm:$0xff] }
  0x2b   : > { %272 = vst [vmem:[%s1896_s8 + $0x130] sm:$0xff] %v271_v38  ;;  %v275_v40 = vld [vmem:[%s1891_s7 + $0x280] sm:$0xff]  ;;  %v277_v41 = vld [vmem:[%s1891_s7 + $0x288] sm:$0xff]  ;;  %274 = vst [vmem:[%s1896_s8 + $0x138] sm:$0xff] %v273_v39 }
  0x2c   : > { %276 = vst [vmem:[%s1896_s8 + $0x140] sm:$0xff] %v275_v40  ;;  %278 = vst [vmem:[%s1896_s8 + $0x148] sm:$0xff] %v277_v41  ;;  %v279_v42 = vld [vmem:[%s1891_s7 + $0x2a0] sm:$0xff]  ;;  %v281_v43 = vld [vmem:[%s1891_s7 + $0x2a8] sm:$0xff] }
  0x2d   : > { %v283_v44 = vld [vmem:[%s1891_s7 + $0x2c0] sm:$0xff]  ;;  %280 = vst [vmem:[%s1896_s8 + $0x150] sm:$0xff] %v279_v42  ;;  %282 = vst [vmem:[%s1896_s8 + $0x158] sm:$0xff] %v281_v43  ;;  %v285_v45 = vld [vmem:[%s1891_s7 + $0x2c8] sm:$0xff] }
  0x2e   : > { %284 = vst [vmem:[%s1896_s8 + $0x160] sm:$0xff] %v283_v44  ;;  %v287_v46 = vld [vmem:[%s1891_s7 + $0x2e0] sm:$0xff]  ;;  %v289_v47 = vld [vmem:[%s1891_s7 + $0x2e8] sm:$0xff]  ;;  %286 = vst [vmem:[%s1896_s8 + $0x168] sm:$0xff] %v285_v45 }
  0x2f   : > { %288 = vst [vmem:[%s1896_s8 + $0x170] sm:$0xff] %v287_v46  ;;  %290 = vst [vmem:[%s1896_s8 + $0x178] sm:$0xff] %v289_v47  ;;  %v291_v48 = vld [vmem:[%s1891_s7 + $0x300] sm:$0xff]  ;;  %v293_v49 = vld [vmem:[%s1891_s7 + $0x308] sm:$0xff] }
  0x30   : > { %v295_v50 = vld [vmem:[%s1891_s7 + $0x320] sm:$0xff]  ;;  %292 = vst [vmem:[%s1896_s8 + $0x180] sm:$0xff] %v291_v48  ;;  %294 = vst [vmem:[%s1896_s8 + $0x188] sm:$0xff] %v293_v49  ;;  %v297_v51 = vld [vmem:[%s1891_s7 + $0x328] sm:$0xff] }
  0x31   : > { %296 = vst [vmem:[%s1896_s8 + $0x190] sm:$0xff] %v295_v50  ;;  %v299_v52 = vld [vmem:[%s1891_s7 + $0x340] sm:$0xff]  ;;  %v301_v53 = vld [vmem:[%s1891_s7 + $0x348] sm:$0xff]  ;;  %298 = vst [vmem:[%s1896_s8 + $0x198] sm:$0xff] %v297_v51 }
  0x32   : > { %300 = vst [vmem:[%s1896_s8 + $0x1a0] sm:$0xff] %v299_v52  ;;  %302 = vst [vmem:[%s1896_s8 + $0x1a8] sm:$0xff] %v301_v53  ;;  %v303_v54 = vld [vmem:[%s1891_s7 + $0x360] sm:$0xff]  ;;  %v305_v55 = vld [vmem:[%s1891_s7 + $0x368] sm:$0xff] }
  0x33   : > { %v307_v56 = vld [vmem:[%s1891_s7 + $0x380] sm:$0xff]  ;;  %304 = vst [vmem:[%s1896_s8 + $0x1b0] sm:$0xff] %v303_v54  ;;  %306 = vst [vmem:[%s1896_s8 + $0x1b8] sm:$0xff] %v305_v55  ;;  %v309_v57 = vld [vmem:[%s1891_s7 + $0x388] sm:$0xff] }
  0x34   : > { %308 = vst [vmem:[%s1896_s8 + $0x1c0] sm:$0xff] %v307_v56  ;;  %v311_v58 = vld [vmem:[%s1891_s7 + $0x3a0] sm:$0xff]  ;;  %v313_v59 = vld [vmem:[%s1891_s7 + $0x3a8] sm:$0xff]  ;;  %310 = vst [vmem:[%s1896_s8 + $0x1c8] sm:$0xff] %v309_v57 }
  0x35   : > { %312 = vst [vmem:[%s1896_s8 + $0x1d0] sm:$0xff] %v311_v58  ;;  %314 = vst [vmem:[%s1896_s8 + $0x1d8] sm:$0xff] %v313_v59  ;;  %v315_v60 = vld [vmem:[%s1891_s7 + $0x3c0] sm:$0xff]  ;;  %v317_v61 = vld [vmem:[%s1891_s7 + $0x3c8] sm:$0xff] }
  0x36   : > { %v319_v62 = vld [vmem:[%s1891_s7 + $0x3e0] sm:$0xff]  ;;  %316 = vst [vmem:[%s1896_s8 + $0x1e0] sm:$0xff] %v315_v60  ;;  %318 = vst [vmem:[%s1896_s8 + $0x1e8] sm:$0xff] %v317_v61  ;;  %v321_v63 = vld [vmem:[%s1891_s7 + $0x3e8] sm:$0xff] }
  0x37   : > { %320 = vst [vmem:[%s1896_s8 + $0x1f0] sm:$0xff] %v319_v62  ;;  %v323_v0 = vld [vmem:[%s1891_s7 + $0x400] sm:$0xff]  ;;  %v325_v1 = vld [vmem:[%s1891_s7 + $0x408] sm:$0xff]  ;;  %322 = vst [vmem:[%s1896_s8 + $0x1f8] sm:$0xff] %v321_v63 }
  0x38   : > { %324 = vst [vmem:[%s1896_s8 + $0x200] sm:$0xff] %v323_v0  ;;  %326 = vst [vmem:[%s1896_s8 + $0x208] sm:$0xff] %v325_v1  ;;  %v327_v2 = vld [vmem:[%s1891_s7 + $0x420] sm:$0xff]  ;;  %v329_v3 = vld [vmem:[%s1891_s7 + $0x428] sm:$0xff] }
  0x39   : > { %v331_v4 = vld [vmem:[%s1891_s7 + $0x440] sm:$0xff]  ;;  %328 = vst [vmem:[%s1896_s8 + $0x210] sm:$0xff] %v327_v2  ;;  %330 = vst [vmem:[%s1896_s8 + $0x218] sm:$0xff] %v329_v3  ;;  %v333_v5 = vld [vmem:[%s1891_s7 + $0x448] sm:$0xff] }
  0x3a   : > { %332 = vst [vmem:[%s1896_s8 + $0x220] sm:$0xff] %v331_v4  ;;  %v335_v6 = vld [vmem:[%s1891_s7 + $0x460] sm:$0xff]  ;;  %v337_v7 = vld [vmem:[%s1891_s7 + $0x468] sm:$0xff]  ;;  %334 = vst [vmem:[%s1896_s8 + $0x228] sm:$0xff] %v333_v5 }
  0x3b   : > { %336 = vst [vmem:[%s1896_s8 + $0x230] sm:$0xff] %v335_v6  ;;  %338 = vst [vmem:[%s1896_s8 + $0x238] sm:$0xff] %v337_v7  ;;  %v339_v8 = vld [vmem:[%s1891_s7 + $0x480] sm:$0xff]  ;;  %v341_v9 = vld [vmem:[%s1891_s7 + $0x488] sm:$0xff] }
  0x3c   : > { %v343_v10 = vld [vmem:[%s1891_s7 + $0x4a0] sm:$0xff]  ;;  %340 = vst [vmem:[%s1896_s8 + $0x240] sm:$0xff] %v339_v8  ;;  %342 = vst [vmem:[%s1896_s8 + $0x248] sm:$0xff] %v341_v9  ;;  %v345_v11 = vld [vmem:[%s1891_s7 + $0x4a8] sm:$0xff] }
  0x3d   : > { %344 = vst [vmem:[%s1896_s8 + $0x250] sm:$0xff] %v343_v10  ;;  %v347_v12 = vld [vmem:[%s1891_s7 + $0x4c0] sm:$0xff]  ;;  %v349_v13 = vld [vmem:[%s1891_s7 + $0x4c8] sm:$0xff]  ;;  %346 = vst [vmem:[%s1896_s8 + $0x258] sm:$0xff] %v345_v11 }
  0x3e   : > { %348 = vst [vmem:[%s1896_s8 + $0x260] sm:$0xff] %v347_v12  ;;  %350 = vst [vmem:[%s1896_s8 + $0x268] sm:$0xff] %v349_v13  ;;  %v351_v14 = vld [vmem:[%s1891_s7 + $0x4e0] sm:$0xff]  ;;  %v353_v15 = vld [vmem:[%s1891_s7 + $0x4e8] sm:$0xff] }
  0x3f   : > { %v355_v16 = vld [vmem:[%s1891_s7 + $0x500] sm:$0xff]  ;;  %352 = vst [vmem:[%s1896_s8 + $0x270] sm:$0xff] %v351_v14  ;;  %354 = vst [vmem:[%s1896_s8 + $0x278] sm:$0xff] %v353_v15  ;;  %v357_v17 = vld [vmem:[%s1891_s7 + $0x508] sm:$0xff] }
  0x40   : > { %356 = vst [vmem:[%s1896_s8 + $0x280] sm:$0xff] %v355_v16  ;;  %v359_v18 = vld [vmem:[%s1891_s7 + $0x520] sm:$0xff]  ;;  %v361_v19 = vld [vmem:[%s1891_s7 + $0x528] sm:$0xff]  ;;  %358 = vst [vmem:[%s1896_s8 + $0x288] sm:$0xff] %v357_v17 }
  0x41   : > { %360 = vst [vmem:[%s1896_s8 + $0x290] sm:$0xff] %v359_v18  ;;  %362 = vst [vmem:[%s1896_s8 + $0x298] sm:$0xff] %v361_v19  ;;  %v363_v20 = vld [vmem:[%s1891_s7 + $0x540] sm:$0xff]  ;;  %v365_v21 = vld [vmem:[%s1891_s7 + $0x548] sm:$0xff] }
  0x42   : > { %v367_v22 = vld [vmem:[%s1891_s7 + $0x560] sm:$0xff]  ;;  %364 = vst [vmem:[%s1896_s8 + $0x2a0] sm:$0xff] %v363_v20  ;;  %366 = vst [vmem:[%s1896_s8 + $0x2a8] sm:$0xff] %v365_v21  ;;  %v369_v23 = vld [vmem:[%s1891_s7 + $0x568] sm:$0xff] }
  0x43   : > { %368 = vst [vmem:[%s1896_s8 + $0x2b0] sm:$0xff] %v367_v22  ;;  %v371_v24 = vld [vmem:[%s1891_s7 + $0x580] sm:$0xff]  ;;  %v373_v25 = vld [vmem:[%s1891_s7 + $0x588] sm:$0xff]  ;;  %370 = vst [vmem:[%s1896_s8 + $0x2b8] sm:$0xff] %v369_v23 }
  0x44   : > { %372 = vst [vmem:[%s1896_s8 + $0x2c0] sm:$0xff] %v371_v24  ;;  %374 = vst [vmem:[%s1896_s8 + $0x2c8] sm:$0xff] %v373_v25  ;;  %v375_v26 = vld [vmem:[%s1891_s7 + $0x5a0] sm:$0xff]  ;;  %v377_v27 = vld [vmem:[%s1891_s7 + $0x5a8] sm:$0xff] }
  0x45   : > { %v379_v28 = vld [vmem:[%s1891_s7 + $0x5c0] sm:$0xff]  ;;  %376 = vst [vmem:[%s1896_s8 + $0x2d0] sm:$0xff] %v375_v26  ;;  %378 = vst [vmem:[%s1896_s8 + $0x2d8] sm:$0xff] %v377_v27  ;;  %v381_v29 = vld [vmem:[%s1891_s7 + $0x5c8] sm:$0xff] }
  0x46   : > { %380 = vst [vmem:[%s1896_s8 + $0x2e0] sm:$0xff] %v379_v28  ;;  %v383_v30 = vld [vmem:[%s1891_s7 + $0x5e0] sm:$0xff]  ;;  %v385_v31 = vld [vmem:[%s1891_s7 + $0x5e8] sm:$0xff]  ;;  %382 = vst [vmem:[%s1896_s8 + $0x2e8] sm:$0xff] %v381_v29 }
  0x47   : > { %384 = vst [vmem:[%s1896_s8 + $0x2f0] sm:$0xff] %v383_v30  ;;  %386 = vst [vmem:[%s1896_s8 + $0x2f8] sm:$0xff] %v385_v31 }
  0x48 PF: > { %p1433_p7 = scmp.ge.s32.totalorder %s1807_s18, 1  ;;  %p399_p8 = scmp.lt.s32.totalorder %s1807_s18, 13 }
  0x4a   : > { %p400_p9 = pnand %p1433_p7, %p399_p8 }
  0x4b   : > { %s406_s9 = sand.u32 (!%p400_p9), 1, %s1783_s12   ;;  %s446_s10 = smul.u32 (!%p400_p9), 3, %s1791_s14 }
  0x4c   : > { %403 = sbr.rel (%p400_p9) target bundleno = 405 (0x195), region = 51  ;;  %s1435_s21 = sshll.u32 (!%p400_p9), %s1795_s15, 2 }
  0x4d   : > { %s1547_s11 = smul.u32 (!%p400_p9), 768, %s406_s9  ;;  %p449_p10 = scmp.lt.s32.totalorder (!%p400_p9), %s446_s10, 17 }
  0x4e   : > { %p459_p11 = scmp.lt.s32.totalorder (!%p400_p9), %s1435_s21, 7  ;;  %p1438_p12 = scmp.ne.s32.totalorder (!%p400_p9), %s1791_s14, 0 }
  0x4f   : > { %s2109_s5 = scalar_lea.vmem (!%p400_p9), [#allocation3], %s1547_s11 }
  0x51   : > { %s2266_s10 = smov (!%p449_p10, %s446_s10), 17  ;;  %s2268_s21 = smov (!%p459_p11, %s1435_s21), 7 }
  0x52   : > { %s1434_s22 = sshll.u32 %s2266_s10, 2  ;;  %s461_s12 = scalar_lea.vmem %s2251_s2, %s2268_s21 }
  0x53   : > { %s2097_s26 = scalar_lea.vmem %s2249_s0, %s1434_s22  ;;  %s1437_s29 = sshll.u32 %s2268_s21, 2 }
  0x54   : > { %s2107_s4 = scalar_lea.vmem %s2252_s3, %s1437_s29  ;;  %477 = sbr.rel (%p1438_p12) target bundleno = 92 (0x5c), region = 59 }
  0x59   : > { %v1809_v32 = vmov 0.0  }
  0x5a   : > { %478 = vst [vmem:[#allocation2 + $0x10] sm:$0xff] %v1809_v32  ;;  %479 = vst [vmem:[#allocation2] sm:$0xff] %v1809_v32 }
  0x5b   : > { %480 = vst [vmem:[#allocation2 + $0x18] sm:$0xff] %v1809_v32  ;;  %481 = vst [vmem:[#allocation2 + $0x8] sm:$0xff] %v1809_v32 }
  0x5c PF: > { %v1606_v33 = vld [vmem:[%s2109_s5 + $0xe4] ss:$16 sps:$4 sm:$0xff]   ;;  %v1810_v35 = vmov 0   ;;  %v1610_v36 = vld [vmem:[%s2109_s5 + $0xe0] ss:$16 sps:$4 sm:$0xff]   ;;  %p1538_p13 = scmp.ne.s32.totalorder %s1791_s14, 5 }
  0x5d   : > { %v1608_v34 = vld [vmem:[%s2109_s5 + $0x2e4] ss:$16 sps:$4 sm:$0xff]   ;;  %1148 = vmatprep.mubr.bf16.mxu1 %v1810_v35  ;;  %1075 = vmatprep.subr.bf16.mxu0 %v1606_v33  ;;  %v1611_v37 = vld [vmem:[%s2109_s5 + $0x2e0] ss:$16 sps:$4 sm:$0xff]   ;;  %v1659_v3 = vld [vmem:[%s2109_s5 + $0xec] ss:$16 sps:$4 sm:$0xff]  }
  0x5e   : > { %1116 = vmatprep.subr.bf16.mxu1 %v1608_v34  ;;  %v1612_v38 = vld [vmem:[%s2109_s5 + $0xc4] ss:$16 sps:$4 sm:$0xff]   ;;  %1076 = vmatpush1.bf16.msra.mxu0 %v1610_v36  ;;  %v1616_v40 = vld [vmem:[%s2109_s5 + $0xc0] ss:$16 sps:$4 sm:$0xff]   ;;  %v2148_v4 = vld [vmem:[%s2097_s26 + $0x8] ss:$0 sps:$4 sm:$0xff]  }
  0x5f   : > { %1117 = vmatpush1.bf16.msra.mxu1 %v1611_v37  ;;  %v1614_v39 = vld [vmem:[%s2109_s5 + $0x2c4] ss:$16 sps:$4 sm:$0xff]   ;;  %1077 = vmatprep.subr.bf16.mxu0 %v1612_v38  ;;  %v1617_v41 = vld [vmem:[%s2109_s5 + $0x2c0] ss:$16 sps:$4 sm:$0xff]   ;;  %v1657_v5 = vld [vmem:[%s2109_s5 + $0xe8] ss:$16 sps:$4 sm:$0xff]  }
  0x60   : > { %1118 = vmatprep.subr.bf16.mxu1 %v1614_v39  ;;  %v1618_v42 = vld [vmem:[%s2109_s5 + $0xa4] ss:$16 sps:$4 sm:$0xff]   ;;  %v1622_v44 = vld [vmem:[%s2109_s5 + $0xa0] ss:$16 sps:$4 sm:$0xff]   ;;  %v1665_v8 = vld [vmem:[%s2109_s5 + $0xcc] ss:$16 sps:$4 sm:$0xff]  }
  0x61   : > { %v1620_v43 = vld [vmem:[%s2109_s5 + $0x2a4] ss:$16 sps:$4 sm:$0xff]   ;;  %v1623_v45 = vld [vmem:[%s2109_s5 + $0x2a0] ss:$16 sps:$4 sm:$0xff]   ;;  %v1663_v9 = vld [vmem:[%s2109_s5 + $0xc8] ss:$16 sps:$4 sm:$0xff]  }
  0x62   : > { %1078 = vmatpush1.bf16.msra.mxu0 %v1616_v40  ;;  %v1624_v46 = vld [vmem:[%s2109_s5 + $0x84] ss:$16 sps:$4 sm:$0xff]   ;;  %v1628_v48 = vld [vmem:[%s2109_s5 + $0x80] ss:$16 sps:$4 sm:$0xff]   ;;  %v1671_v12 = vld [vmem:[%s2109_s5 + $0xac] ss:$16 sps:$4 sm:$0xff]  }
  0x63   : > { %1119 = vmatpush1.bf16.msra.mxu1 %v1617_v41  ;;  %1079 = vmatprep.subr.bf16.mxu0 %v1618_v42  ;;  %v1626_v47 = vld [vmem:[%s2109_s5 + $0x284] ss:$16 sps:$4 sm:$0xff]   ;;  %v1629_v49 = vld [vmem:[%s2109_s5 + $0x280] ss:$16 sps:$4 sm:$0xff]   ;;  %v1669_v13 = vld [vmem:[%s2109_s5 + $0xa8] ss:$16 sps:$4 sm:$0xff]  }
  0x64   : > { %1120 = vmatprep.subr.bf16.mxu1 %v1620_v43  ;;  %v1630_v50 = vld [vmem:[%s2109_s5 + $0x64] ss:$16 sps:$4 sm:$0xff]   ;;  %v1634_v52 = vld [vmem:[%s2109_s5 + $0x60] ss:$16 sps:$4 sm:$0xff]   ;;  %v1677_v16 = vld [vmem:[%s2109_s5 + $0x8c] ss:$16 sps:$4 sm:$0xff]  }
  0x65   : > { %v1632_v51 = vld [vmem:[%s2109_s5 + $0x264] ss:$16 sps:$4 sm:$0xff]   ;;  %v1635_v53 = vld [vmem:[%s2109_s5 + $0x260] ss:$16 sps:$4 sm:$0xff]   ;;  %v1675_v17 = vld [vmem:[%s2109_s5 + $0x88] ss:$16 sps:$4 sm:$0xff]  }
  0x66   : > { %1080 = vmatpush1.bf16.msra.mxu0 %v1622_v44  ;;  %v1636_v54 = vld [vmem:[%s2109_s5 + $0x44] ss:$16 sps:$4 sm:$0xff]   ;;  %v1640_v56 = vld [vmem:[%s2109_s5 + $0x40] ss:$16 sps:$4 sm:$0xff]   ;;  %v1683_v22 = vld [vmem:[%s2109_s5 + $0x6c] ss:$16 sps:$4 sm:$0xff]  }
  0x67   : > { %1121 = vmatpush1.bf16.msra.mxu1 %v1623_v45  ;;  %1081 = vmatprep.subr.bf16.mxu0 %v1624_v46  ;;  %v1638_v55 = vld [vmem:[%s2109_s5 + $0x244] ss:$16 sps:$4 sm:$0xff]   ;;  %v1641_v57 = vld [vmem:[%s2109_s5 + $0x240] ss:$16 sps:$4 sm:$0xff]   ;;  %v1681_v23 = vld [vmem:[%s2109_s5 + $0x68] ss:$16 sps:$4 sm:$0xff]  }
  0x68   : > { %1122 = vmatprep.subr.bf16.mxu1 %v1626_v47  ;;  %v1642_v58 = vld [vmem:[%s2109_s5 + $0x24] ss:$16 sps:$4 sm:$0xff]   ;;  %v1646_v60 = vld [vmem:[%s2109_s5 + $0x20] ss:$16 sps:$4 sm:$0xff]   ;;  %v1689_v26 = vld [vmem:[%s2109_s5 + $0x4c] ss:$16 sps:$4 sm:$0xff]  }
  0x69   : > { %v1644_v59 = vld [vmem:[%s2109_s5 + $0x224] ss:$16 sps:$4 sm:$0xff]   ;;  %v1647_v61 = vld [vmem:[%s2109_s5 + $0x220] ss:$16 sps:$4 sm:$0xff]   ;;  %v1687_v27 = vld [vmem:[%s2109_s5 + $0x48] ss:$16 sps:$4 sm:$0xff]  }
  0x6a   : > { %1082 = vmatpush1.bf16.msra.mxu0 %v1628_v48  ;;  %v1648_v62 = vld [vmem:[%s2109_s5 + $0x4] ss:$16 sps:$4 sm:$0xff]   ;;  %v1652_v0 = vld [vmem:[%s2109_s5] ss:$16 sps:$4 sm:$0xff]   ;;  %v1695_v30 = vld [vmem:[%s2109_s5 + $0x2c] ss:$16 sps:$4 sm:$0xff]  }
  0x6b   : > { %1123 = vmatpush1.bf16.msra.mxu1 %v1629_v49  ;;  %1083 = vmatprep.subr.bf16.mxu0 %v1630_v50  ;;  %v1650_v63 = vld [vmem:[%s2109_s5 + $0x204] ss:$16 sps:$4 sm:$0xff]   ;;  %v1653_v1 = vld [vmem:[%s2109_s5 + $0x200] ss:$16 sps:$4 sm:$0xff]   ;;  %v1693_v31 = vld [vmem:[%s2109_s5 + $0x28] ss:$16 sps:$4 sm:$0xff]  }
  0x6c   : > { %1124 = vmatprep.subr.bf16.mxu1 %v1632_v51  ;;  %v1654_v2 = vld [vmem:[%s2109_s5 + $0x1e4] ss:$16 sps:$4 sm:$0xff]   ;;  %v1660_v6 = vld [vmem:[%s2109_s5 + $0x1e0] ss:$16 sps:$4 sm:$0xff]   ;;  %v1701_v34 = vld [vmem:[%s2109_s5 + $0xc] ss:$16 sps:$4 sm:$0xff]  }
  0x6d   : > { %v1661_v7 = vld [vmem:[%s2109_s5 + $0x1c4] ss:$16 sps:$4 sm:$0xff]   ;;  %v1666_v10 = vld [vmem:[%s2109_s5 + $0x1c0] ss:$16 sps:$4 sm:$0xff]   ;;  %v1699_v36 = vld [vmem:[%s2109_s5 + $0x8] ss:$16 sps:$4 sm:$0xff]  }
  0x6e   : > { %1084 = vmatpush1.bf16.msra.mxu0 %v1634_v52  ;;  %v1667_v11 = vld [vmem:[%s2109_s5 + $0x1a4] ss:$16 sps:$4 sm:$0xff]   ;;  %v1672_v14 = vld [vmem:[%s2109_s5 + $0x1a0] ss:$16 sps:$4 sm:$0xff]   ;;  %v1707_v38 = vld [vmem:[%s2109_s5 + $0x1ec] ss:$16 sps:$4 sm:$0xff]  }
  0x6f   : > { %1125 = vmatpush1.bf16.msra.mxu1 %v1635_v53  ;;  %1085 = vmatprep.subr.bf16.mxu0 %v1636_v54  ;;  %v1673_v15 = vld [vmem:[%s2109_s5 + $0x184] ss:$16 sps:$4 sm:$0xff]   ;;  %v1678_v19 = vld [vmem:[%s2109_s5 + $0x180] ss:$16 sps:$4 sm:$0xff]   ;;  %v1710_v39 = vld [vmem:[%s2109_s5 + $0x2ec] ss:$16 sps:$4 sm:$0xff]  }
  0x70   : > { %1126 = vmatprep.subr.bf16.mxu1 %v1638_v55  ;;  %v486_v18 = vld [vmem:[%s2097_s26] sm:$0xff]  ;;  %v1705_v41 = vld [vmem:[%s2109_s5 + $0x1e8] ss:$16 sps:$4 sm:$0xff]   ;;  %v1713_v43 = vld [vmem:[%s2109_s5 + $0x1cc] ss:$16 sps:$4 sm:$0xff]  }
  0x71   : > { %v1679_v20 = vld [vmem:[%s2109_s5 + $0x164] ss:$16 sps:$4 sm:$0xff]   ;;  %v1440_v21 = vcombine.high %v486_v18, %v486_v18  ;;  %v1684_v24 = vld [vmem:[%s2109_s5 + $0x160] ss:$16 sps:$4 sm:$0xff]   ;;  %v2184_v40 = vcombine.low %v486_v18, %v486_v18  ;;  %v1708_v42 = vld [vmem:[%s2109_s5 + $0x2e8] ss:$16 sps:$4 sm:$0xff]  }
  0x72   : > { %1086 = vmatpush1.bf16.msra.mxu0 %v1640_v56  ;;  %v1685_v25 = vld [vmem:[%s2109_s5 + $0x144] ss:$16 sps:$4 sm:$0xff]   ;;  %v1690_v28 = vld [vmem:[%s2109_s5 + $0x140] ss:$16 sps:$4 sm:$0xff]   ;;  %v1716_v44 = vld [vmem:[%s2109_s5 + $0x2cc] ss:$16 sps:$4 sm:$0xff]  }
  0x73   : > { %1127 = vmatpush1.bf16.msra.mxu1 %v1641_v57  ;;  %1087 = vmatprep.subr.bf16.mxu0 %v1642_v58  ;;  %v1691_v29 = vld [vmem:[%s2109_s5 + $0x124] ss:$16 sps:$4 sm:$0xff]   ;;  %v1696_v32 = vld [vmem:[%s2109_s5 + $0x120] ss:$16 sps:$4 sm:$0xff]   ;;  %v1711_v45 = vld [vmem:[%s2109_s5 + $0x1c8] ss:$16 sps:$4 sm:$0xff]  }
  0x74   : > { %1128 = vmatprep.subr.bf16.mxu1 %v1644_v59  ;;  %1107 = vmatprep.mubr.bf16.mxu0 %v1440_v21  ;;  %v1697_v33 = vld [vmem:[%s2109_s5 + $0x104] ss:$16 sps:$4 sm:$0xff]   ;;  %v1702_v37 = vld [vmem:[%s2109_s5 + $0x100] ss:$16 sps:$4 sm:$0xff]   ;;  %v1714_v46 = vld [vmem:[%s2109_s5 + $0x2c8] ss:$16 sps:$4 sm:$0xff]  }
  0x75   : > { %v1719_v47 = vld [vmem:[%s2109_s5 + $0x1ac] ss:$16 sps:$4 sm:$0xff]   ;;  %v1717_v49 = vld [vmem:[%s2109_s5 + $0x1a8] ss:$16 sps:$4 sm:$0xff]  }
  0x76   : > { %1088 = vmatpush1.bf16.msra.mxu0 %v1646_v60  ;;  %v1722_v48 = vld [vmem:[%s2109_s5 + $0x2ac] ss:$16 sps:$4 sm:$0xff]   ;;  %v1720_v50 = vld [vmem:[%s2109_s5 + $0x2a8] ss:$16 sps:$4 sm:$0xff]  }
  0x77   : > { %1129 = vmatpush1.bf16.msra.mxu1 %v1647_v61  ;;  %1089 = vmatprep.subr.bf16.mxu0 %v1648_v62  ;;  %v1725_v51 = vld [vmem:[%s2109_s5 + $0x18c] ss:$16 sps:$4 sm:$0xff]   ;;  %v1723_v53 = vld [vmem:[%s2109_s5 + $0x188] ss:$16 sps:$4 sm:$0xff]  }
  0x78   : > { %1130 = vmatprep.subr.bf16.mxu1 %v1650_v63  ;;  %v1728_v52 = vld [vmem:[%s2109_s5 + $0x28c] ss:$16 sps:$4 sm:$0xff]   ;;  %v1726_v54 = vld [vmem:[%s2109_s5 + $0x288] ss:$16 sps:$4 sm:$0xff]  }
  0x79   : > { %v1734_v55 = vld [vmem:[%s2109_s5 + $0x26c] ss:$16 sps:$4 sm:$0xff]   ;;  %v1729_v56 = vld [vmem:[%s2109_s5 + $0x168] ss:$16 sps:$4 sm:$0xff]  }
  0x7a   : > { %1090 = vmatpush1.bf16.msra.mxu0 %v1652_v0  ;;  %v1732_v57 = vld [vmem:[%s2109_s5 + $0x268] ss:$16 sps:$4 sm:$0xff]   ;;  %v1737_v58 = vld [vmem:[%s2109_s5 + $0x14c] ss:$16 sps:$4 sm:$0xff]  }
  0x7b   : > { %1131 = vmatpush1.bf16.msra.mxu1 %v1653_v1  ;;  %1091 = vmatprep.subr.bf16.mxu0 %v1654_v2  ;;  %v1740_v59 = vld [vmem:[%s2109_s5 + $0x24c] ss:$16 sps:$4 sm:$0xff]   ;;  %v1735_v60 = vld [vmem:[%s2109_s5 + $0x148] ss:$16 sps:$4 sm:$0xff]  }
  0x7c   : > { %1157 = vmatprep.subr.bf16.mxu1 %v1659_v3  ;;  %v1738_v61 = vld [vmem:[%s2109_s5 + $0x248] ss:$16 sps:$4 sm:$0xff]   ;;  %v1743_v62 = vld [vmem:[%s2109_s5 + $0x12c] ss:$16 sps:$4 sm:$0xff]  }
  0x7d   : > { %v1746_v63 = vld [vmem:[%s2109_s5 + $0x22c] ss:$16 sps:$4 sm:$0xff]   ;;  %v1741_v0 = vld [vmem:[%s2109_s5 + $0x128] ss:$16 sps:$4 sm:$0xff]  }
  0x7e   : > { %1149 = vmatmul.mubr.bf16.vlgmr.msra.gmra.mxu1 %v2148_v4  ;;  %1092 = vmatpush2.bf16.msra.mxu0 %v1660_v6  ;;  %v1744_v1 = vld [vmem:[%s2109_s5 + $0x228] ss:$16 sps:$4 sm:$0xff]   ;;  %v1749_v2 = vld [vmem:[%s2109_s5 + $0x10c] ss:$16 sps:$4 sm:$0xff]  }
  0x7f   : > { %1158 = vmatpush1.bf16.msra.mxu1 %v1657_v5  ;;  %1093 = vmatprep.subr.bf16.mxu0 %v1661_v7  ;;  %v1752_v3 = vld [vmem:[%s2109_s5 + $0x20c] ss:$16 sps:$4 sm:$0xff]   ;;  %v1747_v5 = vld [vmem:[%s2109_s5 + $0x108] ss:$16 sps:$4 sm:$0xff]  }
  0x80   : > { %1159 = vmatprep.subr.bf16.mxu1 %v1665_v8  ;;  %1189 = vmatprep.mubr.bf16.mxu1 %v1440_v21  ;;  %v1750_v6 = vld [vmem:[%s2109_s5 + $0x208] ss:$16 sps:$4 sm:$0xff]  }
  0x82   : > { %1094 = vmatpush2.bf16.msra.mxu0 %v1666_v10 }
  0x83   : > { %1160 = vmatpush1.bf16.msra.mxu1 %v1663_v9  ;;  %1095 = vmatprep.subr.bf16.mxu0 %v1667_v11  ;;  %v482_v11 = vld [vmem:[#allocation2 + $0x10] sm:$0xff] }
  0x84   : > { %1161 = vmatprep.subr.bf16.mxu1 %v1671_v12 }
  0x86   : > { %1096 = vmatpush2.bf16.msra.mxu0 %v1672_v14  ;;  %v483_v14 = vld [vmem:[#allocation2] sm:$0xff] }
  0x87   : > { %1162 = vmatpush1.bf16.msra.mxu1 %v1669_v13  ;;  %1097 = vmatprep.subr.bf16.mxu0 %v1673_v15 }
  0x88   : > { %1163 = vmatprep.subr.bf16.mxu1 %v1677_v16 }
  0x8a   : > { %1098 = vmatpush2.bf16.msra.mxu0 %v1678_v19 }
  0x8b   : > { %1164 = vmatpush1.bf16.msra.mxu1 %v1675_v17  ;;  %1099 = vmatprep.subr.bf16.mxu0 %v1679_v20 }
  0x8c   : > { %1165 = vmatprep.subr.bf16.mxu1 %v1683_v22  ;;  %v484_v22 = vld [vmem:[#allocation2 + $0x18] sm:$0xff] }
  0x8e   : > { %1100 = vmatpush2.bf16.msra.mxu0 %v1684_v24 }
  0x8f   : > { %1166 = vmatpush1.bf16.msra.mxu1 %v1681_v23  ;;  %1101 = vmatprep.subr.bf16.mxu0 %v1685_v25  ;;  %v485_v25 = vld [vmem:[#allocation2 + $0x8] sm:$0xff] }
  0x90   : > { %1167 = vmatprep.subr.bf16.mxu1 %v1689_v26 }
  0x92   : > { %1102 = vmatpush2.bf16.msra.mxu0 %v1690_v28 }
  0x93   : > { %1168 = vmatpush1.bf16.msra.mxu1 %v1687_v27  ;;  %1103 = vmatprep.subr.bf16.mxu0 %v1691_v29 }
  0x94   : > { %1169 = vmatprep.subr.bf16.mxu1 %v1695_v30 }
  0x96   : > { %1104 = vmatpush2.bf16.msra.mxu0 %v1696_v32 }
  0x97   : > { %1170 = vmatpush1.bf16.msra.mxu1 %v1693_v31  ;;  %1105 = vmatprep.subr.bf16.mxu0 %v1697_v33 }
  0x98   : > { %1171 = vmatprep.subr.bf16.mxu1 %v1701_v34 }
  0x9a   : > { %1106 = vmatpush2.bf16.msra.mxu0 %v1702_v37 }
  0x9b   : > { %1172 = vmatpush1.bf16.msra.mxu1 %v1699_v36  ;;  %1198 = vmatprep.subr.bf16.mxu0 %v1710_v39 }
  0x9c   : > { %1173 = vmatprep.subr.bf16.mxu1 %v1707_v38 }
  0x9d   : > { %1108 = vmatmul.mubr.bf16.vlgmr.msra.gmra.mxu0 %v2184_v40 }
  0x9e   : > { %1199 = vmatpush1.bf16.msra.mxu0 %v1708_v42  ;;  %1230 = vmatprep.mubr.bf16.mxu0 %v1810_v35  ;;  %v1731_v35 = vld [vmem:[%s2109_s5 + $0x16c] ss:$16 sps:$4 sm:$0xff]  }
  0x9f   : > { %1174 = vmatpush2.bf16.msra.mxu1 %v1705_v41  ;;  %1200 = vmatprep.subr.bf16.mxu0 %v1716_v44 }
  0xa0   : > { %1175 = vmatprep.subr.bf16.mxu1 %v1713_v43 }
  0xa2   : > { %1201 = vmatpush1.bf16.msra.mxu0 %v1714_v46 }
  0xa3   : > { %1176 = vmatpush2.bf16.msra.mxu1 %v1711_v45  ;;  %1202 = vmatprep.subr.bf16.mxu0 %v1722_v48 }
  0xa4   : > { %1177 = vmatprep.subr.bf16.mxu1 %v1719_v47 }
  0xa6   : > { %1203 = vmatpush1.bf16.msra.mxu0 %v1720_v50 }
  0xa7   : > { %1178 = vmatpush2.bf16.msra.mxu1 %v1717_v49  ;;  %1204 = vmatprep.subr.bf16.mxu0 %v1728_v52 }
  0xa8   : > { %1179 = vmatprep.subr.bf16.mxu1 %v1725_v51 }
  0xaa   : > { %1205 = vmatpush1.bf16.msra.mxu0 %v1726_v54 }
  0xab   : > { %1180 = vmatpush2.bf16.msra.mxu1 %v1723_v53  ;;  %1206 = vmatprep.subr.bf16.mxu0 %v1734_v55 }
  0xac   : > { %1181 = vmatprep.subr.bf16.mxu1 %v1731_v35 }
  0xae   : > { %1207 = vmatpush1.bf16.msra.mxu0 %v1732_v57 }
  0xaf   : > { %1182 = vmatpush2.bf16.msra.mxu1 %v1729_v56  ;;  %1208 = vmatprep.subr.bf16.mxu0 %v1740_v59 }
  0xb0   : > { %1183 = vmatprep.subr.bf16.mxu1 %v1737_v58 }
  0xb2   : > { %1209 = vmatpush1.bf16.msra.mxu0 %v1738_v61 }
  0xb3   : > { %1184 = vmatpush2.bf16.msra.mxu1 %v1735_v60  ;;  %1210 = vmatprep.subr.bf16.mxu0 %v1746_v63 }
  0xb4   : > { %1185 = vmatprep.subr.bf16.mxu1 %v1743_v62 }
  0xb6   : > { %1211 = vmatpush1.bf16.msra.mxu0 %v1744_v1 }
  0xb7   : > { %1186 = vmatpush2.bf16.msra.mxu1 %v1741_v0  ;;  %1212 = vmatprep.subr.bf16.mxu0 %v1752_v3 }
  0xb8   : > { %1187 = vmatprep.subr.bf16.mxu1 %v1749_v2 }
  0xba   : > { %1213 = vmatpush1.bf16.msra.mxu0 %v1750_v6 }
  0xbb   : > { %1188 = vmatpush2.bf16.msra.mxu1 %v1747_v5 }
  0xbd   : > { %1231 = vmatmul.mubr.bf16.vlgmr.msra.gmra.mxu0 %v2148_v4 }
  0xbe   : > { %1190 = vmatmul.mubr.bf16.vlgmr.msra.gmra.mxu1 %v2184_v40 }
 0x13e   : > { %v1150_v7 = vpop.f32.mrf.mxu1 }
 0x140   : > { %v1152_v8 = vpop.f32.mrf.mxu1 }
 0x142   : > { %v1154_v9 = vpop.f32.mrf.mxu1 }
 0x144   : > { %v1155_v10 = vpop.f32.mrf.mxu1 }
 0x15d   : > { %v1109_v12 = vpop.f32.mrf.mxu0 }
 0x15e   : > { %v1151_v13 = vadd.f32 %v1150_v7, %v1109_v12 }
 0x15f   : > { %v1111_v15 = vpop.f32.mrf.mxu0 }
 0x160   : > { %v1239_v16 = vadd.f32 %v1151_v13, %v482_v11  ;;  %v1153_v17 = vadd.f32 %v1152_v8, %v1111_v15 }
 0x161   : > { %v1113_v18 = vpop.f32.mrf.mxu0 }
 0x162   : > { %1243 = vst [vmem:[#allocation2 + $0x10] sm:$0xff] %v1239_v16  ;;  %v1240_v19 = vadd.f32 %v1153_v17, %v483_v14 }
 0x163   : > { %v1114_v20 = vpop.f32.mrf.mxu0 }
 0x164   : > { %1244 = vst [vmem:[#allocation2] sm:$0xff] %v1240_v19 }
 0x17d   : > { %v1232_v23 = vpop.f32.mrf.mxu0 }
 0x17e   : > { %v1191_v21 = vpop.f32.mrf.mxu1 }
 0x17f   : > { %v1233_v4 = vadd.f32 %v1232_v23, %v1191_v21  ;;  %v1234_v26 = vpop.f32.mrf.mxu0 }
 0x180   : > { %v1193_v24 = vpop.f32.mrf.mxu1 }
 0x181   : > { %v1241_v27 = vadd.f32 %v1233_v4, %v484_v22  ;;  %v1235_v28 = vadd.f32 %v1234_v26, %v1193_v24  ;;  %v1236_v30 = vpop.f32.mrf.mxu0  ;;  %1250 = sbr.rel (%p1538_p13) target bundleno = 405 (0x195), region = 63 }
 0x182   : > { %v1195_v29 = vpop.f32.mrf.mxu1 }
 0x183   : > { %1245 = vst [vmem:[#allocation2 + $0x18] sm:$0xff] %v1241_v27  ;;  %v1242_v31 = vadd.f32 %v1235_v28, %v485_v25  ;;  %v1237_v33 = vpop.f32.mrf.mxu0 }
 0x184   : > { %v1196_v32 = vpop.f32.mrf.mxu1 }
 0x185   : > { %1246 = vst [vmem:[#allocation2 + $0x8] sm:$0xff] %v1242_v31 }
 0x186   : > { %v1257_v34 = vlaneseq  ;;  %v1255_v37 = vld [vmem:[%s461_s12] sm:$0xf]  ;;  %v1251_v38 = vld [vmem:[#allocation2 + $0x10] sm:$0xff] }
 0x187   : > { %v1252_v43 = vld [vmem:[#allocation2] sm:$0xff] }
 0x188   : > { %v1258_v36 = vshrl.u32 %v1257_v34, 7 }
 0x18a   : > { %v1259_v39 = vsub.s32 0, %v1258_v36  ;;  %v1263_v40 = vsub.s32 1, %v1258_v36  ;;  %v1267_v41 = vsub.s32 2, %v1258_v36  ;;  %v1271_v42 = vsub.s32 3, %v1258_v36  ;;  %v1253_v44 = vld [vmem:[#allocation2 + $0x18] sm:$0xff] }
 0x18c   : > { %v1254_v45 = vld [vmem:[#allocation2 + $0x8] sm:$0xff]  ;;  %v1260_v46 = vrot.slane %v1255_v37, %v1259_v39  ;;  %v1264_v47 = vrot.slane %v1255_v37, %v1263_v40  ;;  %v1268_v48 = vrot.slane %v1255_v37, %v1267_v41  ;;  %v1272_v49 = vrot.slane %v1255_v37, %v1271_v42 }
 0x18e   : > { %v1277_v50 = vadd.f32 %v1260_v46, %v1251_v38  ;;  %v1278_v51 = vadd.f32 %v1264_v47, %v1252_v43  ;;  %v1279_v52 = vadd.f32 %v1268_v48, %v1253_v44  ;;  %v1280_v53 = vadd.f32 %v1272_v49, %v1254_v45 }
 0x190   : > { %v1281_v54 = vmax.f32 %v1277_v50, 0.0  ;;  %v1282_v35 = vmax.f32 %v1278_v51, 0.0  ;;  %v1283_v55 = vmax.f32 %v1279_v52, 0.0  ;;  %v1284_v56 = vmax.f32 %v1280_v53, 0.0 }
 0x192   : > { %v1544_v57 = vpack.c.bf16 %v1282_v35, %v1281_v54  ;;  %v1545_v58 = vpack.c.bf16 %v1284_v56, %v1283_v55 }
 0x194   : > { %1301 = vst [vmem:[%s2107_s4] sm:$0xff] %v1544_v57  ;;  %1302 = vst [vmem:[%s2107_s4 + $0x8] sm:$0xff] %v1545_v58 }
 0x195 PF: > { %s13_s18 = sadd.s32 1, %s1807_s18   ;;  %s2253_s12 = smov %s1787_s13 }
 0x196   : > { %p10_p0 = scmp.ge.s32.totalorder %s13_s18, 14   ;;  %s2254_s13 = smov %s1882_s25 }
 0x197   : > { %s2255_s14 = smov %s1799_s16  ;;  %s2256_s15 = smov %s1803_s17 }
 0x198   : > { %s2257_s16 = smov %s2260_s19  ;;  %s2258_s17 = smov %s2264_s20 }
 0x199   :  { %12 = sbr.rel (!%p10_p0) target bundleno = 4 (0x4), region = 104 }

// kernel: brixcolornet_forward.8
= control target key start
LH: loop header
LB: loop body
LE: loop exit
PB: predicated region body
PF: predicated region fallthrough
CT: control target
= control target key end

     0   :  { %s2119_s0 = inlined_call_operand.vmem [shape: bf16[32,9216], index: 0, kind: input, shape index: {}]   ;;  %s2120_s1 = inlined_call_operand.vmem [shape: bf16[9216,256], index: 1, kind: input, shape index: {}]   ;;  %s2121_s2 = inlined_call_operand.vmem [shape: f32[1,256], index: 2, kind: input, shape index: {}]   ;;  %s2122_s3 = inlined_call_operand.vmem [shape: bf16[32,256], index: 3, kind: input, shape index: {}]   ;;  %s2123_s4 = inlined_call_operand.vmem [shape: bf16[32,256], index: 4, kind: output, shape index: {}]  }
   0x1   :  { %2126 = sst [smem:[#allocation9_spill]] %s2119_s0 }
   0x2   :  { %s1737_s15 = smov 0   ;;  %s1739_s16 = smov 0  }
   0x3   :  { %s1741_s17 = smov 0   ;;  %s1743_s18 = smov 0  }
   0x4   :  { %s1745_s19 = smov 0   ;;  %s1747_s20 = smov 0  }
   0x5   :  { %s1749_s21 = smov 0   ;;  %s1751_s22 = smov 0  }
   0x6   :  { %s1753_s23 = smov 0   ;;  %s1755_s24 = smov 0  }
   0x7   :  { %s1757_s25 = smov 0  }
   0x8 LB: > { %s1339_s26 = sadd.s32 4294967295, %s1709_s25   ;;  %s26_s27 = sadd.s32 1, %s1701_s23  ;;  %s1709_s25 = sphi %s1757_s25, %s14_s25   ;;  %s1705_s24 = sphi %s1755_s24, %s2145_s24   ;;  %s1701_s23 = sphi %s1753_s23, %s2144_s23   ;;  %s1697_s22 = sphi %s1751_s22, %s2143_s22   ;;  %s1693_s21 = sphi %s1749_s21, %s2142_s21   ;;  %s1689_s20 = sphi %s1747_s20, %s2141_s20   ;;  %s1685_s19 = sphi %s1745_s19, %s2140_s19   ;;  %s1681_s18 = sphi %s1743_s18, %s2139_s18   ;;  %s1677_s17 = sphi %s1741_s17, %s2138_s17   ;;  %s1673_s16 = sphi %s1739_s16, %s2137_s16   ;;  %s1669_s15 = sphi %s1737_s15, %s2136_s15  }
   0x9   : > { %p27_p0 = scmp.ge.s32.totalorder %s26_s27, 18  ;;  %s29_s28 = sadd.s32 1, %s1705_s24 }
   0xa   : > { %s42_s29 = sadd.s32 1, %s1689_s20  ;;  %p49_p1 = scmp.ne.s32.totalorder %s1689_s20, %s1685_s19 }
   0xb   : > { %s2147_s27 = smov (%p27_p0, %s26_s27), 0  ;;  %s2149_s28 = smov (!%p27_p0, %s29_s28), %s1705_s24 }
   0xc   : > { %2127 = sst [smem:[#allocation7_spill]] %s2147_s27  ;;  %s38_s30 = ssub.s32 %s1701_s23, %s2147_s27 }
   0xd   : > { %p50_p2 = scmp.eq.s32.totalorder %s1709_s25, 0  ;;  %p31_p3 = scmp.ge.s32.totalorder %s2149_s28, 2 }
   0xe   : > { %p40_p4 = scmp.eq.s32.totalorder %s38_s30, 0  ;;  %s70_s6 = sadd.s32 1, %s1681_s18 }
   0xf   : > { %p1806_p5 = por %p50_p2, %p49_p1  ;;  %s2151_s28 = smov (%p31_p3, %s2149_s28), 0 }
  0x10   : > { %2129 = sst [smem:[#allocation8_spill]] %s2151_s28  ;;  %s66_s8 = ssub.s32 %s1705_s24, %s2151_s28 }
  0x11   : > { %s1814_s7 = scalar_select %p40_p4, %s1689_s20, %s42_s29  }
  0x12   : > { %p77_p6 = scmp.ne.s32.totalorder %s1681_s18, %s1677_s17  ;;  %s67_s9 = sor.u32 %s66_s8, %s38_s30 }
  0x13   : > { %p122_p7 = scmp.eq.s32.totalorder %s66_s8, 0  ;;  %p68_p8 = scmp.eq.s32.totalorder %s67_s9, 0 }
  0x14   : > { %p1822_p9 = por %p77_p6, %p50_p2  ;;  %s124_s11 = sadd.s32 1, %s1673_s16 }
  0x15   : > { %p131_p10 = scmp.ne.s32.totalorder %s1673_s16, %s1669_s15  ;;  %p163_p12 = scmp.eq.s32.totalorder %s1339_s26, 35 }
  0x16   : > { %s1830_s12 = scalar_select %p68_p8, %s1681_s18, %s70_s6  }
  0x17   : > { %s1833_s13 = scalar_select %p122_p7, %s1673_s16, %s124_s11  }
  0x18   : > { %p1837_p11 = por %p131_p10, %p50_p2  ;;  %p1841_p13 = por %p163_p12, %p131_p10 }
  0x19   : > { %p1342_p0 = scmp.ge.s32.totalorder %s1709_s25, 36 }
  0x1b   : > { %185 = sbr.rel (%p1342_p0) target bundleno = 100 (0x64), region = 16 }
  0x20   : > { %188 = sbr.rel (!%p1806_p5) target bundleno = 46 (0x2e), region = 20  ;;  %s190_s30 = sand.u32 (%p1806_p5), 1, %s1689_s20  }
  0x21   : > { %s1408_s6 = sshll.u32 (%p1806_p5), %s1701_s23, 4  ;;  %s1343_s8 = sshll.u32 (%p1806_p5), %s190_s30, 6 }
  0x22   : > { %s2133_s0 = sld [smem:[#allocation9_spill]] (%p1806_p5)  ;;  %s192_s26 = scalar_lea.vmem (%p1806_p5), [#allocation3], %s1343_s8 }
  0x28   : > { %s198_s28 = scalar_lea.vmem %s2133_s0, %s1408_s6 }
  0x29   : > { %v211_v0 = vld [vmem:[%s198_s28] sm:$0xff]  ;;  %v213_v1 = vld [vmem:[%s198_s28 + $0x8] sm:$0xff] }
  0x2a   : > { %v215_v2 = vld [vmem:[%s198_s28 + $0x120] sm:$0xff]  ;;  %212 = vst [vmem:[%s192_s26] sm:$0xff] %v211_v0  ;;  %214 = vst [vmem:[%s192_s26 + $0x8] sm:$0xff] %v213_v1  ;;  %v217_v3 = vld [vmem:[%s198_s28 + $0x128] sm:$0xff] }
  0x2b   : > { %216 = vst [vmem:[%s192_s26 + $0x10] sm:$0xff] %v215_v2  ;;  %v219_v4 = vld [vmem:[%s198_s28 + $0x240] sm:$0xff]  ;;  %v221_v5 = vld [vmem:[%s198_s28 + $0x248] sm:$0xff]  ;;  %218 = vst [vmem:[%s192_s26 + $0x18] sm:$0xff] %v217_v3 }
  0x2c   : > { %220 = vst [vmem:[%s192_s26 + $0x20] sm:$0xff] %v219_v4  ;;  %222 = vst [vmem:[%s192_s26 + $0x28] sm:$0xff] %v221_v5  ;;  %v223_v6 = vld [vmem:[%s198_s28 + $0x360] sm:$0xff]  ;;  %v225_v7 = vld [vmem:[%s198_s28 + $0x368] sm:$0xff] }
  0x2d   : > { %224 = vst [vmem:[%s192_s26 + $0x30] sm:$0xff] %v223_v6  ;;  %226 = vst [vmem:[%s192_s26 + $0x38] sm:$0xff] %v225_v7 }
  0x2e PF: > { %232 = sbr.rel (!%p1822_p9) target bundleno = 94 (0x5e), region = 43  ;;  %s234_s5 = sand.u32 (%p1822_p9), 1, %s1681_s18  }
  0x2f   : > { %s1409_s30 = sshll.u32 (%p1822_p9), %s1701_s23, 7  ;;  %s1346_s6 = sshll.u32 (%p1822_p9), %s234_s5, 8 }
  0x30   : > { %s239_s8 = sadd.s32 (%p1822_p9), %s1705_s24, %s1409_s30  ;;  %s1866_s28 = scalar_lea.vmem (%p1822_p9), [#allocation4], %s1346_s6 }
  0x31   : > { %s1349_s9 = sshll.u32 (%p1822_p9), %s239_s8, 2 }
  0x32   : > { %s1861_s27 = scalar_lea.vmem (%p1822_p9), %s2120_s1, %s1349_s9 }
  0x33   : > { %v258_v8 = vld [vmem:[%s1861_s27] sm:$0xf]  ;;  %v260_v9 = vld [vmem:[%s1861_s27 + $0x8] sm:$0xf]  ;;  %v262_v10 = vld [vmem:[%s1861_s27 + $0x10] sm:$0xf] }
  0x34   : > { %259 = vst [vmem:[%s1866_s28] sm:$0xf] %v258_v8  ;;  %261 = vst [vmem:[%s1866_s28 + $0x4] sm:$0xf] %v260_v9  ;;  %v264_v11 = vld [vmem:[%s1861_s27 + $0x18] sm:$0xf] }
  0x35   : > { %263 = vst [vmem:[%s1866_s28 + $0x8] sm:$0xf] %v262_v10  ;;  %v266_v12 = vld [vmem:[%s1861_s27 + $0x20] sm:$0xf]  ;;  %v268_v13 = vld [vmem:[%s1861_s27 + $0x28] sm:$0xf] }
  0x36   : > { %265 = vst [vmem:[%s1866_s28 + $0xc] sm:$0xf] %v264_v11  ;;  %267 = vst [vmem:[%s1866_s28 + $0x10] sm:$0xf] %v266_v12  ;;  %v270_v14 = vld [vmem:[%s1861_s27 + $0x30] sm:$0xf] }
  0x37   : > { %269 = vst [vmem:[%s1866_s28 + $0x14] sm:$0xf] %v268_v13  ;;  %v272_v15 = vld [vmem:[%s1861_s27 + $0x38] sm:$0xf]  ;;  %v274_v16 = vld [vmem:[%s1861_s27 + $0x40] sm:$0xf] }
  0x38   : > { %271 = vst [vmem:[%s1866_s28 + $0x18] sm:$0xf] %v270_v14  ;;  %273 = vst [vmem:[%s1866_s28 + $0x1c] sm:$0xf] %v272_v15  ;;  %v276_v17 = vld [vmem:[%s1861_s27 + $0x48] sm:$0xf] }
  0x39   : > { %275 = vst [vmem:[%s1866_s28 + $0x20] sm:$0xf] %v274_v16  ;;  %v278_v18 = vld [vmem:[%s1861_s27 + $0x50] sm:$0xf]  ;;  %v280_v19 = vld [vmem:[%s1861_s27 + $0x58] sm:$0xf] }
  0x3a   : > { %277 = vst [vmem:[%s1866_s28 + $0x24] sm:$0xf] %v276_v17  ;;  %279 = vst [vmem:[%s1866_s28 + $0x28] sm:$0xf] %v278_v18  ;;  %v282_v20 = vld [vmem:[%s1861_s27 + $0x60] sm:$0xf] }
  0x3b   : > { %281 = vst [vmem:[%s1866_s28 + $0x2c] sm:$0xf] %v280_v19  ;;  %v284_v21 = vld [vmem:[%s1861_s27 + $0x68] sm:$0xf]  ;;  %v286_v22 = vld [vmem:[%s1861_s27 + $0x70] sm:$0xf] }
  0x3c   : > { %283 = vst [vmem:[%s1866_s28 + $0x30] sm:$0xf] %v282_v20  ;;  %285 = vst [vmem:[%s1866_s28 + $0x34] sm:$0xf] %v284_v21  ;;  %v288_v23 = vld [vmem:[%s1861_s27 + $0x78] sm:$0xf] }
  0x3d   : > { %287 = vst [vmem:[%s1866_s28 + $0x38] sm:$0xf] %v286_v22  ;;  %v290_v24 = vld [vmem:[%s1861_s27 + $0x80] sm:$0xf]  ;;  %v292_v25 = vld [vmem:[%s1861_s27 + $0x88] sm:$0xf] }
  0x3e   : > { %289 = vst [vmem:[%s1866_s28 + $0x3c] sm:$0xf] %v288_v23  ;;  %291 = vst [vmem:[%s1866_s28 + $0x40] sm:$0xf] %v290_v24  ;;  %v294_v26 = vld [vmem:[%s1861_s27 + $0x90] sm:$0xf] }
  0x3f   : > { %293 = vst [vmem:[%s1866_s28 + $0x44] sm:$0xf] %v292_v25  ;;  %v296_v27 = vld [vmem:[%s1861_s27 + $0x98] sm:$0xf]  ;;  %v298_v28 = vld [vmem:[%s1861_s27 + $0xa0] sm:$0xf] }
  0x40   : > { %295 = vst [vmem:[%s1866_s28 + $0x48] sm:$0xf] %v294_v26  ;;  %297 = vst [vmem:[%s1866_s28 + $0x4c] sm:$0xf] %v296_v27  ;;  %v300_v29 = vld [vmem:[%s1861_s27 + $0xa8] sm:$0xf] }
  0x41   : > { %299 = vst [vmem:[%s1866_s28 + $0x50] sm:$0xf] %v298_v28  ;;  %v302_v30 = vld [vmem:[%s1861_s27 + $0xb0] sm:$0xf]  ;;  %v304_v31 = vld [vmem:[%s1861_s27 + $0xb8] sm:$0xf] }
  0x42   : > { %301 = vst [vmem:[%s1866_s28 + $0x54] sm:$0xf] %v300_v29  ;;  %303 = vst [vmem:[%s1866_s28 + $0x58] sm:$0xf] %v302_v30  ;;  %v306_v32 = vld [vmem:[%s1861_s27 + $0xc0] sm:$0xf] }
  0x43   : > { %305 = vst [vmem:[%s1866_s28 + $0x5c] sm:$0xf] %v304_v31  ;;  %v308_v33 = vld [vmem:[%s1861_s27 + $0xc8] sm:$0xf]  ;;  %v310_v34 = vld [vmem:[%s1861_s27 + $0xd0] sm:$0xf] }
  0x44   : > { %307 = vst [vmem:[%s1866_s28 + $0x60] sm:$0xf] %v306_v32  ;;  %309 = vst [vmem:[%s1866_s28 + $0x64] sm:$0xf] %v308_v33  ;;  %v312_v35 = vld [vmem:[%s1861_s27 + $0xd8] sm:$0xf] }
  0x45   : > { %311 = vst [vmem:[%s1866_s28 + $0x68] sm:$0xf] %v310_v34  ;;  %v314_v36 = vld [vmem:[%s1861_s27 + $0xe0] sm:$0xf]  ;;  %v316_v37 = vld [vmem:[%s1861_s27 + $0xe8] sm:$0xf] }
  0x46   : > { %313 = vst [vmem:[%s1866_s28 + $0x6c] sm:$0xf] %v312_v35  ;;  %315 = vst [vmem:[%s1866_s28 + $0x70] sm:$0xf] %v314_v36  ;;  %v318_v38 = vld [vmem:[%s1861_s27 + $0xf0] sm:$0xf] }
  0x47   : > { %317 = vst [vmem:[%s1866_s28 + $0x74] sm:$0xf] %v316_v37  ;;  %v320_v39 = vld [vmem:[%s1861_s27 + $0xf8] sm:$0xf]  ;;  %v322_v40 = vld [vmem:[%s1861_s27 + $0x100] sm:$0xf] }
  0x48   : > { %319 = vst [vmem:[%s1866_s28 + $0x78] sm:$0xf] %v318_v38  ;;  %321 = vst [vmem:[%s1866_s28 + $0x7c] sm:$0xf] %v320_v39  ;;  %v324_v41 = vld [vmem:[%s1861_s27 + $0x108] sm:$0xf] }
  0x49   : > { %323 = vst [vmem:[%s1866_s28 + $0x80] sm:$0xf] %v322_v40  ;;  %v326_v42 = vld [vmem:[%s1861_s27 + $0x110] sm:$0xf]  ;;  %v328_v43 = vld [vmem:[%s1861_s27 + $0x118] sm:$0xf] }
  0x4a   : > { %325 = vst [vmem:[%s1866_s28 + $0x84] sm:$0xf] %v324_v41  ;;  %327 = vst [vmem:[%s1866_s28 + $0x88] sm:$0xf] %v326_v42  ;;  %v330_v44 = vld [vmem:[%s1861_s27 + $0x120] sm:$0xf] }
  0x4b   : > { %329 = vst [vmem:[%s1866_s28 + $0x8c] sm:$0xf] %v328_v43  ;;  %v332_v45 = vld [vmem:[%s1861_s27 + $0x128] sm:$0xf]  ;;  %v334_v46 = vld [vmem:[%s1861_s27 + $0x130] sm:$0xf] }
  0x4c   : > { %331 = vst [vmem:[%s1866_s28 + $0x90] sm:$0xf] %v330_v44  ;;  %333 = vst [vmem:[%s1866_s28 + $0x94] sm:$0xf] %v332_v45  ;;  %v336_v47 = vld [vmem:[%s1861_s27 + $0x138] sm:$0xf] }
  0x4d   : > { %335 = vst [vmem:[%s1866_s28 + $0x98] sm:$0xf] %v334_v46  ;;  %v338_v48 = vld [vmem:[%s1861_s27 + $0x140] sm:$0xf]  ;;  %v340_v49 = vld [vmem:[%s1861_s27 + $0x148] sm:$0xf] }
  0x4e   : > { %337 = vst [vmem:[%s1866_s28 + $0x9c] sm:$0xf] %v336_v47  ;;  %339 = vst [vmem:[%s1866_s28 + $0xa0] sm:$0xf] %v338_v48  ;;  %v342_v50 = vld [vmem:[%s1861_s27 + $0x150] sm:$0xf] }
  0x4f   : > { %341 = vst [vmem:[%s1866_s28 + $0xa4] sm:$0xf] %v340_v49  ;;  %v344_v51 = vld [vmem:[%s1861_s27 + $0x158] sm:$0xf]  ;;  %v346_v52 = vld [vmem:[%s1861_s27 + $0x160] sm:$0xf] }
  0x50   : > { %343 = vst [vmem:[%s1866_s28 + $0xa8] sm:$0xf] %v342_v50  ;;  %345 = vst [vmem:[%s1866_s28 + $0xac] sm:$0xf] %v344_v51  ;;  %v348_v53 = vld [vmem:[%s1861_s27 + $0x168] sm:$0xf] }
  0x51   : > { %347 = vst [vmem:[%s1866_s28 + $0xb0] sm:$0xf] %v346_v52  ;;  %v350_v54 = vld [vmem:[%s1861_s27 + $0x170] sm:$0xf]  ;;  %v352_v55 = vld [vmem:[%s1861_s27 + $0x178] sm:$0xf] }
  0x52   : > { %349 = vst [vmem:[%s1866_s28 + $0xb4] sm:$0xf] %v348_v53  ;;  %351 = vst [vmem:[%s1866_s28 + $0xb8] sm:$0xf] %v350_v54  ;;  %v354_v56 = vld [vmem:[%s1861_s27 + $0x180] sm:$0xf] }
  0x53   : > { %353 = vst [vmem:[%s1866_s28 + $0xbc] sm:$0xf] %v352_v55  ;;  %v356_v57 = vld [vmem:[%s1861_s27 + $0x188] sm:$0xf]  ;;  %v358_v58 = vld [vmem:[%s1861_s27 + $0x190] sm:$0xf] }
  0x54   : > { %355 = vst [vmem:[%s1866_s28 + $0xc0] sm:$0xf] %v354_v56  ;;  %357 = vst [vmem:[%s1866_s28 + $0xc4] sm:$0xf] %v356_v57  ;;  %v360_v59 = vld [vmem:[%s1861_s27 + $0x198] sm:$0xf] }
  0x55   : > { %359 = vst [vmem:[%s1866_s28 + $0xc8] sm:$0xf] %v358_v58  ;;  %v362_v60 = vld [vmem:[%s1861_s27 + $0x1a0] sm:$0xf]  ;;  %v364_v61 = vld [vmem:[%s1861_s27 + $0x1a8] sm:$0xf] }
  0x56   : > { %361 = vst [vmem:[%s1866_s28 + $0xcc] sm:$0xf] %v360_v59  ;;  %363 = vst [vmem:[%s1866_s28 + $0xd0] sm:$0xf] %v362_v60  ;;  %v366_v62 = vld [vmem:[%s1861_s27 + $0x1b0] sm:$0xf] }
  0x57   : > { %365 = vst [vmem:[%s1866_s28 + $0xd4] sm:$0xf] %v364_v61  ;;  %v368_v63 = vld [vmem:[%s1861_s27 + $0x1b8] sm:$0xf]  ;;  %v370_v0 = vld [vmem:[%s1861_s27 + $0x1c0] sm:$0xf] }
  0x58   : > { %367 = vst [vmem:[%s1866_s28 + $0xd8] sm:$0xf] %v366_v62  ;;  %369 = vst [vmem:[%s1866_s28 + $0xdc] sm:$0xf] %v368_v63  ;;  %v372_v1 = vld [vmem:[%s1861_s27 + $0x1c8] sm:$0xf] }
  0x59   : > { %371 = vst [vmem:[%s1866_s28 + $0xe0] sm:$0xf] %v370_v0  ;;  %v374_v2 = vld [vmem:[%s1861_s27 + $0x1d0] sm:$0xf]  ;;  %v376_v3 = vld [vmem:[%s1861_s27 + $0x1d8] sm:$0xf] }
  0x5a   : > { %373 = vst [vmem:[%s1866_s28 + $0xe4] sm:$0xf] %v372_v1  ;;  %375 = vst [vmem:[%s1866_s28 + $0xe8] sm:$0xf] %v374_v2  ;;  %v378_v4 = vld [vmem:[%s1861_s27 + $0x1e0] sm:$0xf] }
  0x5b   : > { %377 = vst [vmem:[%s1866_s28 + $0xec] sm:$0xf] %v376_v3  ;;  %v380_v5 = vld [vmem:[%s1861_s27 + $0x1e8] sm:$0xf]  ;;  %v382_v6 = vld [vmem:[%s1861_s27 + $0x1f0] sm:$0xf] }
  0x5c   : > { %379 = vst [vmem:[%s1866_s28 + $0xf0] sm:$0xf] %v378_v4  ;;  %381 = vst [vmem:[%s1866_s28 + $0xf4] sm:$0xf] %v380_v5  ;;  %v384_v7 = vld [vmem:[%s1861_s27 + $0x1f8] sm:$0xf] }
  0x5d   : > { %383 = vst [vmem:[%s1866_s28 + $0xf8] sm:$0xf] %v382_v6  ;;  %385 = vst [vmem:[%s1866_s28 + $0xfc] sm:$0xf] %v384_v7 }
  0x5e PF: > { %543 = sbr.rel (!%p1837_p11) target bundleno = 100 (0x64), region = 88  ;;  %s545_s0 = sand.u32 (%p1837_p11), 1, %s1673_s16  }
  0x5f   : > { %s1351_s10 = sshll.u32 (%p1837_p11), %s1705_s24, 2  ;;  %s1350_s26 = sshll.u32 (%p1837_p11), %s545_s0, 4 }
  0x60   : > { %s552_s6 = scalar_lea.vmem (%p1837_p11), %s2122_s3, %s1351_s10  ;;  %s547_s8 = scalar_lea.vmem (%p1837_p11), [#allocation5], %s1350_s26 }
  0x61   : > { %v569_v8 = vld [vmem:[%s552_s6] sm:$0xf] (%p1837_p11)  ;;  %v571_v9 = vld [vmem:[%s552_s6 + $0x8] sm:$0xf] (%p1837_p11)  ;;  %v573_v10 = vld [vmem:[%s552_s6 + $0x10] sm:$0xf] (%p1837_p11) }
  0x62   : > { %570 = vst [vmem:[%s547_s8] sm:$0xf] (%p1837_p11), %v569_v8  ;;  %572 = vst [vmem:[%s547_s8 + $0x4] sm:$0xf] (%p1837_p11), %v571_v9  ;;  %v575_v11 = vld [vmem:[%s552_s6 + $0x18] sm:$0xf] (%p1837_p11) }
  0x63   : > { %574 = vst [vmem:[%s547_s8 + $0x8] sm:$0xf] %v573_v10  ;;  %576 = vst [vmem:[%s547_s8 + $0xc] sm:$0xf] %v575_v11 }
  0x64 PF: > { %p1352_p1 = scmp.ge.s32.totalorder %s1709_s25, 1  ;;  %p607_p2 = scmp.lt.s32.totalorder %s1709_s25, 37 }
  0x66   : > { %p608_p3 = pnand %p1352_p1, %p607_p2 }
  0x67   : > { %s614_s27 = sand.u32 (!%p608_p3), 1, %s1685_s19   ;;  %s621_s14 = sand.u32 (!%p608_p3), 1, %s1677_s17  }
  0x68   : > { %611 = sbr.rel (%p608_p3) target bundleno = 393 (0x189), region = 129  ;;  %s1353_s9 = sshll.u32 (!%p608_p3), %s614_s27, 6 }
  0x69   : > { %s1354_s11 = sshll.u32 (!%p608_p3), %s621_s14, 8  ;;  %s628_s28 = sand.u32 (!%p608_p3), 1, %s1669_s15  }
  0x6a   : > { %p666_p4 = scmp.lt.s32.totalorder (!%p608_p3), %s1697_s22, 1  ;;  %s2006_s0 = sshll.u32 (!%p608_p3), %s628_s28, 4 }
  0x6b   : > { %s2015_s6 = scalar_lea.vmem (!%p608_p3), [#allocation3], %s1353_s9  ;;  %s2017_s8 = scalar_lea.vmem (!%p608_p3), [#allocation4], %s1354_s11 }
  0x6c   : > { %s630_s17 = scalar_lea.vmem (!%p608_p3), [#allocation5], %s2006_s0  ;;  %s2021_s19 = scalar_lea.vmem (!%p608_p3), [#allocation6], %s2006_s0 }
  0x6d   : > { %s2009_s10 = scalar_select %p666_p4, %s1697_s22, 1 }
  0x6e   : > { %p1357_p5 = scmp.ne.s32.totalorder %s1693_s21, 0 }
  0x6f   : > { %s668_s30 = scalar_lea.vmem %s2121_s2, %s2009_s10 }
  0x70   : > { %675 = sbr.rel (%p1357_p5) target bundleno = 120 (0x78), region = 145 }
  0x75   : > { %v1711_v12 = vmov 0.0  }
  0x76   : > { %676 = vst [vmem:[#allocation2 + $0x10] sm:$0xff] %v1711_v12  ;;  %677 = vst [vmem:[#allocation2] sm:$0xff] %v1711_v12 }
  0x77   : > { %678 = vst [vmem:[#allocation2 + $0x18] sm:$0xff] %v1711_v12  ;;  %679 = vst [vmem:[#allocation2 + $0x8] sm:$0xff] %v1711_v12 }
  0x78 PF: > { %v1579_v13 = vld [vmem:[%s2017_s8 + $0x78] sm:$0xff]   ;;  %v1583_v17 = vld [vmem:[%s2017_s8 + $0x70] sm:$0xff]   ;;  %v1587_v21 = vld [vmem:[%s2017_s8 + $0x68] sm:$0xff]   ;;  %p1398_p6 = scmp.ne.s32.totalorder %s1693_s21, 17 }
  0x79   : > { %v1580_v14 = vld [vmem:[%s2017_s8 + $0xf8] sm:$0xff]   ;;  %1434 = vmatprep.subr.bf16.mxu0 %v1579_v13  ;;  %v1584_v18 = vld [vmem:[%s2017_s8 + $0xf0] sm:$0xff]   ;;  %v1588_v22 = vld [vmem:[%s2017_s8 + $0xe8] sm:$0xff]  }
  0x7a   : > { %v1581_v15 = vld [vmem:[%s2017_s8 + $0x38] sm:$0xff]   ;;  %1462 = vmatprep.subr.bf16.mxu1 %v1580_v14  ;;  %v1585_v19 = vld [vmem:[%s2017_s8 + $0x30] sm:$0xff]   ;;  %v1589_v23 = vld [vmem:[%s2017_s8 + $0x28] sm:$0xff]  }
  0x7b   : > { %v1582_v16 = vld [vmem:[%s2017_s8 + $0xb8] sm:$0xff]   ;;  %1435 = vmatpush3.bf16.msra.mxu0 %v1581_v15  ;;  %v1586_v20 = vld [vmem:[%s2017_s8 + $0xb0] sm:$0xff]   ;;  %v1590_v24 = vld [vmem:[%s2017_s8 + $0xa8] sm:$0xff]  }
  0x7c   : > { %1463 = vmatpush3.bf16.msra.mxu1 %v1582_v16  ;;  %1436 = vmatprep.subr.bf16.mxu0 %v1583_v17  ;;  %v1591_v25 = vld [vmem:[%s2017_s8 + $0x60] sm:$0xff]   ;;  %v1595_v29 = vld [vmem:[%s2017_s8 + $0x58] sm:$0xff]   ;;  %v1599_v33 = vld [vmem:[%s2017_s8 + $0x50] sm:$0xff]  }
  0x7d   : > { %1464 = vmatprep.subr.bf16.mxu1 %v1584_v18  ;;  %v1592_v26 = vld [vmem:[%s2017_s8 + $0xe0] sm:$0xff]   ;;  %v1596_v30 = vld [vmem:[%s2017_s8 + $0xd8] sm:$0xff]   ;;  %v1600_v34 = vld [vmem:[%s2017_s8 + $0xd0] sm:$0xff]  }
  0x7e   : > { %v1593_v27 = vld [vmem:[%s2017_s8 + $0x20] sm:$0xff]   ;;  %v1597_v31 = vld [vmem:[%s2017_s8 + $0x18] sm:$0xff]   ;;  %v1601_v35 = vld [vmem:[%s2017_s8 + $0x10] sm:$0xff]  }
  0x7f   : > { %1437 = vmatpush3.bf16.msra.mxu0 %v1585_v19  ;;  %v1594_v28 = vld [vmem:[%s2017_s8 + $0xa0] sm:$0xff]   ;;  %v1598_v32 = vld [vmem:[%s2017_s8 + $0x98] sm:$0xff]   ;;  %v1602_v36 = vld [vmem:[%s2017_s8 + $0x90] sm:$0xff]  }
  0x80   : > { %1465 = vmatpush3.bf16.msra.mxu1 %v1586_v20  ;;  %1438 = vmatprep.subr.bf16.mxu0 %v1587_v21  ;;  %v1603_v37 = vld [vmem:[%s2017_s8 + $0x48] sm:$0xff]   ;;  %v1607_v41 = vld [vmem:[%s2017_s8 + $0x40] sm:$0xff]   ;;  %v680_v60 = vld [vmem:[#allocation2 + $0x10] sm:$0xff] }
  0x81   : > { %1466 = vmatprep.subr.bf16.mxu1 %v1588_v22  ;;  %v1604_v38 = vld [vmem:[%s2017_s8 + $0xc8] sm:$0xff]   ;;  %v1608_v42 = vld [vmem:[%s2017_s8 + $0xc0] sm:$0xff]   ;;  %v682_v14 = vld [vmem:[#allocation2 + $0x18] sm:$0xff] }
  0x82   : > { %v1605_v39 = vld [vmem:[%s2017_s8 + $0x8] sm:$0xff]   ;;  %v1609_v43 = vld [vmem:[%s2017_s8] sm:$0xff]  }
  0x83   : > { %1439 = vmatpush3.bf16.msra.mxu0 %v1589_v23  ;;  %v1606_v40 = vld [vmem:[%s2017_s8 + $0x88] sm:$0xff]   ;;  %v1610_v44 = vld [vmem:[%s2017_s8 + $0x80] sm:$0xff]  }
  0x84   : > { %1467 = vmatpush3.bf16.msra.mxu1 %v1590_v24  ;;  %1440 = vmatprep.subr.bf16.mxu0 %v1591_v25  ;;  %v1611_v45 = vld [vmem:[%s2015_s6] ss:$16 sps:$4 sm:$0xff]   ;;  %v1613_v46 = vld [vmem:[%s2015_s6 + $0x4] ss:$16 sps:$4 sm:$0xff]   ;;  %v1614_v47 = vld [vmem:[%s2015_s6 + $0x8] ss:$16 sps:$4 sm:$0xff]  }
  0x85   : > { %1468 = vmatprep.subr.bf16.mxu1 %v1592_v26  ;;  %v1616_v48 = vld [vmem:[%s2015_s6 + $0xc] ss:$16 sps:$4 sm:$0xff]   ;;  %1020 = vmatprep.mubr.bf16.mxu0 %v1613_v46  ;;  %v1617_v49 = vld [vmem:[%s2015_s6 + $0x24] ss:$16 sps:$4 sm:$0xff]   ;;  %v1621_v51 = vld [vmem:[%s2015_s6 + $0x20] ss:$16 sps:$4 sm:$0xff]  }
  0x86   : > { %1069 = vmatprep.mubr.bf16.mxu1 %v1616_v48  ;;  %v1619_v50 = vld [vmem:[%s2015_s6 + $0x2c] ss:$16 sps:$4 sm:$0xff]   ;;  %v1622_v52 = vld [vmem:[%s2015_s6 + $0x28] ss:$16 sps:$4 sm:$0xff]   ;;  %v681_v5 = vld [vmem:[#allocation2] sm:$0xff] }
  0x87   : > { %1441 = vmatpush3.bf16.msra.mxu0 %v1593_v27  ;;  %v683_v22 = vld [vmem:[#allocation2 + $0x8] sm:$0xff] }
  0x88   : > { %1469 = vmatpush3.bf16.msra.mxu1 %v1594_v28  ;;  %1442 = vmatprep.subr.bf16.mxu0 %v1595_v29 }
  0x89   : > { %1470 = vmatprep.subr.bf16.mxu1 %v1596_v30 }
  0x8b   : > { %1443 = vmatpush3.bf16.msra.mxu0 %v1597_v31 }
  0x8c   : > { %1471 = vmatpush3.bf16.msra.mxu1 %v1598_v32  ;;  %1444 = vmatprep.subr.bf16.mxu0 %v1599_v33 }
  0x8d   : > { %1472 = vmatprep.subr.bf16.mxu1 %v1600_v34 }
  0x8f   : > { %1445 = vmatpush3.bf16.msra.mxu0 %v1601_v35 }
  0x90   : > { %1473 = vmatpush3.bf16.msra.mxu1 %v1602_v36  ;;  %1446 = vmatprep.subr.bf16.mxu0 %v1603_v37 }
  0x91   : > { %1474 = vmatprep.subr.bf16.mxu1 %v1604_v38 }
  0x93   : > { %1447 = vmatpush3.bf16.msra.mxu0 %v1605_v39 }
  0x94   : > { %1475 = vmatpush3.bf16.msra.mxu1 %v1606_v40  ;;  %1448 = vmatprep.subr.bf16.mxu0 %v1607_v41 }
  0x95   : > { %1476 = vmatprep.subr.bf16.mxu1 %v1608_v42 }
  0x97   : > { %1449 = vmatpush3.bf16.msra.mxu0 %v1609_v43 }
  0x98   : > { %1477 = vmatpush3.bf16.msra.mxu1 %v1610_v44 }
  0x9a   : > { %1021 = vmatmul.mubr.bf16.vlgmr.msra.gmra.mxu0 %v1611_v45 }
  0x9b   : > { %1070 = vmatmul.mubr.bf16.vlgmr.msra.gmra.mxu1 %v1614_v47  ;;  %1028 = vmatprep.mubr.bf16.mxu0 %v1617_v49 }
  0x9c   : > { %1077 = vmatprep.mubr.bf16.mxu1 %v1619_v50 }
  0xa2   : > { %1029 = vmatmul.mubr.bf16.gmra.mxu0 %v1621_v51 }
  0xa3   : > { %1078 = vmatmul.mubr.bf16.gmra.mxu1 %v1622_v52 }
 0x15a   : > { %v1450_v53 = vpop.f32.mrf.mxu0 }
 0x15b   : > { %v1478_v54 = vpop.f32.mrf.mxu1 }
 0x15c   : > { %v1451_v55 = vpop.f32.mrf.mxu0 }
 0x15d   : > { %v1452_v56 = vadd.f32 %v1451_v55, %v1450_v53  ;;  %v1479_v57 = vpop.f32.mrf.mxu1 }
 0x15e   : > { %v1480_v58 = vadd.f32 %v1479_v57, %v1478_v54  ;;  %v1453_v59 = vpop.f32.mrf.mxu0 }
 0x15f   : > { %v1481_v61 = vpop.f32.mrf.mxu1 }
 0x160   : > { %v1072_v62 = vadd.f32 %v1480_v58, %v1452_v56  ;;  %v1454_v63 = vpop.f32.mrf.mxu0 }
 0x161   : > { %v1455_v0 = vadd.f32 %v1454_v63, %v1453_v59  ;;  %v1482_v1 = vpop.f32.mrf.mxu1 }
 0x162   : > { %v1086_v2 = vadd.f32 %v1072_v62, %v680_v60  ;;  %v1483_v3 = vadd.f32 %v1482_v1, %v1481_v61  ;;  %v1456_v4 = vpop.f32.mrf.mxu0 }
 0x163   : > { %v1484_v6 = vpop.f32.mrf.mxu1 }
 0x164   : > { %1090 = vst [vmem:[#allocation2 + $0x10] sm:$0xff] %v1086_v2  ;;  %v1075_v7 = vadd.f32 %v1483_v3, %v1455_v0  ;;  %v1457_v8 = vpop.f32.mrf.mxu0 }
 0x165   : > { %v1458_v9 = vadd.f32 %v1457_v8, %v1456_v4  ;;  %v1485_v10 = vpop.f32.mrf.mxu1 }
 0x166   : > { %v1087_v11 = vadd.f32 %v1075_v7, %v681_v5  ;;  %v1486_v12 = vadd.f32 %v1485_v10, %v1484_v6  ;;  %v1459_v13 = vpop.f32.mrf.mxu0 }
 0x167   : > { %v1487_v15 = vpop.f32.mrf.mxu1 }
 0x168   : > { %1091 = vst [vmem:[#allocation2] sm:$0xff] %v1087_v11  ;;  %v1080_v16 = vadd.f32 %v1486_v12, %v1458_v9  ;;  %v1460_v17 = vpop.f32.mrf.mxu0 }
 0x169   : > { %v1461_v18 = vadd.f32 %v1460_v17, %v1459_v13  ;;  %v1488_v19 = vpop.f32.mrf.mxu1 }
 0x16a   : > { %v1088_v20 = vadd.f32 %v1080_v16, %v682_v14  ;;  %v1489_v21 = vadd.f32 %v1488_v19, %v1487_v15 }
 0x16c   : > { %1092 = vst [vmem:[#allocation2 + $0x18] sm:$0xff] %v1088_v20  ;;  %v1083_v23 = vadd.f32 %v1489_v21, %v1461_v18  ;;  %1097 = sbr.rel (%p1398_p6) target bundleno = 385 (0x181), region = 149 }
 0x16e   : > { %v1089_v24 = vadd.f32 %v1083_v23, %v683_v22 }
 0x170   : > { %1093 = vst [vmem:[#allocation2 + $0x8] sm:$0xff] %v1089_v24 }
 0x171   : > { %v1098_v25 = vld [vmem:[#allocation2 + $0x10] sm:$0xff]  ;;  %v1099_v26 = vld [vmem:[#allocation2] sm:$0xff]  ;;  %v1432_v37 = vld [vmem:[%s630_s17 + $0x8] sm:$0xff]  }
 0x172   : > { %v1399_v27 = vld [vmem:[%s668_s30] ss:$0 sm:$0xff]  ;;  %v1420_v38 = vunpack.c.l.bf16 %v1432_v37  ;;  %v1421_v39 = vunpack.c.h.bf16 %v1432_v37 }
 0x173   : > { %v1109_v28 = vadd.f32 %v1399_v27, %v1098_v25  ;;  %v1110_v29 = vadd.f32 %v1399_v27, %v1099_v26  ;;  %v1415_v30 = vld [vmem:[%s630_s17] sm:$0xff]   ;;  %v1100_v31 = vld [vmem:[#allocation2 + $0x18] sm:$0xff] }
 0x174   : > { %v1416_v33 = vunpack.c.l.bf16 %v1415_v30  ;;  %v1417_v34 = vunpack.c.h.bf16 %v1415_v30  ;;  %v1111_v35 = vadd.f32 %v1399_v27, %v1100_v31 }
 0x176   : > { %v1121_v40 = vadd.f32 %v1416_v33, %v1109_v28  ;;  %v1122_v41 = vadd.f32 %v1417_v34, %v1110_v29  ;;  %v1123_v42 = vadd.f32 %v1420_v38, %v1111_v35 }
 0x177   : > { %v1101_v32 = vld [vmem:[#allocation2 + $0x8] sm:$0xff] }
 0x178   : > { %v1112_v36 = vadd.f32 %v1399_v27, %v1101_v32  ;;  %v1125_v44 = vmax.f32 %v1121_v40, 0.0  ;;  %v1126_v45 = vmax.f32 %v1122_v41, 0.0  ;;  %v1127_v46 = vmax.f32 %v1123_v42, 0.0 }
 0x17a   : > { %v1124_v43 = vadd.f32 %v1421_v39, %v1112_v36  ;;  %v1425_v48 = vpack.c.bf16 %v1126_v45, %v1125_v44 }
 0x17c   : > { %v1128_v47 = vmax.f32 %v1124_v43, 0.0  ;;  %1426 = vst [vmem:[%s2021_s19] sm:$0xff] %v1425_v48  }
 0x17e   : > { %v1430_v49 = vpack.c.bf16 %v1128_v47, %v1127_v46 }
 0x180   : > { %1433 = vst [vmem:[%s2021_s19 + $0x8] sm:$0xff] %v1430_v49  }
 0x181 PF: > { %1155 = sbr.rel (!%p1841_p13) target bundleno = 393 (0x189), region = 153  ;;  %s1405_s21 = sshll.u32 (%p1841_p13), %s1697_s22, 2 }
 0x182   : > { %s1160_s11 = scalar_lea.vmem (%p1841_p13), %s2123_s4, %s1405_s21 }
 0x183   : > { %v1177_v50 = vld [vmem:[%s2021_s19] sm:$0xf] (%p1841_p13)  ;;  %v1179_v51 = vld [vmem:[%s2021_s19 + $0x4] sm:$0xf] (%p1841_p13) }
 0x184   : > { %1178 = vst [vmem:[%s1160_s11] sm:$0xf] (%p1841_p13), %v1177_v50  ;;  %1180 = vst [vmem:[%s1160_s11 + $0x8] sm:$0xf] (%p1841_p13), %v1179_v51 }
 0x187   : > { %v1181_v52 = vld [vmem:[%s2021_s19 + $0x8] sm:$0xf]  ;;  %v1183_v53 = vld [vmem:[%s2021_s19 + $0xc] sm:$0xf] }
 0x188   : > { %1182 = vst [vmem:[%s1160_s11 + $0x10] sm:$0xf] %v1181_v52  ;;  %1184 = vst [vmem:[%s1160_s11 + $0x18] sm:$0xf] %v1183_v53 }
 0x189 PF: > { %s14_s25 = sadd.s32 1, %s1709_s25   ;;  %s2134_s29 = sld [smem:[#allocation7_spill]] }
 0x18a   : > { %p11_p7 = scmp.ge.s32.totalorder %s14_s25, 38   ;;  %s2135_s28 = sld [smem:[#allocation8_spill]] }
 0x18b   : > { %s2136_s15 = smov %s1673_s16  ;;  %s2137_s16 = smov %s1833_s13 }
 0x18c   : > { %s2138_s17 = smov %s1681_s18  ;;  %s2139_s18 = smov %s1830_s12 }
 0x18d   : > { %s2140_s19 = smov %s1689_s20  ;;  %s2141_s20 = smov %s1814_s7 }
 0x18e   : > { %s2142_s21 = smov %s1701_s23  ;;  %s2143_s22 = smov %s1705_s24 }
 0x18f   : > { %s2144_s23 = smov %s2134_s29  ;;  %13 = sbr.rel (!%p11_p7) target bundleno = 8 (0x8), region = 244 }
 0x190   : > { %s2145_s24 = smov %s2135_s28 }

// kernel: brixcolornet_forward.9
= control target key start
LH: loop header
LB: loop body
LE: loop exit
PB: predicated region body
PF: predicated region fallthrough
CT: control target
= control target key end

     0   :  { %s1414_s15 = smov 0   ;;  %s1416_s16 = smov 0   ;;  %s1604_s0 = inlined_call_operand.vmem [shape: bf16[128,2304], index: 0, kind: input, shape index: {}]   ;;  %s1605_s1 = inlined_call_operand.vmem [shape: bf16[2304,64], index: 1, kind: input, shape index: {}]   ;;  %s1606_s2 = inlined_call_operand.vmem [shape: f32[1,64], index: 2, kind: input, shape index: {}]   ;;  %s1607_s3 = inlined_call_operand.vmem [shape: bf16[128,64], index: 3, kind: input, shape index: {}]   ;;  %s1608_s4 = inlined_call_operand.vmem [shape: bf16[128,64], index: 4, kind: output, shape index: {}]  }
   0x1   :  { %s1418_s17 = smov 0   ;;  %s1420_s18 = smov 0  }
   0x2   :  { %s1422_s19 = smov 0   ;;  %s1424_s20 = smov 0  }
   0x3   :  { %s1426_s21 = smov 0  }
   0x4 LB: > { %s26_s22 = sadd.s32 1, %s1378_s19  ;;  %s33_s23 = sadd.s32 1, %s1382_s20  ;;  %s1386_s21 = sphi %s1426_s21, %s14_s21   ;;  %s1382_s20 = sphi %s1424_s20, %s1614_s20   ;;  %s1378_s19 = sphi %s1422_s19, %s1613_s19   ;;  %s1374_s18 = sphi %s1420_s18, %s1612_s18   ;;  %s1370_s17 = sphi %s1418_s17, %s1611_s17   ;;  %s1366_s16 = sphi %s1416_s16, %s1610_s16   ;;  %s1362_s15 = sphi %s1414_s15, %s1609_s15  }
   0x5   : > { %p27_p0 = scmp.ge.s32.totalorder %s26_s22, 6  ;;  %p49_p1 = scmp.ne.s32.totalorder %s1366_s16, %s1362_s15 }
   0x6   : > { %p50_p2 = scmp.eq.s32.totalorder %s1386_s21, 0  ;;  %s42_s27 = sadd.s32 1, %s1366_s16 }
   0x7   : > { %s1616_s22 = smov (%p27_p0, %s26_s22), 0  ;;  %s1618_s23 = smov (!%p27_p0, %s33_s23), %s1382_s20 }
   0x8   : > { %p51_p3 = por %p50_p2, %p49_p1  ;;  %p35_p4 = scmp.ge.s32.totalorder %s1618_s23, 2 }
   0x9   : > { %s38_s24 = ssub.s32 %s1378_s19, %s1616_s22  ;;  %p1054_p6 = scmp.ge.s32.totalorder %s1386_s21, 12 }
   0xa   : > { %s1620_s23 = smov (%p35_p4, %s1618_s23), 0 }
   0xb   : > { %s37_s25 = ssub.s32 %s1382_s20, %s1620_s23  ;;  %191 = sbr.rel (%p1054_p6) target bundleno = 34 (0x22), region = 20 }
   0xc   : > { %s39_s26 = sor.u32 %s38_s24, %s37_s25 }
   0xd   : > { %p40_p5 = scmp.eq.s32.totalorder %s39_s26, 0 }
   0xf   : > { %s1465_s28 = scalar_select %p40_p5, %s1366_s16, %s42_s27  }
  0x10   : > { %194 = sbr.rel (!%p51_p3) target bundleno = 34 (0x22), region = 24  ;;  %s196_s29 = sand.u32 (%p51_p3), 1, %s1366_s16  }
  0x11   : > { %s200_s30 = smul.u32 (%p51_p3), 3, %s1378_s19 }
  0x12   : > { %s1232_s5 = smul.u32 (%p51_p3), 96, %s196_s29 }
  0x13   : > { %s1233_s6 = smul.u32 (%p51_p3), 144, %s1382_s20 }
  0x14   : > { %s198_s12 = scalar_lea.vmem (%p51_p3), [#allocation3], %s1232_s5 }
  0x15   : > { %s202_s7 = sadd.s32 %s1233_s6, %s200_s30 }
  0x16   : > { %s1057_s8 = sshll.u32 %s202_s7, 2 }
  0x17   : > { %s1474_s11 = scalar_lea.vmem %s1604_s0, %s1057_s8 }
  0x18   : > { %v219_v0 = vld [vmem:[%s1474_s11] sm:$0xff]  ;;  %v221_v1 = vld [vmem:[%s1474_s11 + $0x48] sm:$0xff]  ;;  %v223_v2 = vld [vmem:[%s1474_s11 + $0x90] sm:$0xff] }
  0x19   : > { %220 = vst [vmem:[%s198_s12] sm:$0xff] %v219_v0  ;;  %222 = vst [vmem:[%s198_s12 + $0xc] sm:$0xff] %v221_v1  ;;  %v225_v3 = vld [vmem:[%s1474_s11 + $0xd8] sm:$0xff]  ;;  %v227_v4 = vld [vmem:[%s1474_s11 + $0x120] sm:$0xff] }
  0x1a   : > { %224 = vst [vmem:[%s198_s12 + $0x18] sm:$0xff] %v223_v2  ;;  %v229_v5 = vld [vmem:[%s1474_s11 + $0x168] sm:$0xff]  ;;  %226 = vst [vmem:[%s198_s12 + $0x24] sm:$0xff] %v225_v3  ;;  %v231_v6 = vld [vmem:[%s1474_s11 + $0x1b0] sm:$0xff] }
  0x1b   : > { %228 = vst [vmem:[%s198_s12 + $0x30] sm:$0xff] %v227_v4  ;;  %230 = vst [vmem:[%s198_s12 + $0x3c] sm:$0xff] %v229_v5  ;;  %v233_v7 = vld [vmem:[%s1474_s11 + $0x1f8] sm:$0xff]  ;;  %v1058_v8 = vld [vmem:[%s1474_s11 + $0x8] sm:$0xf] }
  0x1c   : > { %232 = vst [vmem:[%s198_s12 + $0x48] sm:$0xff] %v231_v6  ;;  %234 = vst [vmem:[%s198_s12 + $0x54] sm:$0xff] %v233_v7  ;;  %v1060_v9 = vld [vmem:[%s1474_s11 + $0x50] sm:$0xf]  ;;  %v1062_v10 = vld [vmem:[%s1474_s11 + $0x98] sm:$0xf] }
  0x1d   : > { %1059 = vst [vmem:[%s198_s12 + $0x8] sm:$0xf] %v1058_v8  ;;  %v1064_v11 = vld [vmem:[%s1474_s11 + $0xe0] sm:$0xf]  ;;  %1061 = vst [vmem:[%s198_s12 + $0x14] sm:$0xf] %v1060_v9 }
  0x1e   : > { %1063 = vst [vmem:[%s198_s12 + $0x20] sm:$0xf] %v1062_v10  ;;  %1065 = vst [vmem:[%s198_s12 + $0x2c] sm:$0xf] %v1064_v11  ;;  %v1066_v12 = vld [vmem:[%s1474_s11 + $0x128] sm:$0xf] }
  0x1f   : > { %v1068_v13 = vld [vmem:[%s1474_s11 + $0x170] sm:$0xf]  ;;  %v1070_v14 = vld [vmem:[%s1474_s11 + $0x1b8] sm:$0xf]  ;;  %1067 = vst [vmem:[%s198_s12 + $0x38] sm:$0xf] %v1066_v12 }
  0x20   : > { %1069 = vst [vmem:[%s198_s12 + $0x44] sm:$0xf] %v1068_v13  ;;  %1071 = vst [vmem:[%s198_s12 + $0x50] sm:$0xf] %v1070_v14  ;;  %v1072_v15 = vld [vmem:[%s1474_s11 + $0x200] sm:$0xf] }
  0x21   : > { %1073 = vst [vmem:[%s198_s12 + $0x5c] sm:$0xf] %v1072_v15 }
  0x22 PF: > { %p1074_p7 = scmp.ge.s32.totalorder %s1386_s21, 1  ;;  %p287_p8 = scmp.lt.s32.totalorder %s1386_s21, 13 }
  0x24   : > { %p288_p9 = pnand %p1074_p7, %p287_p8 }
  0x25   : > { %s294_s13 = sand.u32 (!%p288_p9), 1, %s1362_s15   ;;  %s343_s14 = smul.u32 (!%p288_p9), 48, %s1370_s17 }
  0x26   : > { %291 = sbr.rel (%p288_p9) target bundleno = 338 (0x152), region = 58  ;;  %s1076_s25 = sshll.u32 (!%p288_p9), %s1374_s18, 3 }
  0x27   : > { %s1234_s24 = smul.u32 (!%p288_p9), 96, %s294_s13  ;;  %p344_p10 = scmp.lt.s32.totalorder (!%p288_p9), %s343_s14, 287 }
  0x28   : > { %p356_p11 = scmp.lt.s32.totalorder (!%p288_p9), %s1076_s25, 15  ;;  %p1080_p12 = scmp.ne.s32.totalorder (!%p288_p9), %s1370_s17, 0 }
  0x29   : > { %s1512_s10 = scalar_lea.vmem (!%p288_p9), [#allocation3], %s1234_s24 }
  0x2b   : > { %s1622_s14 = smov (!%p344_p10, %s343_s14), 287  ;;  %s1624_s25 = smov (!%p356_p11, %s1076_s25), 15 }
  0x2c   : > { %s1075_s26 = sshll.u32 %s1622_s14, 2  ;;  %s1077_s5 = sshll.u32 %s1624_s25, 2 }
  0x2d   : > { %s1500_s30 = scalar_lea.vmem %s1605_s1, %s1075_s26  ;;  %s1505_s8 = scalar_lea.vmem %s1607_s3, %s1077_s5 }
  0x2e   : > { %s1510_s18 = scalar_lea.vmem %s1608_s4, %s1077_s5  ;;  %377 = sbr.rel (%p1080_p12) target bundleno = 56 (0x38), region = 66 }
  0x33   : > { %vm378_vm0 = vcmask 523264   ;;  %v1388_v16 = vmov 0.0  }
  0x34   : > { %379 = vst.msk [vmem:[#allocation2] sm:$0xff] %vm378_vm0, %v1388_v16  ;;  %380 = vst.msk [vmem:[#allocation2 + $0x8] sm:$0xff] %vm378_vm0, %v1388_v16 }
  0x35   : > { %381 = vst.msk [vmem:[#allocation2 + $0x10] sm:$0xff] %vm378_vm0, %v1388_v16  ;;  %382 = vst.msk [vmem:[#allocation2 + $0x18] sm:$0xff] %vm378_vm0, %v1388_v16 }
  0x36   : > { %383 = vst.msk [vmem:[#allocation2 + $0x20] sm:$0xff] %vm378_vm0, %v1388_v16  ;;  %384 = vst.msk [vmem:[#allocation2 + $0x28] sm:$0xff] %vm378_vm0, %v1388_v16 }
  0x37   : > { %385 = vst.msk [vmem:[#allocation2 + $0x30] sm:$0xff] %vm378_vm0, %v1388_v16  ;;  %386 = vst.msk [vmem:[#allocation2 + $0x38] sm:$0xff] %vm378_vm0, %v1388_v16 }
  0x38 PF: > { %v1292_v17 = vld [vmem:[%s1500_s30 + $0x78] sm:$0xff]   ;;  %v1295_v20 = vld [vmem:[%s1500_s30 + $0x70] sm:$0xff]   ;;  %v1298_v23 = vld [vmem:[%s1500_s30 + $0x68] sm:$0xff]   ;;  %vm805_vm1 = vcmask 523264   ;;  %p1117_p13 = scmp.ne.s32.totalorder %s1370_s17, 5 }
  0x39   : > { %v1293_v18 = vld [vmem:[%s1500_s30 + $0x38] sm:$0xff]   ;;  %1156 = vmatprep.subr.bf16.mxu0 %v1292_v17  ;;  %v1296_v21 = vld [vmem:[%s1500_s30 + $0x30] sm:$0xff]   ;;  %v1299_v24 = vld [vmem:[%s1500_s30 + $0x28] sm:$0xff]  }
  0x3a   : > { %v1294_v19 = vld [vmem:[%s1500_s30 + $0xb8] sm:$0xff]   ;;  %1157 = vmatpush3.bf16.msra.mxu0 %v1293_v18  ;;  %v1297_v22 = vld [vmem:[%s1500_s30 + $0xb0] sm:$0xff]   ;;  %v1300_v25 = vld [vmem:[%s1500_s30 + $0xa8] sm:$0xff]  }
  0x3b   : > { %1208 = vmatprep.subr.bf16.mxu1 %v1294_v19  ;;  %1158 = vmatprep.subr.bf16.mxu0 %v1295_v20  ;;  %v1301_v26 = vld [vmem:[%s1500_s30 + $0x60] sm:$0xff]   ;;  %v1304_v29 = vld [vmem:[%s1500_s30 + $0x58] sm:$0xff]   ;;  %v1307_v32 = vld [vmem:[%s1500_s30 + $0x50] sm:$0xff]  }
  0x3c   : > { %1209 = vmatpush3.bf16.msra.mxu1 %v1294_v19  ;;  %v1302_v27 = vld [vmem:[%s1500_s30 + $0x20] sm:$0xff]   ;;  %v1306_v30 = vld [vmem:[%s1500_s30 + $0x98] sm:$0xff]   ;;  %v1309_v33 = vld [vmem:[%s1500_s30 + $0x90] sm:$0xff]  }
  0x3d   : > { %1210 = vmatprep.subr.bf16.mxu1 %v1297_v22  ;;  %v1303_v28 = vld [vmem:[%s1500_s30 + $0xa0] sm:$0xff]   ;;  %v1305_v31 = vld [vmem:[%s1500_s30 + $0x18] sm:$0xff]   ;;  %v1308_v34 = vld [vmem:[%s1500_s30 + $0x10] sm:$0xff]  }
  0x3e   : > { %1159 = vmatpush3.bf16.msra.mxu0 %v1296_v21  ;;  %v1310_v35 = vld [vmem:[%s1500_s30 + $0x48] sm:$0xff]   ;;  %v1313_v38 = vld [vmem:[%s1500_s30 + $0x40] sm:$0xff]   ;;  %v1328_v49 = vld [vmem:[%s1512_s10 + $0x50] ss:$12 sps:$4 sm:$0xff]  }
  0x3f   : > { %1160 = vmatprep.subr.bf16.mxu0 %v1298_v23  ;;  %v1311_v36 = vld [vmem:[%s1500_s30 + $0x8] sm:$0xff]   ;;  %v1315_v39 = vld [vmem:[%s1500_s30 + $0x80] sm:$0xff]   ;;  %v1326_v50 = vld [vmem:[%s1512_s10 + $0x30] ss:$12 sps:$4 sm:$0xff]  }
  0x40   : > { %1211 = vmatpush3.bf16.msra.mxu1 %v1297_v22  ;;  %v1312_v37 = vld [vmem:[%s1500_s30 + $0x88] sm:$0xff]   ;;  %v1318_v40 = vld [vmem:[%s1512_s10 + $0x4] ss:$12 sps:$4 sm:$0xff]   ;;  %v1324_v48 = vld [vmem:[%s1512_s10 + $0x34] ss:$12 sps:$4 sm:$0xff]  }
  0x41   : > { %1212 = vmatprep.subr.bf16.mxu1 %v1300_v25  ;;  %v1319_v41 = vld [vmem:[%s1512_s10 + $0x8] ss:$12 sps:$4 sm:$0xff]   ;;  %v1314_v42 = vld [vmem:[%s1500_s30] sm:$0xff]   ;;  %699 = vmatprep.mubr.bf16.mxu0 %v1318_v40  ;;  %v1329_v51 = vld [vmem:[%s1512_s10 + $0x4c] ss:$12 sps:$4 sm:$0xff]  }
  0x42   : > { %1161 = vmatpush3.bf16.msra.mxu0 %v1299_v24  ;;  %1224 = vmatprep.mubr.bf16.mxu1 %v1319_v41  ;;  %v1316_v43 = vld [vmem:[%s1512_s10] ss:$12 sps:$4 sm:$0xff]   ;;  %v1321_v44 = vld [vmem:[%s1512_s10 + $0x1c] ss:$12 sps:$4 sm:$0xff]   ;;  %v1327_v46 = vld [vmem:[%s1512_s10 + $0x38] ss:$12 sps:$4 sm:$0xff]  }
  0x43   : > { %1162 = vmatprep.subr.bf16.mxu0 %v1301_v26  ;;  %v1320_v45 = vld [vmem:[%s1512_s10 + $0x20] ss:$12 sps:$4 sm:$0xff]   ;;  %v1323_v47 = vld [vmem:[%s1512_s10 + $0x18] ss:$12 sps:$4 sm:$0xff]   ;;  %v1331_v52 = vld [vmem:[%s1512_s10 + $0x48] ss:$12 sps:$4 sm:$0xff]  }
  0x44   : > { %1213 = vmatpush3.bf16.msra.mxu1 %v1300_v25  ;;  %v387_v58 = vld [vmem:[#allocation2] sm:$0xff]  ;;  %v388_v2 = vld [vmem:[#allocation2 + $0x8] sm:$0xff]  ;;  %v389_v9 = vld [vmem:[#allocation2 + $0x10] sm:$0xff] }
  0x45   : > { %1214 = vmatprep.subr.bf16.mxu1 %v1303_v28  ;;  %v390_v16 = vld [vmem:[#allocation2 + $0x18] sm:$0xff]  ;;  %v391_v24 = vld [vmem:[#allocation2 + $0x20] sm:$0xff] }
  0x46   : > { %1163 = vmatpush3.bf16.msra.mxu0 %v1302_v27 }
  0x47   : > { %1164 = vmatprep.subr.bf16.mxu0 %v1304_v29 }
  0x48   : > { %1215 = vmatpush3.bf16.msra.mxu1 %v1303_v28 }
  0x49   : > { %1216 = vmatprep.subr.bf16.mxu1 %v1306_v30 }
  0x4a   : > { %1165 = vmatpush3.bf16.msra.mxu0 %v1305_v31  ;;  %v392_v31 = vld [vmem:[#allocation2 + $0x28] sm:$0xff] }
  0x4b   : > { %1166 = vmatprep.subr.bf16.mxu0 %v1307_v32 }
  0x4c   : > { %1217 = vmatpush3.bf16.msra.mxu1 %v1306_v30 }
  0x4d   : > { %1218 = vmatprep.subr.bf16.mxu1 %v1309_v33 }
  0x4e   : > { %1167 = vmatpush3.bf16.msra.mxu0 %v1308_v34 }
  0x4f   : > { %1168 = vmatprep.subr.bf16.mxu0 %v1310_v35 }
  0x50   : > { %1219 = vmatpush3.bf16.msra.mxu1 %v1309_v33 }
  0x51   : > { %1220 = vmatprep.subr.bf16.mxu1 %v1312_v37 }
  0x52   : > { %1169 = vmatpush3.bf16.msra.mxu0 %v1311_v36  ;;  %v393_v36 = vld [vmem:[#allocation2 + $0x30] sm:$0xff] }
  0x53   : > { %1170 = vmatprep.subr.bf16.mxu0 %v1313_v38 }
  0x54   : > { %1221 = vmatpush3.bf16.msra.mxu1 %v1312_v37 }
  0x55   : > { %1222 = vmatprep.subr.bf16.mxu1 %v1315_v39 }
  0x56   : > { %1171 = vmatpush3.bf16.msra.mxu0 %v1314_v42  ;;  %v394_v42 = vld [vmem:[#allocation2 + $0x38] sm:$0xff] }
  0x58   : > { %1223 = vmatpush3.bf16.msra.mxu1 %v1315_v39 }
  0x59   : > { %700 = vmatmul.mubr.bf16.vlgmr.msra.gmra.mxu0 %v1316_v43 }
  0x5a   : > { %707 = vmatprep.mubr.bf16.mxu0 %v1321_v44 }
  0x5b   : > { %1225 = vmatmul.mubr.bf16.vlgmr.msra.gmra.mxu1 %v1320_v45 }
  0x5c   : > { %1228 = vmatprep.mubr.bf16.mxu1 %v1327_v46 }
  0x61   : > { %708 = vmatmul.mubr.bf16.gmra.mxu0 %v1323_v47 }
  0x62   : > { %715 = vmatprep.mubr.bf16.mxu0 %v1324_v48 }
  0x63   : > { %1229 = vmatmul.mubr.bf16.gmra.mxu1 %v1328_v49 }
  0x69   : > { %716 = vmatmul.mubr.bf16.gmra.mxu0 %v1326_v50 }
  0x6a   : > { %723 = vmatprep.mubr.bf16.mxu0 %v1329_v51 }
  0x71   : > { %724 = vmatmul.mubr.bf16.gmra.mxu0 %v1331_v52 }
 0x119   : > { %v1172_v53 = vpop.f32.mrf.mxu0 }
 0x11b   : > { %v1173_v54 = vpop.f32.mrf.mxu0  ;;  %v1226_v55 = vpop.f32.mrf.mxu1 }
 0x11c   : > { %v1174_v56 = vadd.f32 %v1173_v54, %v1172_v53 }
 0x11d   : > { %v1175_v57 = vpop.f32.mrf.mxu0  ;;  %v766_v59 = vpop.f32.mrf.mxu1 }
 0x11e   : > { %v767_v60 = vadd.f32 %v1174_v56, %v766_v59 }
 0x11f   : > { %v1176_v61 = vpop.f32.mrf.mxu0  ;;  %v1227_v62 = vpop.f32.mrf.mxu1 }
 0x120   : > { %v797_v63 = vadd.f32 %v767_v60, %v387_v58  ;;  %v1177_v0 = vadd.f32 %v1176_v61, %v1175_v57 }
 0x121   : > { %v1178_v1 = vpop.f32.mrf.mxu0  ;;  %v769_v3 = vpop.f32.mrf.mxu1 }
 0x122   : > { %806 = vst.msk [vmem:[#allocation2] sm:$0xff] %vm805_vm1, %v797_v63  ;;  %v770_v4 = vadd.f32 %v1177_v0, %v769_v3 }
 0x123   : > { %v1179_v5 = vpop.f32.mrf.mxu0  ;;  %v1230_v6 = vpop.f32.mrf.mxu1 }
 0x124   : > { %v798_v7 = vadd.f32 %v770_v4, %v388_v2  ;;  %v1180_v8 = vadd.f32 %v1179_v5, %v1178_v1 }
 0x125   : > { %v1181_v10 = vpop.f32.mrf.mxu0  ;;  %v782_v13 = vpop.f32.mrf.mxu1 }
 0x126   : > { %807 = vst.msk [vmem:[#allocation2 + $0x8] sm:$0xff] %vm805_vm1, %v798_v7  ;;  %v775_v11 = vadd.f32 %v1226_v55, %v1180_v8 }
 0x127   : > { %v1182_v12 = vpop.f32.mrf.mxu0  ;;  %v1231_v20 = vpop.f32.mrf.mxu1 }
 0x128   : > { %v799_v14 = vadd.f32 %v775_v11, %v389_v9  ;;  %v1183_v15 = vadd.f32 %v1182_v12, %v1181_v10 }
 0x129   : > { %v1184_v17 = vpop.f32.mrf.mxu0  ;;  %v785_v27 = vpop.f32.mrf.mxu1 }
 0x12a   : > { %808 = vst.msk [vmem:[#allocation2 + $0x10] sm:$0xff] %vm805_vm1, %v799_v14  ;;  %v778_v18 = vadd.f32 %v1227_v62, %v1183_v15 }
 0x12b   : > { %v1185_v19 = vpop.f32.mrf.mxu0 }
 0x12c   : > { %v800_v21 = vadd.f32 %v778_v18, %v390_v16  ;;  %v1186_v22 = vadd.f32 %v1185_v19, %v1184_v17 }
 0x12d   : > { %v1187_v23 = vpop.f32.mrf.mxu0 }
 0x12e   : > { %809 = vst.msk [vmem:[#allocation2 + $0x18] sm:$0xff] %vm805_vm1, %v800_v21  ;;  %v783_v25 = vadd.f32 %v1186_v22, %v782_v13 }
 0x12f   : > { %v1188_v26 = vpop.f32.mrf.mxu0 }
 0x130   : > { %v801_v28 = vadd.f32 %v783_v25, %v391_v24  ;;  %v1189_v29 = vadd.f32 %v1188_v26, %v1187_v23 }
 0x131   : > { %v1190_v30 = vpop.f32.mrf.mxu0 }
 0x132   : > { %810 = vst.msk [vmem:[#allocation2 + $0x20] sm:$0xff] %vm805_vm1, %v801_v28  ;;  %v786_v32 = vadd.f32 %v1189_v29, %v785_v27 }
 0x133   : > { %v1191_v33 = vpop.f32.mrf.mxu0 }
 0x134   : > { %v802_v34 = vadd.f32 %v786_v32, %v392_v31  ;;  %v1192_v35 = vadd.f32 %v1191_v33, %v1190_v30 }
 0x135   : > { %v1193_v37 = vpop.f32.mrf.mxu0 }
 0x136   : > { %811 = vst.msk [vmem:[#allocation2 + $0x28] sm:$0xff] %vm805_vm1, %v802_v34  ;;  %v791_v38 = vadd.f32 %v1230_v6, %v1192_v35 }
 0x137   : > { %v1194_v39 = vpop.f32.mrf.mxu0 }
 0x138   : > { %v803_v40 = vadd.f32 %v791_v38, %v393_v36  ;;  %v1195_v41 = vadd.f32 %v1194_v39, %v1193_v37 }
 0x13a   : > { %812 = vst.msk [vmem:[#allocation2 + $0x30] sm:$0xff] %vm805_vm1, %v803_v40  ;;  %v794_v43 = vadd.f32 %v1231_v20, %v1195_v41  ;;  %817 = sbr.rel (%p1117_p13) target bundleno = 338 (0x152), region = 70 }
 0x13c   : > { %v804_v44 = vadd.f32 %v794_v43, %v394_v42 }
 0x13e   : > { %813 = vst.msk [vmem:[#allocation2 + $0x38] sm:$0xff] %vm805_vm1, %v804_v44 }
 0x13f   : > { %v818_v45 = vld [vmem:[#allocation2] sm:$0xff]  ;;  %vm905_vm2 = vcmask 519168   ;;  %v819_v50 = vld [vmem:[#allocation2 + $0x8] sm:$0xff]  ;;  %v820_v52 = vld [vmem:[#allocation2 + $0x10] sm:$0xff] }
 0x140   : > { %v1118_v46 = vld [vmem:[%s1606_s2] ss:$0 sm:$0xff]  ;;  %v1153_v53 = vld [vmem:[%s1505_s8 + $0x8] sm:$0xff]   ;;  %v821_v57 = vld [vmem:[#allocation2 + $0x18] sm:$0xff] }
 0x141   : > { %v1138_v47 = vld [vmem:[%s1505_s8] sm:$0xff]   ;;  %v833_v48 = vadd.f32 %v1118_v46, %v818_v45  ;;  %v834_v54 = vadd.f32 %v1118_v46, %v819_v50  ;;  %v835_v55 = vadd.f32 %v1118_v46, %v820_v52  ;;  %v1143_v56 = vunpack.c.l.bf16 %v1153_v53  ;;  %v1154_v60 = vld [vmem:[%s1505_s8 + $0x10] sm:$0xff]   ;;  %v823_v1 = vld [vmem:[#allocation2 + $0x28] sm:$0xff] }
 0x142   : > { %v1139_v49 = vunpack.c.l.bf16 %v1138_v47  ;;  %v1140_v51 = vunpack.c.h.bf16 %v1138_v47  ;;  %v1144_v58 = vunpack.c.h.bf16 %v1153_v53  ;;  %v822_v59 = vld [vmem:[#allocation2 + $0x20] sm:$0xff]  ;;  %v836_v62 = vadd.f32 %v1118_v46, %v821_v57  ;;  %v824_v2 = vld [vmem:[#allocation2 + $0x30] sm:$0xff]  ;;  %v1155_v3 = vld [vmem:[%s1505_s8 + $0x18] sm:$0xff]  }
 0x143   : > { %v837_v63 = vadd.f32 %v1118_v46, %v822_v59  ;;  %v1147_v0 = vunpack.c.l.bf16 %v1154_v60  ;;  %v859_v5 = vadd.f32 %v1143_v56, %v835_v55  ;;  %v838_v6 = vadd.f32 %v1118_v46, %v823_v1 }
 0x144   : > { %v857_v61 = vadd.f32 %v1139_v49, %v833_v48  ;;  %v858_v4 = vadd.f32 %v1140_v51, %v834_v54  ;;  %v1148_v7 = vunpack.c.h.bf16 %v1154_v60  ;;  %v860_v10 = vadd.f32 %v1144_v58, %v836_v62 }
 0x145   : > { %v825_v8 = vld [vmem:[#allocation2 + $0x38] sm:$0xff]  ;;  %v861_v11 = vadd.f32 %v1147_v0, %v837_v63  ;;  %v839_v12 = vadd.f32 %v1118_v46, %v824_v2  ;;  %v867_v14 = vmax.f32 %v859_v5, 0.0  ;;  %v1151_v16 = vunpack.c.l.bf16 %v1155_v3 }
 0x146   : > { %v865_v9 = vmax.f32 %v857_v61, 0.0  ;;  %v866_v13 = vmax.f32 %v858_v4, 0.0  ;;  %v862_v15 = vadd.f32 %v1148_v7, %v838_v6  ;;  %v868_v18 = vmax.f32 %v860_v10, 0.0 }
 0x147   : > { %v869_v19 = vmax.f32 %v861_v11, 0.0  ;;  %v840_v20 = vadd.f32 %v1118_v46, %v825_v8  ;;  %v1131_v22 = vpack.c.bf16 %v867_v14, %v867_v14  ;;  %v863_v24 = vadd.f32 %v1151_v16, %v839_v12 }
 0x148   : > { %v1129_v17 = vpack.c.bf16 %v865_v9, %v865_v9  ;;  %v1130_v21 = vpack.c.bf16 %v866_v13, %v866_v13  ;;  %v870_v23 = vmax.f32 %v862_v15, 0.0  ;;  %v1132_v25 = vpack.c.bf16 %v868_v18, %v868_v18 }
 0x149   : > { %v1133_v26 = vpack.c.bf16 %v869_v19, %v869_v19  ;;  %v1152_v27 = vunpack.c.h.bf16 %v1155_v3  ;;  %908 = vst.msk [vmem:[%s1510_s18 + $0x8] sm:$0xf] %vm905_vm2, %v1131_v22  ;;  %v871_v29 = vmax.f32 %v863_v24, 0.0 }
 0x14a   : > { %906 = vst.msk [vmem:[%s1510_s18] sm:$0xf] %vm905_vm2, %v1129_v17  ;;  %907 = vst.msk [vmem:[%s1510_s18 + $0x4] sm:$0xf] %vm905_vm2, %v1130_v21  ;;  %v1134_v28 = vpack.c.bf16 %v870_v23, %v870_v23 }
 0x14b   : > { %909 = vst.msk [vmem:[%s1510_s18 + $0xc] sm:$0xf] %vm905_vm2, %v1132_v25  ;;  %910 = vst.msk [vmem:[%s1510_s18 + $0x10] sm:$0xf] %vm905_vm2, %v1133_v26  ;;  %v864_v30 = vadd.f32 %v1152_v27, %v840_v20  ;;  %v1135_v31 = vpack.c.bf16 %v871_v29, %v871_v29 }
 0x14c   : > { %911 = vst.msk [vmem:[%s1510_s18 + $0x14] sm:$0xf] %vm905_vm2, %v1134_v28 }
 0x14d   : > { %v872_v32 = vmax.f32 %v864_v30, 0.0  ;;  %912 = vst.msk [vmem:[%s1510_s18 + $0x18] sm:$0xf] %vm905_vm2, %v1135_v31 }
 0x14f   : > { %v1136_v33 = vpack.c.bf16 %v872_v32, %v872_v32 }
 0x151   : > { %913 = vst.msk [vmem:[%s1510_s18 + $0x1c] sm:$0xf] %vm905_vm2, %v1136_v33 }
 0x152 PF: > { %s14_s21 = sadd.s32 1, %s1386_s21   ;;  %s1609_s15 = smov %s1366_s16 }
 0x153   : > { %p11_p0 = scmp.ge.s32.totalorder %s14_s21, 14   ;;  %s1610_s16 = smov %s1465_s28 }
 0x154   : > { %s1611_s17 = smov %s1378_s19  ;;  %s1612_s18 = smov %s1382_s20 }
 0x155   : > { %s1613_s19 = smov %s1616_s22  ;;  %s1614_s20 = smov %s1620_s23 }
 0x156   :  { %13 = sbr.rel (!%p11_p0) target bundleno = 4 (0x4), region = 120 }

// kernel: brixcolornet_forward.10
= control target key start
LH: loop header
LB: loop body
LE: loop exit
PB: predicated region body
PF: predicated region fallthrough
CT: control target
= control target key end

     0   :  { %s1522_s12 = smov 0   ;;  %s1524_s13 = smov 0   ;;  %s1833_s0 = inlined_call_operand.vmem [shape: bf16[8,9216], index: 0, kind: input, shape index: {}]   ;;  %s1834_s1 = inlined_call_operand.vmem [shape: bf16[9216,512], index: 1, kind: input, shape index: {}]   ;;  %s1835_s2 = inlined_call_operand.vmem [shape: f32[1,512], index: 2, kind: input, shape index: {}]   ;;  %s1836_s3 = inlined_call_operand.vmem [shape: bf16[8,512], index: 3, kind: output, shape index: {}]  }
   0x1   :  { %s1526_s14 = smov 0   ;;  %s1528_s15 = smov 0  }
   0x2   :  { %s1530_s16 = smov 0   ;;  %s1532_s17 = smov 0  }
   0x3   :  { %s1534_s18 = smov 0  }
   0x4 LB: > { %s25_s19 = sadd.s32 1, %s1491_s16  ;;  %s28_s20 = sadd.s32 1, %s1495_s17  ;;  %s1499_s18 = sphi %s1534_s18, %s13_s18   ;;  %s1495_s17 = sphi %s1532_s17, %s1842_s17   ;;  %s1491_s16 = sphi %s1530_s16, %s1841_s16   ;;  %s1487_s15 = sphi %s1528_s15, %s1840_s15   ;;  %s1483_s14 = sphi %s1526_s14, %s1839_s14   ;;  %s1479_s13 = sphi %s1524_s13, %s1838_s13   ;;  %s1475_s12 = sphi %s1522_s12, %s1837_s12  }
   0x5   : > { %p26_p0 = scmp.ge.s32.totalorder %s25_s19, 18  ;;  %p76_p1 = scmp.ne.s32.totalorder %s1479_s13, %s1475_s12 }
   0x6   : > { %p77_p2 = scmp.eq.s32.totalorder %s1499_s18, 0  ;;  %s69_s24 = sadd.s32 1, %s1479_s13 }
   0x7   : > { %s1844_s19 = smov (%p26_p0, %s25_s19), 0  ;;  %s1846_s20 = smov (!%p26_p0, %s28_s20), %s1495_s17 }
   0x8   : > { %p78_p3 = por %p77_p2, %p76_p1  ;;  %p30_p4 = scmp.ge.s32.totalorder %s1846_s20, 2 }
   0x9   : > { %s64_s21 = ssub.s32 %s1491_s16, %s1844_s19  ;;  %p1200_p6 = scmp.ge.s32.totalorder %s1499_s18, 36 }
   0xa   : > { %s1848_s20 = smov (%p30_p4, %s1846_s20), 0 }
   0xb   : > { %s65_s22 = ssub.s32 %s1495_s17, %s1848_s20  ;;  %156 = sbr.rel (%p1200_p6) target bundleno = 55 (0x37), region = 16 }
   0xc   : > { %s66_s23 = sor.u32 %s65_s22, %s64_s21 }
   0xd   : > { %p67_p5 = scmp.eq.s32.totalorder %s66_s23, 0 }
   0xf   : > { %s1573_s25 = scalar_select %p67_p5, %s1479_s13, %s69_s24  }
  0x10   : > { %172 = sbr.rel (!%p78_p3) target bundleno = 55 (0x37), region = 24  ;;  %s174_s26 = sand.u32 (%p78_p3), 1, %s1479_s13  }
  0x11   : > { %s1203_s27 = sshll.u32 (%p78_p3), %s1495_s17, 1  ;;  %s1201_s28 = sshll.u32 (%p78_p3), %s174_s26, 9 }
  0x12   : > { %s1286_s29 = sshll.u32 (%p78_p3), %s1491_s16, 8  ;;  %s1587_s8 = scalar_lea.vmem (%p78_p3), [#allocation3], %s1201_s28 }
  0x13   : > { %s180_s30 = sadd.s32 (%p78_p3), %s1286_s29, %s1203_s27 }
  0x14   : > { %s1205_s4 = sshll.u32 (%p78_p3), %s180_s30, 2 }
  0x15   : > { %s1582_s7 = scalar_lea.vmem %s1834_s1, %s1205_s4 }
  0x16   : > { %v337_v0 = vld [vmem:[%s1582_s7] sm:$0xff]  ;;  %v339_v1 = vld [vmem:[%s1582_s7 + $0x10] sm:$0xff] }
  0x17   : > { %v341_v2 = vld [vmem:[%s1582_s7 + $0x20] sm:$0xff]  ;;  %338 = vst [vmem:[%s1587_s8] sm:$0xff] %v337_v0  ;;  %340 = vst [vmem:[%s1587_s8 + $0x8] sm:$0xff] %v339_v1  ;;  %v343_v3 = vld [vmem:[%s1582_s7 + $0x30] sm:$0xff] }
  0x18   : > { %342 = vst [vmem:[%s1587_s8 + $0x10] sm:$0xff] %v341_v2  ;;  %v345_v4 = vld [vmem:[%s1582_s7 + $0x40] sm:$0xff]  ;;  %v347_v5 = vld [vmem:[%s1582_s7 + $0x50] sm:$0xff]  ;;  %344 = vst [vmem:[%s1587_s8 + $0x18] sm:$0xff] %v343_v3 }
  0x19   : > { %346 = vst [vmem:[%s1587_s8 + $0x20] sm:$0xff] %v345_v4  ;;  %348 = vst [vmem:[%s1587_s8 + $0x28] sm:$0xff] %v347_v5  ;;  %v349_v6 = vld [vmem:[%s1582_s7 + $0x60] sm:$0xff]  ;;  %v351_v7 = vld [vmem:[%s1582_s7 + $0x70] sm:$0xff] }
  0x1a   : > { %v353_v8 = vld [vmem:[%s1582_s7 + $0x80] sm:$0xff]  ;;  %350 = vst [vmem:[%s1587_s8 + $0x30] sm:$0xff] %v349_v6  ;;  %352 = vst [vmem:[%s1587_s8 + $0x38] sm:$0xff] %v351_v7  ;;  %v355_v9 = vld [vmem:[%s1582_s7 + $0x90] sm:$0xff] }
  0x1b   : > { %354 = vst [vmem:[%s1587_s8 + $0x40] sm:$0xff] %v353_v8  ;;  %v357_v10 = vld [vmem:[%s1582_s7 + $0xa0] sm:$0xff]  ;;  %v359_v11 = vld [vmem:[%s1582_s7 + $0xb0] sm:$0xff]  ;;  %356 = vst [vmem:[%s1587_s8 + $0x48] sm:$0xff] %v355_v9 }
  0x1c   : > { %358 = vst [vmem:[%s1587_s8 + $0x50] sm:$0xff] %v357_v10  ;;  %360 = vst [vmem:[%s1587_s8 + $0x58] sm:$0xff] %v359_v11  ;;  %v361_v12 = vld [vmem:[%s1582_s7 + $0xc0] sm:$0xff]  ;;  %v363_v13 = vld [vmem:[%s1582_s7 + $0xd0] sm:$0xff] }
  0x1d   : > { %v365_v14 = vld [vmem:[%s1582_s7 + $0xe0] sm:$0xff]  ;;  %362 = vst [vmem:[%s1587_s8 + $0x60] sm:$0xff] %v361_v12  ;;  %364 = vst [vmem:[%s1587_s8 + $0x68] sm:$0xff] %v363_v13  ;;  %v367_v15 = vld [vmem:[%s1582_s7 + $0xf0] sm:$0xff] }
  0x1e   : > { %366 = vst [vmem:[%s1587_s8 + $0x70] sm:$0xff] %v365_v14  ;;  %v369_v16 = vld [vmem:[%s1582_s7 + $0x100] sm:$0xff]  ;;  %v371_v17 = vld [vmem:[%s1582_s7 + $0x110] sm:$0xff]  ;;  %368 = vst [vmem:[%s1587_s8 + $0x78] sm:$0xff] %v367_v15 }
  0x1f   : > { %370 = vst [vmem:[%s1587_s8 + $0x80] sm:$0xff] %v369_v16  ;;  %372 = vst [vmem:[%s1587_s8 + $0x88] sm:$0xff] %v371_v17  ;;  %v373_v18 = vld [vmem:[%s1582_s7 + $0x120] sm:$0xff]  ;;  %v375_v19 = vld [vmem:[%s1582_s7 + $0x130] sm:$0xff] }
  0x20   : > { %v377_v20 = vld [vmem:[%s1582_s7 + $0x140] sm:$0xff]  ;;  %374 = vst [vmem:[%s1587_s8 + $0x90] sm:$0xff] %v373_v18  ;;  %376 = vst [vmem:[%s1587_s8 + $0x98] sm:$0xff] %v375_v19  ;;  %v379_v21 = vld [vmem:[%s1582_s7 + $0x150] sm:$0xff] }
  0x21   : > { %378 = vst [vmem:[%s1587_s8 + $0xa0] sm:$0xff] %v377_v20  ;;  %v381_v22 = vld [vmem:[%s1582_s7 + $0x160] sm:$0xff]  ;;  %v383_v23 = vld [vmem:[%s1582_s7 + $0x170] sm:$0xff]  ;;  %380 = vst [vmem:[%s1587_s8 + $0xa8] sm:$0xff] %v379_v21 }
  0x22   : > { %382 = vst [vmem:[%s1587_s8 + $0xb0] sm:$0xff] %v381_v22  ;;  %384 = vst [vmem:[%s1587_s8 + $0xb8] sm:$0xff] %v383_v23  ;;  %v385_v24 = vld [vmem:[%s1582_s7 + $0x180] sm:$0xff]  ;;  %v387_v25 = vld [vmem:[%s1582_s7 + $0x190] sm:$0xff] }
  0x23   : > { %v389_v26 = vld [vmem:[%s1582_s7 + $0x1a0] sm:$0xff]  ;;  %386 = vst [vmem:[%s1587_s8 + $0xc0] sm:$0xff] %v385_v24  ;;  %388 = vst [vmem:[%s1587_s8 + $0xc8] sm:$0xff] %v387_v25  ;;  %v391_v27 = vld [vmem:[%s1582_s7 + $0x1b0] sm:$0xff] }
  0x24   : > { %390 = vst [vmem:[%s1587_s8 + $0xd0] sm:$0xff] %v389_v26  ;;  %v393_v28 = vld [vmem:[%s1582_s7 + $0x1c0] sm:$0xff]  ;;  %v395_v29 = vld [vmem:[%s1582_s7 + $0x1d0] sm:$0xff]  ;;  %392 = vst [vmem:[%s1587_s8 + $0xd8] sm:$0xff] %v391_v27 }
  0x25   : > { %394 = vst [vmem:[%s1587_s8 + $0xe0] sm:$0xff] %v393_v28  ;;  %396 = vst [vmem:[%s1587_s8 + $0xe8] sm:$0xff] %v395_v29  ;;  %v397_v30 = vld [vmem:[%s1582_s7 + $0x1e0] sm:$0xff]  ;;  %v399_v31 = vld [vmem:[%s1582_s7 + $0x1f0] sm:$0xff] }
  0x26   : > { %v401_v32 = vld [vmem:[%s1582_s7 + $0x200] sm:$0xff]  ;;  %398 = vst [vmem:[%s1587_s8 + $0xf0] sm:$0xff] %v397_v30  ;;  %400 = vst [vmem:[%s1587_s8 + $0xf8] sm:$0xff] %v399_v31  ;;  %v403_v33 = vld [vmem:[%s1582_s7 + $0x210] sm:$0xff] }
  0x27   : > { %402 = vst [vmem:[%s1587_s8 + $0x100] sm:$0xff] %v401_v32  ;;  %v405_v34 = vld [vmem:[%s1582_s7 + $0x220] sm:$0xff]  ;;  %v407_v35 = vld [vmem:[%s1582_s7 + $0x230] sm:$0xff]  ;;  %404 = vst [vmem:[%s1587_s8 + $0x108] sm:$0xff] %v403_v33 }
  0x28   : > { %406 = vst [vmem:[%s1587_s8 + $0x110] sm:$0xff] %v405_v34  ;;  %408 = vst [vmem:[%s1587_s8 + $0x118] sm:$0xff] %v407_v35  ;;  %v409_v36 = vld [vmem:[%s1582_s7 + $0x240] sm:$0xff]  ;;  %v411_v37 = vld [vmem:[%s1582_s7 + $0x250] sm:$0xff] }
  0x29   : > { %v413_v38 = vld [vmem:[%s1582_s7 + $0x260] sm:$0xff]  ;;  %410 = vst [vmem:[%s1587_s8 + $0x120] sm:$0xff] %v409_v36  ;;  %412 = vst [vmem:[%s1587_s8 + $0x128] sm:$0xff] %v411_v37  ;;  %v415_v39 = vld [vmem:[%s1582_s7 + $0x270] sm:$0xff] }
  0x2a   : > { %414 = vst [vmem:[%s1587_s8 + $0x130] sm:$0xff] %v413_v38  ;;  %v417_v40 = vld [vmem:[%s1582_s7 + $0x280] sm:$0xff]  ;;  %v419_v41 = vld [vmem:[%s1582_s7 + $0x290] sm:$0xff]  ;;  %416 = vst [vmem:[%s1587_s8 + $0x138] sm:$0xff] %v415_v39 }
  0x2b   : > { %418 = vst [vmem:[%s1587_s8 + $0x140] sm:$0xff] %v417_v40  ;;  %420 = vst [vmem:[%s1587_s8 + $0x148] sm:$0xff] %v419_v41  ;;  %v421_v42 = vld [vmem:[%s1582_s7 + $0x2a0] sm:$0xff]  ;;  %v423_v43 = vld [vmem:[%s1582_s7 + $0x2b0] sm:$0xff] }
  0x2c   : > { %v425_v44 = vld [vmem:[%s1582_s7 + $0x2c0] sm:$0xff]  ;;  %422 = vst [vmem:[%s1587_s8 + $0x150] sm:$0xff] %v421_v42  ;;  %424 = vst [vmem:[%s1587_s8 + $0x158] sm:$0xff] %v423_v43  ;;  %v427_v45 = vld [vmem:[%s1582_s7 + $0x2d0] sm:$0xff] }
  0x2d   : > { %426 = vst [vmem:[%s1587_s8 + $0x160] sm:$0xff] %v425_v44  ;;  %v429_v46 = vld [vmem:[%s1582_s7 + $0x2e0] sm:$0xff]  ;;  %v431_v47 = vld [vmem:[%s1582_s7 + $0x2f0] sm:$0xff]  ;;  %428 = vst [vmem:[%s1587_s8 + $0x168] sm:$0xff] %v427_v45 }
  0x2e   : > { %430 = vst [vmem:[%s1587_s8 + $0x170] sm:$0xff] %v429_v46  ;;  %432 = vst [vmem:[%s1587_s8 + $0x178] sm:$0xff] %v431_v47  ;;  %v433_v48 = vld [vmem:[%s1582_s7 + $0x300] sm:$0xff]  ;;  %v435_v49 = vld [vmem:[%s1582_s7 + $0x310] sm:$0xff] }
  0x2f   : > { %v437_v50 = vld [vmem:[%s1582_s7 + $0x320] sm:$0xff]  ;;  %434 = vst [vmem:[%s1587_s8 + $0x180] sm:$0xff] %v433_v48  ;;  %436 = vst [vmem:[%s1587_s8 + $0x188] sm:$0xff] %v435_v49  ;;  %v439_v51 = vld [vmem:[%s1582_s7 + $0x330] sm:$0xff] }
  0x30   : > { %438 = vst [vmem:[%s1587_s8 + $0x190] sm:$0xff] %v437_v50  ;;  %v441_v52 = vld [vmem:[%s1582_s7 + $0x340] sm:$0xff]  ;;  %v443_v53 = vld [vmem:[%s1582_s7 + $0x350] sm:$0xff]  ;;  %440 = vst [vmem:[%s1587_s8 + $0x198] sm:$0xff] %v439_v51 }
  0x31   : > { %442 = vst [vmem:[%s1587_s8 + $0x1a0] sm:$0xff] %v441_v52  ;;  %444 = vst [vmem:[%s1587_s8 + $0x1a8] sm:$0xff] %v443_v53  ;;  %v445_v54 = vld [vmem:[%s1582_s7 + $0x360] sm:$0xff]  ;;  %v447_v55 = vld [vmem:[%s1582_s7 + $0x370] sm:$0xff] }
  0x32   : > { %v449_v56 = vld [vmem:[%s1582_s7 + $0x380] sm:$0xff]  ;;  %446 = vst [vmem:[%s1587_s8 + $0x1b0] sm:$0xff] %v445_v54  ;;  %448 = vst [vmem:[%s1587_s8 + $0x1b8] sm:$0xff] %v447_v55  ;;  %v451_v57 = vld [vmem:[%s1582_s7 + $0x390] sm:$0xff] }
  0x33   : > { %450 = vst [vmem:[%s1587_s8 + $0x1c0] sm:$0xff] %v449_v56  ;;  %v453_v58 = vld [vmem:[%s1582_s7 + $0x3a0] sm:$0xff]  ;;  %v455_v59 = vld [vmem:[%s1582_s7 + $0x3b0] sm:$0xff]  ;;  %452 = vst [vmem:[%s1587_s8 + $0x1c8] sm:$0xff] %v451_v57 }
  0x34   : > { %454 = vst [vmem:[%s1587_s8 + $0x1d0] sm:$0xff] %v453_v58  ;;  %456 = vst [vmem:[%s1587_s8 + $0x1d8] sm:$0xff] %v455_v59  ;;  %v457_v60 = vld [vmem:[%s1582_s7 + $0x3c0] sm:$0xff]  ;;  %v459_v61 = vld [vmem:[%s1582_s7 + $0x3d0] sm:$0xff] }
  0x35   : > { %v461_v62 = vld [vmem:[%s1582_s7 + $0x3e0] sm:$0xff]  ;;  %458 = vst [vmem:[%s1587_s8 + $0x1e0] sm:$0xff] %v457_v60  ;;  %460 = vst [vmem:[%s1587_s8 + $0x1e8] sm:$0xff] %v459_v61  ;;  %v463_v63 = vld [vmem:[%s1582_s7 + $0x3f0] sm:$0xff] }
  0x36   : > { %462 = vst [vmem:[%s1587_s8 + $0x1f0] sm:$0xff] %v461_v62  ;;  %464 = vst [vmem:[%s1587_s8 + $0x1f8] sm:$0xff] %v463_v63 }
  0x37 PF: > { %p1206_p7 = scmp.ge.s32.totalorder %s1499_s18, 1  ;;  %p477_p8 = scmp.lt.s32.totalorder %s1499_s18, 37 }
  0x39   : > { %p478_p9 = pnand %p1206_p7, %p477_p8 }
  0x3a   : > { %s484_s9 = sand.u32 (!%p478_p9), 1, %s1475_s12   ;;  %s1208_s10 = sshll.u32 (!%p478_p9), %s1483_s14, 2 }
  0x3b   : > { %481 = sbr.rel (%p478_p9) target bundleno = 353 (0x161), region = 66  ;;  %s1207_s11 = sshll.u32 (!%p478_p9), %s484_s9, 9 }
  0x3c   : > { %p527_p10 = scmp.lt.s32.totalorder (!%p478_p9), %s1208_s10, 71  ;;  %s1210_s21 = sshll.u32 (!%p478_p9), %s1487_s15, 1 }
  0x3d   : > { %p537_p11 = scmp.lt.s32.totalorder (!%p478_p9), %s1210_s21, 3  ;;  %s1736_s5 = scalar_lea.vmem (!%p478_p9), [#allocation3], %s1207_s11 }
  0x3e   : > { %p1213_p12 = scmp.ne.s32.totalorder (!%p478_p9), %s1483_s14, 0 }
  0x40   : > { %s1850_s10 = smov (!%p527_p10, %s1208_s10), 71  ;;  %s1852_s21 = smov (!%p537_p11, %s1210_s21), 3 }
  0x41   : > { %s1209_s22 = sshll.u32 %s1850_s10, 2  ;;  %s539_s12 = scalar_lea.vmem %s1835_s2, %s1852_s21 }
  0x42   : > { %s1722_s26 = scalar_lea.vmem %s1833_s0, %s1209_s22  ;;  %s1212_s29 = sshll.u32 %s1852_s21, 2 }
  0x43   : > { %s1734_s15 = scalar_lea.vmem %s1836_s3, %s1212_s29  ;;  %554 = sbr.rel (%p1213_p12) target bundleno = 74 (0x4a), region = 74 }
  0x48   : > { %v1501_v0 = vmov 0.0  }
  0x49   : > { %555 = vst [vmem:[#allocation2] sm:$0xff] %v1501_v0  ;;  %556 = vst [vmem:[#allocation2 + $0x8] sm:$0xff] %v1501_v0 }
  0x4a PF: > { %v1345_v1 = vld [vmem:[%s1736_s5 + $0x74] ss:$8 sps:$4 sm:$0xff]   ;;  %v1349_v3 = vld [vmem:[%s1736_s5 + $0x70] ss:$8 sps:$4 sm:$0xff]   ;;  %v1351_v5 = vld [vmem:[%s1736_s5 + $0x64] ss:$8 sps:$4 sm:$0xff]  }
  0x4b   : > { %v1347_v2 = vld [vmem:[%s1736_s5 + $0x174] ss:$8 sps:$4 sm:$0xff]   ;;  %959 = vmatprep.subr.bf16.mxu0 %v1345_v1  ;;  %v1350_v4 = vld [vmem:[%s1736_s5 + $0x170] ss:$8 sps:$4 sm:$0xff]   ;;  %v1353_v6 = vld [vmem:[%s1736_s5 + $0x164] ss:$8 sps:$4 sm:$0xff]  }
  0x4c   : > { %1000 = vmatprep.subr.bf16.mxu1 %v1347_v2  ;;  %960 = vmatpush1.bf16.msra.mxu0 %v1349_v3  ;;  %v1355_v7 = vld [vmem:[%s1736_s5 + $0x60] ss:$8 sps:$4 sm:$0xff]   ;;  %v1357_v9 = vld [vmem:[%s1736_s5 + $0x54] ss:$8 sps:$4 sm:$0xff]   ;;  %v1361_v11 = vld [vmem:[%s1736_s5 + $0x50] ss:$8 sps:$4 sm:$0xff]  }
  0x4d   : > { %1001 = vmatpush1.bf16.msra.mxu1 %v1350_v4  ;;  %961 = vmatprep.subr.bf16.mxu0 %v1351_v5  ;;  %v1356_v8 = vld [vmem:[%s1736_s5 + $0x160] ss:$8 sps:$4 sm:$0xff]   ;;  %v1359_v10 = vld [vmem:[%s1736_s5 + $0x154] ss:$8 sps:$4 sm:$0xff]   ;;  %v1362_v12 = vld [vmem:[%s1736_s5 + $0x150] ss:$8 sps:$4 sm:$0xff]  }
  0x4e   : > { %1002 = vmatprep.subr.bf16.mxu1 %v1353_v6  ;;  %v1363_v13 = vld [vmem:[%s1736_s5 + $0x44] ss:$8 sps:$4 sm:$0xff]   ;;  %v1367_v15 = vld [vmem:[%s1736_s5 + $0x40] ss:$8 sps:$4 sm:$0xff]   ;;  %v1369_v17 = vld [vmem:[%s1736_s5 + $0x34] ss:$8 sps:$4 sm:$0xff]  }
  0x4f   : > { %v1365_v14 = vld [vmem:[%s1736_s5 + $0x144] ss:$8 sps:$4 sm:$0xff]   ;;  %v1368_v16 = vld [vmem:[%s1736_s5 + $0x140] ss:$8 sps:$4 sm:$0xff]   ;;  %v1371_v18 = vld [vmem:[%s1736_s5 + $0x134] ss:$8 sps:$4 sm:$0xff]  }
  0x50   : > { %962 = vmatpush1.bf16.msra.mxu0 %v1355_v7  ;;  %v1373_v19 = vld [vmem:[%s1736_s5 + $0x30] ss:$8 sps:$4 sm:$0xff]   ;;  %v1375_v21 = vld [vmem:[%s1736_s5 + $0x24] ss:$8 sps:$4 sm:$0xff]   ;;  %v1379_v23 = vld [vmem:[%s1736_s5 + $0x20] ss:$8 sps:$4 sm:$0xff]  }
  0x51   : > { %1003 = vmatpush1.bf16.msra.mxu1 %v1356_v8  ;;  %963 = vmatprep.subr.bf16.mxu0 %v1357_v9  ;;  %v1374_v20 = vld [vmem:[%s1736_s5 + $0x130] ss:$8 sps:$4 sm:$0xff]   ;;  %v1377_v22 = vld [vmem:[%s1736_s5 + $0x124] ss:$8 sps:$4 sm:$0xff]   ;;  %v1380_v24 = vld [vmem:[%s1736_s5 + $0x120] ss:$8 sps:$4 sm:$0xff]  }
  0x52   : > { %1004 = vmatprep.subr.bf16.mxu1 %v1359_v10  ;;  %v1381_v25 = vld [vmem:[%s1736_s5 + $0x14] ss:$8 sps:$4 sm:$0xff]   ;;  %v1385_v27 = vld [vmem:[%s1736_s5 + $0x10] ss:$8 sps:$4 sm:$0xff]   ;;  %v1387_v29 = vld [vmem:[%s1736_s5 + $0x4] ss:$8 sps:$4 sm:$0xff]  }
  0x53   : > { %v1383_v26 = vld [vmem:[%s1736_s5 + $0x114] ss:$8 sps:$4 sm:$0xff]   ;;  %v1386_v28 = vld [vmem:[%s1736_s5 + $0x110] ss:$8 sps:$4 sm:$0xff]   ;;  %v1389_v30 = vld [vmem:[%s1736_s5 + $0x104] ss:$8 sps:$4 sm:$0xff]  }
  0x54   : > { %964 = vmatpush1.bf16.msra.mxu0 %v1361_v11  ;;  %v1391_v31 = vld [vmem:[%s1736_s5] ss:$8 sps:$4 sm:$0xff]   ;;  %v1393_v33 = vld [vmem:[%s1736_s5 + $0xf4] ss:$8 sps:$4 sm:$0xff]   ;;  %v1397_v35 = vld [vmem:[%s1736_s5 + $0xf0] ss:$8 sps:$4 sm:$0xff]  }
  0x55   : > { %1005 = vmatpush1.bf16.msra.mxu1 %v1362_v12  ;;  %965 = vmatprep.subr.bf16.mxu0 %v1363_v13  ;;  %v1392_v32 = vld [vmem:[%s1736_s5 + $0x100] ss:$8 sps:$4 sm:$0xff]   ;;  %v1395_v34 = vld [vmem:[%s1736_s5 + $0x1f4] ss:$8 sps:$4 sm:$0xff]   ;;  %v1398_v36 = vld [vmem:[%s1736_s5 + $0x1f0] ss:$8 sps:$4 sm:$0xff]  }
  0x56   : > { %1006 = vmatprep.subr.bf16.mxu1 %v1365_v14  ;;  %v1399_v37 = vld [vmem:[%s1736_s5 + $0xe4] ss:$8 sps:$4 sm:$0xff]   ;;  %v1403_v39 = vld [vmem:[%s1736_s5 + $0xe0] ss:$8 sps:$4 sm:$0xff]   ;;  %v1405_v41 = vld [vmem:[%s1736_s5 + $0xd4] ss:$8 sps:$4 sm:$0xff]  }
  0x57   : > { %v1401_v38 = vld [vmem:[%s1736_s5 + $0x1e4] ss:$8 sps:$4 sm:$0xff]   ;;  %v1404_v40 = vld [vmem:[%s1736_s5 + $0x1e0] ss:$8 sps:$4 sm:$0xff]   ;;  %v1407_v42 = vld [vmem:[%s1736_s5 + $0x1d4] ss:$8 sps:$4 sm:$0xff]  }
  0x58   : > { %966 = vmatpush1.bf16.msra.mxu0 %v1367_v15  ;;  %v1409_v43 = vld [vmem:[%s1736_s5 + $0xd0] ss:$8 sps:$4 sm:$0xff]   ;;  %v1411_v45 = vld [vmem:[%s1736_s5 + $0xc4] ss:$8 sps:$4 sm:$0xff]   ;;  %v1415_v50 = vld [vmem:[%s1736_s5 + $0xc0] ss:$8 sps:$4 sm:$0xff]  }
  0x59   : > { %1007 = vmatpush1.bf16.msra.mxu1 %v1368_v16  ;;  %967 = vmatprep.subr.bf16.mxu0 %v1369_v17  ;;  %v1410_v44 = vld [vmem:[%s1736_s5 + $0x1d0] ss:$8 sps:$4 sm:$0xff]   ;;  %v1413_v46 = vld [vmem:[%s1736_s5 + $0x1c4] ss:$8 sps:$4 sm:$0xff]   ;;  %v1416_v51 = vld [vmem:[%s1736_s5 + $0x1c0] ss:$8 sps:$4 sm:$0xff]  }
  0x5a   : > { %1008 = vmatprep.subr.bf16.mxu1 %v1371_v18  ;;  %v559_v47 = vld [vmem:[%s1722_s26] sm:$0xff]  ;;  %v560_v49 = vld [vmem:[%s1722_s26 + $0x8] sm:$0xff]  ;;  %v1423_v57 = vld [vmem:[%s1736_s5 + $0xa4] ss:$8 sps:$4 sm:$0xff]   ;;  %p1282_p13 = scmp.ne.s32.totalorder %s1483_s14, 17 }
  0x5b   : > { %v1215_v48 = vcombine.high %v559_v47, %v559_v47  ;;  %v1217_v52 = vcombine.high %v560_v49, %v560_v49  ;;  %v1417_v53 = vld [vmem:[%s1736_s5 + $0xb4] ss:$8 sps:$4 sm:$0xff]   ;;  %v1421_v55 = vld [vmem:[%s1736_s5 + $0xb0] ss:$8 sps:$4 sm:$0xff]   ;;  %v1425_v58 = vld [vmem:[%s1736_s5 + $0x1a4] ss:$8 sps:$4 sm:$0xff]   ;;  %v1214_v5 = vcombine.low %v559_v47, %v559_v47  ;;  %v1216_v6 = vcombine.low %v560_v49, %v560_v49 }
  0x5c   : > { %968 = vmatpush1.bf16.msra.mxu0 %v1373_v19  ;;  %v1419_v54 = vld [vmem:[%s1736_s5 + $0x1b4] ss:$8 sps:$4 sm:$0xff]   ;;  %v1422_v56 = vld [vmem:[%s1736_s5 + $0x1b0] ss:$8 sps:$4 sm:$0xff]   ;;  %v1427_v59 = vld [vmem:[%s1736_s5 + $0xa0] ss:$8 sps:$4 sm:$0xff]  }
  0x5d   : > { %1009 = vmatpush1.bf16.msra.mxu1 %v1374_v20  ;;  %969 = vmatprep.subr.bf16.mxu0 %v1375_v21  ;;  %v1428_v60 = vld [vmem:[%s1736_s5 + $0x1a0] ss:$8 sps:$4 sm:$0xff]   ;;  %v1429_v61 = vld [vmem:[%s1736_s5 + $0x94] ss:$8 sps:$4 sm:$0xff]   ;;  %v1433_v63 = vld [vmem:[%s1736_s5 + $0x90] ss:$8 sps:$4 sm:$0xff]  }
  0x5e   : > { %1010 = vmatprep.subr.bf16.mxu1 %v1377_v22  ;;  %991 = vmatprep.mubr.bf16.mxu0 %v1215_v48  ;;  %v1431_v62 = vld [vmem:[%s1736_s5 + $0x194] ss:$8 sps:$4 sm:$0xff]   ;;  %v1434_v0 = vld [vmem:[%s1736_s5 + $0x190] ss:$8 sps:$4 sm:$0xff]   ;;  %v1435_v1 = vld [vmem:[%s1736_s5 + $0x84] ss:$8 sps:$4 sm:$0xff]  }
  0x5f   : > { %1032 = vmatprep.mubr.bf16.mxu1 %v1217_v52  ;;  %v1437_v2 = vld [vmem:[%s1736_s5 + $0x184] ss:$8 sps:$4 sm:$0xff]   ;;  %v1439_v3 = vld [vmem:[%s1736_s5 + $0x80] ss:$8 sps:$4 sm:$0xff]   ;;  %v557_v8 = vld [vmem:[#allocation2] sm:$0xff] }
  0x60   : > { %970 = vmatpush1.bf16.msra.mxu0 %v1379_v23  ;;  %v1440_v4 = vld [vmem:[%s1736_s5 + $0x180] ss:$8 sps:$4 sm:$0xff]   ;;  %v558_v12 = vld [vmem:[#allocation2 + $0x8] sm:$0xff] }
  0x61   : > { %1011 = vmatpush1.bf16.msra.mxu1 %v1380_v24  ;;  %971 = vmatprep.subr.bf16.mxu0 %v1381_v25 }
  0x62   : > { %1012 = vmatprep.subr.bf16.mxu1 %v1383_v26 }
  0x64   : > { %972 = vmatpush1.bf16.msra.mxu0 %v1385_v27 }
  0x65   : > { %1013 = vmatpush1.bf16.msra.mxu1 %v1386_v28  ;;  %973 = vmatprep.subr.bf16.mxu0 %v1387_v29 }
  0x66   : > { %1014 = vmatprep.subr.bf16.mxu1 %v1389_v30 }
  0x68   : > { %974 = vmatpush1.bf16.msra.mxu0 %v1391_v31 }
  0x69   : > { %1015 = vmatpush1.bf16.msra.mxu1 %v1392_v32  ;;  %975 = vmatprep.subr.bf16.mxu0 %v1393_v33 }
  0x6a   : > { %1016 = vmatprep.subr.bf16.mxu1 %v1395_v34 }
  0x6c   : > { %976 = vmatpush2.bf16.msra.mxu0 %v1397_v35 }
  0x6d   : > { %1017 = vmatpush2.bf16.msra.mxu1 %v1398_v36  ;;  %977 = vmatprep.subr.bf16.mxu0 %v1399_v37 }
  0x6e   : > { %1018 = vmatprep.subr.bf16.mxu1 %v1401_v38 }
  0x70   : > { %978 = vmatpush2.bf16.msra.mxu0 %v1403_v39 }
  0x71   : > { %1019 = vmatpush2.bf16.msra.mxu1 %v1404_v40  ;;  %979 = vmatprep.subr.bf16.mxu0 %v1405_v41 }
  0x72   : > { %1020 = vmatprep.subr.bf16.mxu1 %v1407_v42 }
  0x74   : > { %980 = vmatpush2.bf16.msra.mxu0 %v1409_v43 }
  0x75   : > { %1021 = vmatpush2.bf16.msra.mxu1 %v1410_v44  ;;  %981 = vmatprep.subr.bf16.mxu0 %v1411_v45 }
  0x76   : > { %1022 = vmatprep.subr.bf16.mxu1 %v1413_v46 }
  0x78   : > { %982 = vmatpush2.bf16.msra.mxu0 %v1415_v50 }
  0x79   : > { %1023 = vmatpush2.bf16.msra.mxu1 %v1416_v51  ;;  %983 = vmatprep.subr.bf16.mxu0 %v1417_v53 }
  0x7a   : > { %1024 = vmatprep.subr.bf16.mxu1 %v1419_v54 }
  0x7c   : > { %984 = vmatpush2.bf16.msra.mxu0 %v1421_v55 }
  0x7d   : > { %1025 = vmatpush2.bf16.msra.mxu1 %v1422_v56  ;;  %985 = vmatprep.subr.bf16.mxu0 %v1423_v57 }
  0x7e   : > { %1026 = vmatprep.subr.bf16.mxu1 %v1425_v58 }
  0x80   : > { %986 = vmatpush2.bf16.msra.mxu0 %v1427_v59 }
  0x81   : > { %1027 = vmatpush2.bf16.msra.mxu1 %v1428_v60  ;;  %987 = vmatprep.subr.bf16.mxu0 %v1429_v61 }
  0x82   : > { %1028 = vmatprep.subr.bf16.mxu1 %v1431_v62 }
  0x84   : > { %988 = vmatpush2.bf16.msra.mxu0 %v1433_v63 }
  0x85   : > { %1029 = vmatpush2.bf16.msra.mxu1 %v1434_v0  ;;  %989 = vmatprep.subr.bf16.mxu0 %v1435_v1 }
  0x86   : > { %1030 = vmatprep.subr.bf16.mxu1 %v1437_v2 }
  0x88   : > { %990 = vmatpush2.bf16.msra.mxu0 %v1439_v3 }
  0x89   : > { %1031 = vmatpush2.bf16.msra.mxu1 %v1440_v4 }
  0x8b   : > { %992 = vmatmul.mubr.bf16.vlgmr.msra.gmra.mxu0 %v1214_v5 }
  0x8c   : > { %1033 = vmatmul.mubr.bf16.vlgmr.msra.gmra.mxu1 %v1216_v6 }
 0x14b   : > { %v993_v7 = vpop.f32.mrf.mxu0 }
 0x14c   : > { %v1034_v9 = vpop.f32.mrf.mxu1 }
 0x14d   : > { %v1035_v10 = vadd.f32 %v1034_v9, %v993_v7  ;;  %v995_v11 = vpop.f32.mrf.mxu0 }
 0x14e   : > { %v1036_v13 = vpop.f32.mrf.mxu1 }
 0x14f   : > { %v1041_v14 = vadd.f32 %v1035_v10, %v557_v8  ;;  %v1037_v15 = vadd.f32 %v1036_v13, %v995_v11  ;;  %v997_v16 = vpop.f32.mrf.mxu0  ;;  %1048 = sbr.rel (%p1282_p13) target bundleno = 353 (0x161), region = 78 }
 0x150   : > { %v1038_v17 = vpop.f32.mrf.mxu1 }
 0x151   : > { %1043 = vst [vmem:[#allocation2] sm:$0xff] %v1041_v14  ;;  %v1042_v18 = vadd.f32 %v1037_v15, %v558_v12  ;;  %v998_v19 = vpop.f32.mrf.mxu0 }
 0x152   : > { %v1039_v20 = vpop.f32.mrf.mxu1 }
 0x153   : > { %1044 = vst [vmem:[#allocation2 + $0x8] sm:$0xff] %v1042_v18 }
 0x154   : > { %v1053_v21 = vlaneseq  ;;  %v1051_v23 = vld [vmem:[%s539_s12] sm:$0x3] }
 0x156   : > { %v1054_v22 = vshrl.u32 %v1053_v21, 7 }
 0x158   : > { %v1055_v24 = vsub.s32 0, %v1054_v22  ;;  %v1059_v25 = vsub.s32 1, %v1054_v22  ;;  %v1049_v26 = vld [vmem:[#allocation2] sm:$0xff] }
 0x15a   : > { %v1050_v27 = vld [vmem:[#allocation2 + $0x8] sm:$0xff]  ;;  %v1056_v28 = vrot.slane %v1051_v23, %v1055_v24  ;;  %v1060_v29 = vrot.slane %v1051_v23, %v1059_v25 }
 0x15c   : > { %v1063_v30 = vadd.f32 %v1056_v28, %v1049_v26  ;;  %v1064_v31 = vadd.f32 %v1060_v29, %v1050_v27 }
 0x15e   : > { %v1287_v32 = vpack.c.bf16 %v1064_v31, %v1063_v30 }
 0x160   : > { %1073 = vst [vmem:[%s1734_s15] sm:$0xff] %v1287_v32 }
 0x161 PF: > { %s13_s18 = sadd.s32 1, %s1499_s18   ;;  %s1837_s12 = smov %s1479_s13 }
 0x162   : > { %p10_p0 = scmp.ge.s32.totalorder %s13_s18, 38   ;;  %s1838_s13 = smov %s1573_s25 }
 0x163   : > { %s1839_s14 = smov %s1491_s16  ;;  %s1840_s15 = smov %s1495_s17 }
 0x164   : > { %s1841_s16 = smov %s1844_s19  ;;  %s1842_s17 = smov %s1848_s20 }
 0x165   :  { %12 = sbr.rel (!%p10_p0) target bundleno = 4 (0x4), region = 119 }

// kernel: brixcolornet_forward.11
= control target key start
LH: loop header
LB: loop body
LE: loop exit
PB: predicated region body
PF: predicated region fallthrough
CT: control target
= control target key end

     0   :  { %s2171_s12 = smov 0   ;;  %s2173_s13 = smov 0   ;;  %s2687_s0 = inlined_call_operand.vmem [shape: bf16[8,4608], index: 0, kind: input, shape index: {}]   ;;  %s2688_s1 = inlined_call_operand.vmem [shape: bf16[4608,1024], index: 1, kind: input, shape index: {}]   ;;  %s2689_s2 = inlined_call_operand.vmem [shape: f32[1,1024], index: 2, kind: input, shape index: {}]   ;;  %s2690_s3 = inlined_call_operand.vmem [shape: bf16[8,1024], index: 3, kind: output, shape index: {}]  }
   0x1   :  { %s2175_s14 = smov 0   ;;  %s2177_s15 = smov 0  }
   0x2   :  { %s2179_s16 = smov 0   ;;  %s2181_s17 = smov 0  }
   0x3   :  { %s2183_s18 = smov 0  }
   0x4 LB: > { %s25_s19 = sadd.s32 1, %s2140_s16  ;;  %s28_s20 = sadd.s32 1, %s2144_s17  ;;  %s2148_s18 = sphi %s2183_s18, %s13_s18   ;;  %s2144_s17 = sphi %s2181_s17, %s2696_s17   ;;  %s2140_s16 = sphi %s2179_s16, %s2695_s16   ;;  %s2136_s15 = sphi %s2177_s15, %s2694_s15   ;;  %s2132_s14 = sphi %s2175_s14, %s2693_s14   ;;  %s2128_s13 = sphi %s2173_s13, %s2692_s13   ;;  %s2124_s12 = sphi %s2171_s12, %s2691_s12  }
   0x5   : > { %p26_p0 = scmp.ge.s32.totalorder %s25_s19, 9  ;;  %p76_p1 = scmp.ne.s32.totalorder %s2128_s13, %s2124_s12 }
   0x6   : > { %p77_p2 = scmp.eq.s32.totalorder %s2148_s18, 0  ;;  %s69_s24 = sadd.s32 1, %s2128_s13 }
   0x7   : > { %s2698_s19 = smov (%p26_p0, %s25_s19), 0  ;;  %s2700_s20 = smov (!%p26_p0, %s28_s20), %s2144_s17 }
   0x8   : > { %p78_p3 = por %p77_p2, %p76_p1  ;;  %p30_p4 = scmp.ge.s32.totalorder %s2700_s20, 2 }
   0x9   : > { %s64_s21 = ssub.s32 %s2140_s16, %s2698_s19  ;;  %p1687_p6 = scmp.ge.s32.totalorder %s2148_s18, 18 }
   0xa   : > { %s2702_s20 = smov (%p30_p4, %s2700_s20), 0 }
   0xb   : > { %s65_s22 = ssub.s32 %s2144_s17, %s2702_s20  ;;  %156 = sbr.rel (%p1687_p6) target bundleno = 87 (0x57), region = 16 }
   0xc   : > { %s66_s23 = sor.u32 %s65_s22, %s64_s21 }
   0xd   : > { %p67_p5 = scmp.eq.s32.totalorder %s66_s23, 0 }
   0xf   : > { %s2222_s25 = scalar_select %p67_p5, %s2128_s13, %s69_s24  }
  0x10   : > { %172 = sbr.rel (!%p78_p3) target bundleno = 87 (0x57), region = 24  ;;  %s174_s26 = sand.u32 (%p78_p3), 1, %s2128_s13  }
  0x11   : > { %s1690_s27 = sshll.u32 (%p78_p3), %s2144_s17, 2  ;;  %s1688_s28 = sshll.u32 (%p78_p3), %s174_s26, 10 }
  0x12   : > { %s1838_s29 = sshll.u32 (%p78_p3), %s2140_s16, 9  ;;  %s2236_s8 = scalar_lea.vmem (%p78_p3), [#allocation3], %s1688_s28 }
  0x13   : > { %s180_s30 = sadd.s32 (%p78_p3), %s1838_s29, %s1690_s27 }
  0x14   : > { %s1692_s4 = sshll.u32 (%p78_p3), %s180_s30, 2 }
  0x15   : > { %s2231_s7 = scalar_lea.vmem %s2688_s1, %s1692_s4 }
  0x16   : > { %v195_v0 = vld [vmem:[%s2231_s7] sm:$0xff]  ;;  %v197_v1 = vld [vmem:[%s2231_s7 + $0x8] sm:$0xff] }
  0x17   : > { %v199_v2 = vld [vmem:[%s2231_s7 + $0x20] sm:$0xff]  ;;  %196 = vst [vmem:[%s2236_s8] sm:$0xff] %v195_v0  ;;  %198 = vst [vmem:[%s2236_s8 + $0x8] sm:$0xff] %v197_v1  ;;  %v201_v3 = vld [vmem:[%s2231_s7 + $0x28] sm:$0xff] }
  0x18   : > { %200 = vst [vmem:[%s2236_s8 + $0x10] sm:$0xff] %v199_v2  ;;  %v203_v4 = vld [vmem:[%s2231_s7 + $0x40] sm:$0xff]  ;;  %v205_v5 = vld [vmem:[%s2231_s7 + $0x48] sm:$0xff]  ;;  %202 = vst [vmem:[%s2236_s8 + $0x18] sm:$0xff] %v201_v3 }
  0x19   : > { %204 = vst [vmem:[%s2236_s8 + $0x20] sm:$0xff] %v203_v4  ;;  %206 = vst [vmem:[%s2236_s8 + $0x28] sm:$0xff] %v205_v5  ;;  %v207_v6 = vld [vmem:[%s2231_s7 + $0x60] sm:$0xff]  ;;  %v209_v7 = vld [vmem:[%s2231_s7 + $0x68] sm:$0xff] }
  0x1a   : > { %v211_v8 = vld [vmem:[%s2231_s7 + $0x80] sm:$0xff]  ;;  %208 = vst [vmem:[%s2236_s8 + $0x30] sm:$0xff] %v207_v6  ;;  %210 = vst [vmem:[%s2236_s8 + $0x38] sm:$0xff] %v209_v7  ;;  %v213_v9 = vld [vmem:[%s2231_s7 + $0x88] sm:$0xff] }
  0x1b   : > { %212 = vst [vmem:[%s2236_s8 + $0x40] sm:$0xff] %v211_v8  ;;  %v215_v10 = vld [vmem:[%s2231_s7 + $0xa0] sm:$0xff]  ;;  %v217_v11 = vld [vmem:[%s2231_s7 + $0xa8] sm:$0xff]  ;;  %214 = vst [vmem:[%s2236_s8 + $0x48] sm:$0xff] %v213_v9 }
  0x1c   : > { %216 = vst [vmem:[%s2236_s8 + $0x50] sm:$0xff] %v215_v10  ;;  %218 = vst [vmem:[%s2236_s8 + $0x58] sm:$0xff] %v217_v11  ;;  %v219_v12 = vld [vmem:[%s2231_s7 + $0xc0] sm:$0xff]  ;;  %v221_v13 = vld [vmem:[%s2231_s7 + $0xc8] sm:$0xff] }
  0x1d   : > { %v223_v14 = vld [vmem:[%s2231_s7 + $0xe0] sm:$0xff]  ;;  %220 = vst [vmem:[%s2236_s8 + $0x60] sm:$0xff] %v219_v12  ;;  %222 = vst [vmem:[%s2236_s8 + $0x68] sm:$0xff] %v221_v13  ;;  %v225_v15 = vld [vmem:[%s2231_s7 + $0xe8] sm:$0xff] }
  0x1e   : > { %224 = vst [vmem:[%s2236_s8 + $0x70] sm:$0xff] %v223_v14  ;;  %v227_v16 = vld [vmem:[%s2231_s7 + $0x100] sm:$0xff]  ;;  %v229_v17 = vld [vmem:[%s2231_s7 + $0x108] sm:$0xff]  ;;  %226 = vst [vmem:[%s2236_s8 + $0x78] sm:$0xff] %v225_v15 }
  0x1f   : > { %228 = vst [vmem:[%s2236_s8 + $0x80] sm:$0xff] %v227_v16  ;;  %230 = vst [vmem:[%s2236_s8 + $0x88] sm:$0xff] %v229_v17  ;;  %v231_v18 = vld [vmem:[%s2231_s7 + $0x120] sm:$0xff]  ;;  %v233_v19 = vld [vmem:[%s2231_s7 + $0x128] sm:$0xff] }
  0x20   : > { %v235_v20 = vld [vmem:[%s2231_s7 + $0x140] sm:$0xff]  ;;  %232 = vst [vmem:[%s2236_s8 + $0x90] sm:$0xff] %v231_v18  ;;  %234 = vst [vmem:[%s2236_s8 + $0x98] sm:$0xff] %v233_v19  ;;  %v237_v21 = vld [vmem:[%s2231_s7 + $0x148] sm:$0xff] }
  0x21   : > { %236 = vst [vmem:[%s2236_s8 + $0xa0] sm:$0xff] %v235_v20  ;;  %v239_v22 = vld [vmem:[%s2231_s7 + $0x160] sm:$0xff]  ;;  %v241_v23 = vld [vmem:[%s2231_s7 + $0x168] sm:$0xff]  ;;  %238 = vst [vmem:[%s2236_s8 + $0xa8] sm:$0xff] %v237_v21 }
  0x22   : > { %240 = vst [vmem:[%s2236_s8 + $0xb0] sm:$0xff] %v239_v22  ;;  %242 = vst [vmem:[%s2236_s8 + $0xb8] sm:$0xff] %v241_v23  ;;  %v243_v24 = vld [vmem:[%s2231_s7 + $0x180] sm:$0xff]  ;;  %v245_v25 = vld [vmem:[%s2231_s7 + $0x188] sm:$0xff] }
  0x23   : > { %v247_v26 = vld [vmem:[%s2231_s7 + $0x1a0] sm:$0xff]  ;;  %244 = vst [vmem:[%s2236_s8 + $0xc0] sm:$0xff] %v243_v24  ;;  %246 = vst [vmem:[%s2236_s8 + $0xc8] sm:$0xff] %v245_v25  ;;  %v249_v27 = vld [vmem:[%s2231_s7 + $0x1a8] sm:$0xff] }
  0x24   : > { %248 = vst [vmem:[%s2236_s8 + $0xd0] sm:$0xff] %v247_v26  ;;  %v251_v28 = vld [vmem:[%s2231_s7 + $0x1c0] sm:$0xff]  ;;  %v253_v29 = vld [vmem:[%s2231_s7 + $0x1c8] sm:$0xff]  ;;  %250 = vst [vmem:[%s2236_s8 + $0xd8] sm:$0xff] %v249_v27 }
  0x25   : > { %252 = vst [vmem:[%s2236_s8 + $0xe0] sm:$0xff] %v251_v28  ;;  %254 = vst [vmem:[%s2236_s8 + $0xe8] sm:$0xff] %v253_v29  ;;  %v255_v30 = vld [vmem:[%s2231_s7 + $0x1e0] sm:$0xff]  ;;  %v257_v31 = vld [vmem:[%s2231_s7 + $0x1e8] sm:$0xff] }
  0x26   : > { %v259_v32 = vld [vmem:[%s2231_s7 + $0x200] sm:$0xff]  ;;  %256 = vst [vmem:[%s2236_s8 + $0xf0] sm:$0xff] %v255_v30  ;;  %258 = vst [vmem:[%s2236_s8 + $0xf8] sm:$0xff] %v257_v31  ;;  %v261_v33 = vld [vmem:[%s2231_s7 + $0x208] sm:$0xff] }
  0x27   : > { %260 = vst [vmem:[%s2236_s8 + $0x100] sm:$0xff] %v259_v32  ;;  %v263_v34 = vld [vmem:[%s2231_s7 + $0x220] sm:$0xff]  ;;  %v265_v35 = vld [vmem:[%s2231_s7 + $0x228] sm:$0xff]  ;;  %262 = vst [vmem:[%s2236_s8 + $0x108] sm:$0xff] %v261_v33 }
  0x28   : > { %264 = vst [vmem:[%s2236_s8 + $0x110] sm:$0xff] %v263_v34  ;;  %266 = vst [vmem:[%s2236_s8 + $0x118] sm:$0xff] %v265_v35  ;;  %v267_v36 = vld [vmem:[%s2231_s7 + $0x240] sm:$0xff]  ;;  %v269_v37 = vld [vmem:[%s2231_s7 + $0x248] sm:$0xff] }
  0x29   : > { %v271_v38 = vld [vmem:[%s2231_s7 + $0x260] sm:$0xff]  ;;  %268 = vst [vmem:[%s2236_s8 + $0x120] sm:$0xff] %v267_v36  ;;  %270 = vst [vmem:[%s2236_s8 + $0x128] sm:$0xff] %v269_v37  ;;  %v273_v39 = vld [vmem:[%s2231_s7 + $0x268] sm:$0xff] }
  0x2a   : > { %272 = vst [vmem:[%s2236_s8 + $0x130] sm:$0xff] %v271_v38  ;;  %v275_v40 = vld [vmem:[%s2231_s7 + $0x280] sm:$0xff]  ;;  %v277_v41 = vld [vmem:[%s2231_s7 + $0x288] sm:$0xff]  ;;  %274 = vst [vmem:[%s2236_s8 + $0x138] sm:$0xff] %v273_v39 }
  0x2b   : > { %276 = vst [vmem:[%s2236_s8 + $0x140] sm:$0xff] %v275_v40  ;;  %278 = vst [vmem:[%s2236_s8 + $0x148] sm:$0xff] %v277_v41  ;;  %v279_v42 = vld [vmem:[%s2231_s7 + $0x2a0] sm:$0xff]  ;;  %v281_v43 = vld [vmem:[%s2231_s7 + $0x2a8] sm:$0xff] }
  0x2c   : > { %v283_v44 = vld [vmem:[%s2231_s7 + $0x2c0] sm:$0xff]  ;;  %280 = vst [vmem:[%s2236_s8 + $0x150] sm:$0xff] %v279_v42  ;;  %282 = vst [vmem:[%s2236_s8 + $0x158] sm:$0xff] %v281_v43  ;;  %v285_v45 = vld [vmem:[%s2231_s7 + $0x2c8] sm:$0xff] }
  0x2d   : > { %284 = vst [vmem:[%s2236_s8 + $0x160] sm:$0xff] %v283_v44  ;;  %v287_v46 = vld [vmem:[%s2231_s7 + $0x2e0] sm:$0xff]  ;;  %v289_v47 = vld [vmem:[%s2231_s7 + $0x2e8] sm:$0xff]  ;;  %286 = vst [vmem:[%s2236_s8 + $0x168] sm:$0xff] %v285_v45 }
  0x2e   : > { %288 = vst [vmem:[%s2236_s8 + $0x170] sm:$0xff] %v287_v46  ;;  %290 = vst [vmem:[%s2236_s8 + $0x178] sm:$0xff] %v289_v47  ;;  %v291_v48 = vld [vmem:[%s2231_s7 + $0x300] sm:$0xff]  ;;  %v293_v49 = vld [vmem:[%s2231_s7 + $0x308] sm:$0xff] }
  0x2f   : > { %v295_v50 = vld [vmem:[%s2231_s7 + $0x320] sm:$0xff]  ;;  %292 = vst [vmem:[%s2236_s8 + $0x180] sm:$0xff] %v291_v48  ;;  %294 = vst [vmem:[%s2236_s8 + $0x188] sm:$0xff] %v293_v49  ;;  %v297_v51 = vld [vmem:[%s2231_s7 + $0x328] sm:$0xff] }
  0x30   : > { %296 = vst [vmem:[%s2236_s8 + $0x190] sm:$0xff] %v295_v50  ;;  %v299_v52 = vld [vmem:[%s2231_s7 + $0x340] sm:$0xff]  ;;  %v301_v53 = vld [vmem:[%s2231_s7 + $0x348] sm:$0xff]  ;;  %298 = vst [vmem:[%s2236_s8 + $0x198] sm:$0xff] %v297_v51 }
  0x31   : > { %300 = vst [vmem:[%s2236_s8 + $0x1a0] sm:$0xff] %v299_v52  ;;  %302 = vst [vmem:[%s2236_s8 + $0x1a8] sm:$0xff] %v301_v53  ;;  %v303_v54 = vld [vmem:[%s2231_s7 + $0x360] sm:$0xff]  ;;  %v305_v55 = vld [vmem:[%s2231_s7 + $0x368] sm:$0xff] }
  0x32   : > { %v307_v56 = vld [vmem:[%s2231_s7 + $0x380] sm:$0xff]  ;;  %304 = vst [vmem:[%s2236_s8 + $0x1b0] sm:$0xff] %v303_v54  ;;  %306 = vst [vmem:[%s2236_s8 + $0x1b8] sm:$0xff] %v305_v55  ;;  %v309_v57 = vld [vmem:[%s2231_s7 + $0x388] sm:$0xff] }
  0x33   : > { %308 = vst [vmem:[%s2236_s8 + $0x1c0] sm:$0xff] %v307_v56  ;;  %v311_v58 = vld [vmem:[%s2231_s7 + $0x3a0] sm:$0xff]  ;;  %v313_v59 = vld [vmem:[%s2231_s7 + $0x3a8] sm:$0xff]  ;;  %310 = vst [vmem:[%s2236_s8 + $0x1c8] sm:$0xff] %v309_v57 }
  0x34   : > { %312 = vst [vmem:[%s2236_s8 + $0x1d0] sm:$0xff] %v311_v58  ;;  %314 = vst [vmem:[%s2236_s8 + $0x1d8] sm:$0xff] %v313_v59  ;;  %v315_v60 = vld [vmem:[%s2231_s7 + $0x3c0] sm:$0xff]  ;;  %v317_v61 = vld [vmem:[%s2231_s7 + $0x3c8] sm:$0xff] }
  0x35   : > { %v319_v62 = vld [vmem:[%s2231_s7 + $0x3e0] sm:$0xff]  ;;  %316 = vst [vmem:[%s2236_s8 + $0x1e0] sm:$0xff] %v315_v60  ;;  %318 = vst [vmem:[%s2236_s8 + $0x1e8] sm:$0xff] %v317_v61  ;;  %v321_v63 = vld [vmem:[%s2231_s7 + $0x3e8] sm:$0xff] }
  0x36   : > { %320 = vst [vmem:[%s2236_s8 + $0x1f0] sm:$0xff] %v319_v62  ;;  %v323_v0 = vld [vmem:[%s2231_s7 + $0x400] sm:$0xff]  ;;  %v325_v1 = vld [vmem:[%s2231_s7 + $0x408] sm:$0xff]  ;;  %322 = vst [vmem:[%s2236_s8 + $0x1f8] sm:$0xff] %v321_v63 }
  0x37   : > { %324 = vst [vmem:[%s2236_s8 + $0x200] sm:$0xff] %v323_v0  ;;  %326 = vst [vmem:[%s2236_s8 + $0x208] sm:$0xff] %v325_v1  ;;  %v327_v2 = vld [vmem:[%s2231_s7 + $0x420] sm:$0xff]  ;;  %v329_v3 = vld [vmem:[%s2231_s7 + $0x428] sm:$0xff] }
  0x38   : > { %v331_v4 = vld [vmem:[%s2231_s7 + $0x440] sm:$0xff]  ;;  %328 = vst [vmem:[%s2236_s8 + $0x210] sm:$0xff] %v327_v2  ;;  %330 = vst [vmem:[%s2236_s8 + $0x218] sm:$0xff] %v329_v3  ;;  %v333_v5 = vld [vmem:[%s2231_s7 + $0x448] sm:$0xff] }
  0x39   : > { %332 = vst [vmem:[%s2236_s8 + $0x220] sm:$0xff] %v331_v4  ;;  %v335_v6 = vld [vmem:[%s2231_s7 + $0x460] sm:$0xff]  ;;  %v337_v7 = vld [vmem:[%s2231_s7 + $0x468] sm:$0xff]  ;;  %334 = vst [vmem:[%s2236_s8 + $0x228] sm:$0xff] %v333_v5 }
  0x3a   : > { %336 = vst [vmem:[%s2236_s8 + $0x230] sm:$0xff] %v335_v6  ;;  %338 = vst [vmem:[%s2236_s8 + $0x238] sm:$0xff] %v337_v7  ;;  %v339_v8 = vld [vmem:[%s2231_s7 + $0x480] sm:$0xff]  ;;  %v341_v9 = vld [vmem:[%s2231_s7 + $0x488] sm:$0xff] }
  0x3b   : > { %v343_v10 = vld [vmem:[%s2231_s7 + $0x4a0] sm:$0xff]  ;;  %340 = vst [vmem:[%s2236_s8 + $0x240] sm:$0xff] %v339_v8  ;;  %342 = vst [vmem:[%s2236_s8 + $0x248] sm:$0xff] %v341_v9  ;;  %v345_v11 = vld [vmem:[%s2231_s7 + $0x4a8] sm:$0xff] }
  0x3c   : > { %344 = vst [vmem:[%s2236_s8 + $0x250] sm:$0xff] %v343_v10  ;;  %v347_v12 = vld [vmem:[%s2231_s7 + $0x4c0] sm:$0xff]  ;;  %v349_v13 = vld [vmem:[%s2231_s7 + $0x4c8] sm:$0xff]  ;;  %346 = vst [vmem:[%s2236_s8 + $0x258] sm:$0xff] %v345_v11 }
  0x3d   : > { %348 = vst [vmem:[%s2236_s8 + $0x260] sm:$0xff] %v347_v12  ;;  %350 = vst [vmem:[%s2236_s8 + $0x268] sm:$0xff] %v349_v13  ;;  %v351_v14 = vld [vmem:[%s2231_s7 + $0x4e0] sm:$0xff]  ;;  %v353_v15 = vld [vmem:[%s2231_s7 + $0x4e8] sm:$0xff] }
  0x3e   : > { %v355_v16 = vld [vmem:[%s2231_s7 + $0x500] sm:$0xff]  ;;  %352 = vst [vmem:[%s2236_s8 + $0x270] sm:$0xff] %v351_v14  ;;  %354 = vst [vmem:[%s2236_s8 + $0x278] sm:$0xff] %v353_v15  ;;  %v357_v17 = vld [vmem:[%s2231_s7 + $0x508] sm:$0xff] }
  0x3f   : > { %356 = vst [vmem:[%s2236_s8 + $0x280] sm:$0xff] %v355_v16  ;;  %v359_v18 = vld [vmem:[%s2231_s7 + $0x520] sm:$0xff]  ;;  %v361_v19 = vld [vmem:[%s2231_s7 + $0x528] sm:$0xff]  ;;  %358 = vst [vmem:[%s2236_s8 + $0x288] sm:$0xff] %v357_v17 }
  0x40   : > { %360 = vst [vmem:[%s2236_s8 + $0x290] sm:$0xff] %v359_v18  ;;  %362 = vst [vmem:[%s2236_s8 + $0x298] sm:$0xff] %v361_v19  ;;  %v363_v20 = vld [vmem:[%s2231_s7 + $0x540] sm:$0xff]  ;;  %v365_v21 = vld [vmem:[%s2231_s7 + $0x548] sm:$0xff] }
  0x41   : > { %v367_v22 = vld [vmem:[%s2231_s7 + $0x560] sm:$0xff]  ;;  %364 = vst [vmem:[%s2236_s8 + $0x2a0] sm:$0xff] %v363_v20  ;;  %366 = vst [vmem:[%s2236_s8 + $0x2a8] sm:$0xff] %v365_v21  ;;  %v369_v23 = vld [vmem:[%s2231_s7 + $0x568] sm:$0xff] }
  0x42   : > { %368 = vst [vmem:[%s2236_s8 + $0x2b0] sm:$0xff] %v367_v22  ;;  %v371_v24 = vld [vmem:[%s2231_s7 + $0x580] sm:$0xff]  ;;  %v373_v25 = vld [vmem:[%s2231_s7 + $0x588] sm:$0xff]  ;;  %370 = vst [vmem:[%s2236_s8 + $0x2b8] sm:$0xff] %v369_v23 }
  0x43   : > { %372 = vst [vmem:[%s2236_s8 + $0x2c0] sm:$0xff] %v371_v24  ;;  %374 = vst [vmem:[%s2236_s8 + $0x2c8] sm:$0xff] %v373_v25  ;;  %v375_v26 = vld [vmem:[%s2231_s7 + $0x5a0] sm:$0xff]  ;;  %v377_v27 = vld [vmem:[%s2231_s7 + $0x5a8] sm:$0xff] }
  0x44   : > { %v379_v28 = vld [vmem:[%s2231_s7 + $0x5c0] sm:$0xff]  ;;  %376 = vst [vmem:[%s2236_s8 + $0x2d0] sm:$0xff] %v375_v26  ;;  %378 = vst [vmem:[%s2236_s8 + $0x2d8] sm:$0xff] %v377_v27  ;;  %v381_v29 = vld [vmem:[%s2231_s7 + $0x5c8] sm:$0xff] }
  0x45   : > { %380 = vst [vmem:[%s2236_s8 + $0x2e0] sm:$0xff] %v379_v28  ;;  %v383_v30 = vld [vmem:[%s2231_s7 + $0x5e0] sm:$0xff]  ;;  %v385_v31 = vld [vmem:[%s2231_s7 + $0x5e8] sm:$0xff]  ;;  %382 = vst [vmem:[%s2236_s8 + $0x2e8] sm:$0xff] %v381_v29 }
  0x46   : > { %384 = vst [vmem:[%s2236_s8 + $0x2f0] sm:$0xff] %v383_v30  ;;  %386 = vst [vmem:[%s2236_s8 + $0x2f8] sm:$0xff] %v385_v31  ;;  %v387_v32 = vld [vmem:[%s2231_s7 + $0x600] sm:$0xff]  ;;  %v389_v33 = vld [vmem:[%s2231_s7 + $0x608] sm:$0xff] }
  0x47   : > { %v391_v34 = vld [vmem:[%s2231_s7 + $0x620] sm:$0xff]  ;;  %388 = vst [vmem:[%s2236_s8 + $0x300] sm:$0xff] %v387_v32  ;;  %390 = vst [vmem:[%s2236_s8 + $0x308] sm:$0xff] %v389_v33  ;;  %v393_v35 = vld [vmem:[%s2231_s7 + $0x628] sm:$0xff] }
  0x48   : > { %392 = vst [vmem:[%s2236_s8 + $0x310] sm:$0xff] %v391_v34  ;;  %v395_v36 = vld [vmem:[%s2231_s7 + $0x640] sm:$0xff]  ;;  %v397_v37 = vld [vmem:[%s2231_s7 + $0x648] sm:$0xff]  ;;  %394 = vst [vmem:[%s2236_s8 + $0x318] sm:$0xff] %v393_v35 }
  0x49   : > { %396 = vst [vmem:[%s2236_s8 + $0x320] sm:$0xff] %v395_v36  ;;  %398 = vst [vmem:[%s2236_s8 + $0x328] sm:$0xff] %v397_v37  ;;  %v399_v38 = vld [vmem:[%s2231_s7 + $0x660] sm:$0xff]  ;;  %v401_v39 = vld [vmem:[%s2231_s7 + $0x668] sm:$0xff] }
  0x4a   : > { %v403_v40 = vld [vmem:[%s2231_s7 + $0x680] sm:$0xff]  ;;  %400 = vst [vmem:[%s2236_s8 + $0x330] sm:$0xff] %v399_v38  ;;  %402 = vst [vmem:[%s2236_s8 + $0x338] sm:$0xff] %v401_v39  ;;  %v405_v41 = vld [vmem:[%s2231_s7 + $0x688] sm:$0xff] }
  0x4b   : > { %404 = vst [vmem:[%s2236_s8 + $0x340] sm:$0xff] %v403_v40  ;;  %v407_v42 = vld [vmem:[%s2231_s7 + $0x6a0] sm:$0xff]  ;;  %v409_v43 = vld [vmem:[%s2231_s7 + $0x6a8] sm:$0xff]  ;;  %406 = vst [vmem:[%s2236_s8 + $0x348] sm:$0xff] %v405_v41 }
  0x4c   : > { %408 = vst [vmem:[%s2236_s8 + $0x350] sm:$0xff] %v407_v42  ;;  %410 = vst [vmem:[%s2236_s8 + $0x358] sm:$0xff] %v409_v43  ;;  %v411_v44 = vld [vmem:[%s2231_s7 + $0x6c0] sm:$0xff]  ;;  %v413_v45 = vld [vmem:[%s2231_s7 + $0x6c8] sm:$0xff] }
  0x4d   : > { %v415_v46 = vld [vmem:[%s2231_s7 + $0x6e0] sm:$0xff]  ;;  %412 = vst [vmem:[%s2236_s8 + $0x360] sm:$0xff] %v411_v44  ;;  %414 = vst [vmem:[%s2236_s8 + $0x368] sm:$0xff] %v413_v45  ;;  %v417_v47 = vld [vmem:[%s2231_s7 + $0x6e8] sm:$0xff] }
  0x4e   : > { %416 = vst [vmem:[%s2236_s8 + $0x370] sm:$0xff] %v415_v46  ;;  %v419_v48 = vld [vmem:[%s2231_s7 + $0x700] sm:$0xff]  ;;  %v421_v49 = vld [vmem:[%s2231_s7 + $0x708] sm:$0xff]  ;;  %418 = vst [vmem:[%s2236_s8 + $0x378] sm:$0xff] %v417_v47 }
  0x4f   : > { %420 = vst [vmem:[%s2236_s8 + $0x380] sm:$0xff] %v419_v48  ;;  %422 = vst [vmem:[%s2236_s8 + $0x388] sm:$0xff] %v421_v49  ;;  %v423_v50 = vld [vmem:[%s2231_s7 + $0x720] sm:$0xff]  ;;  %v425_v51 = vld [vmem:[%s2231_s7 + $0x728] sm:$0xff] }
  0x50   : > { %v427_v52 = vld [vmem:[%s2231_s7 + $0x740] sm:$0xff]  ;;  %424 = vst [vmem:[%s2236_s8 + $0x390] sm:$0xff] %v423_v50  ;;  %426 = vst [vmem:[%s2236_s8 + $0x398] sm:$0xff] %v425_v51  ;;  %v429_v53 = vld [vmem:[%s2231_s7 + $0x748] sm:$0xff] }
  0x51   : > { %428 = vst [vmem:[%s2236_s8 + $0x3a0] sm:$0xff] %v427_v52  ;;  %v431_v54 = vld [vmem:[%s2231_s7 + $0x760] sm:$0xff]  ;;  %v433_v55 = vld [vmem:[%s2231_s7 + $0x768] sm:$0xff]  ;;  %430 = vst [vmem:[%s2236_s8 + $0x3a8] sm:$0xff] %v429_v53 }
  0x52   : > { %432 = vst [vmem:[%s2236_s8 + $0x3b0] sm:$0xff] %v431_v54  ;;  %434 = vst [vmem:[%s2236_s8 + $0x3b8] sm:$0xff] %v433_v55  ;;  %v435_v56 = vld [vmem:[%s2231_s7 + $0x780] sm:$0xff]  ;;  %v437_v57 = vld [vmem:[%s2231_s7 + $0x788] sm:$0xff] }
  0x53   : > { %v439_v58 = vld [vmem:[%s2231_s7 + $0x7a0] sm:$0xff]  ;;  %436 = vst [vmem:[%s2236_s8 + $0x3c0] sm:$0xff] %v435_v56  ;;  %438 = vst [vmem:[%s2236_s8 + $0x3c8] sm:$0xff] %v437_v57  ;;  %v441_v59 = vld [vmem:[%s2231_s7 + $0x7a8] sm:$0xff] }
  0x54   : > { %440 = vst [vmem:[%s2236_s8 + $0x3d0] sm:$0xff] %v439_v58  ;;  %v443_v60 = vld [vmem:[%s2231_s7 + $0x7c0] sm:$0xff]  ;;  %v445_v61 = vld [vmem:[%s2231_s7 + $0x7c8] sm:$0xff]  ;;  %442 = vst [vmem:[%s2236_s8 + $0x3d8] sm:$0xff] %v441_v59 }
  0x55   : > { %444 = vst [vmem:[%s2236_s8 + $0x3e0] sm:$0xff] %v443_v60  ;;  %446 = vst [vmem:[%s2236_s8 + $0x3e8] sm:$0xff] %v445_v61  ;;  %v447_v62 = vld [vmem:[%s2231_s7 + $0x7e0] sm:$0xff]  ;;  %v449_v63 = vld [vmem:[%s2231_s7 + $0x7e8] sm:$0xff] }
  0x56   : > { %448 = vst [vmem:[%s2236_s8 + $0x3f0] sm:$0xff] %v447_v62  ;;  %450 = vst [vmem:[%s2236_s8 + $0x3f8] sm:$0xff] %v449_v63 }
  0x57 PF: > { %p1693_p7 = scmp.ge.s32.totalorder %s2148_s18, 1  ;;  %p463_p8 = scmp.lt.s32.totalorder %s2148_s18, 19 }
  0x59   : > { %p464_p9 = pnand %p1693_p7, %p463_p8 }
  0x5a   : > { %s470_s9 = sand.u32 (!%p464_p9), 1, %s2124_s12   ;;  %s1695_s10 = sshll.u32 (!%p464_p9), %s2132_s14, 2 }
  0x5b   : > { %467 = sbr.rel (%p464_p9) target bundleno = 452 (0x1c4), region = 51  ;;  %s1694_s11 = sshll.u32 (!%p464_p9), %s470_s9, 10 }
  0x5c   : > { %p513_p10 = scmp.lt.s32.totalorder (!%p464_p9), %s1695_s10, 35  ;;  %s1697_s21 = sshll.u32 (!%p464_p9), %s2136_s15, 2 }
  0x5d   : > { %p523_p11 = scmp.lt.s32.totalorder (!%p464_p9), %s1697_s21, 7  ;;  %s2513_s5 = scalar_lea.vmem (!%p464_p9), [#allocation3], %s1694_s11 }
  0x5e   : > { %p1700_p12 = scmp.ne.s32.totalorder (!%p464_p9), %s2132_s14, 0 }
  0x60   : > { %s2704_s10 = smov (!%p513_p10, %s1695_s10), 35  ;;  %s2706_s21 = smov (!%p523_p11, %s1697_s21), 7 }
  0x61   : > { %s1696_s22 = sshll.u32 %s2704_s10, 2  ;;  %s525_s12 = scalar_lea.vmem %s2689_s2, %s2706_s21 }
  0x62   : > { %s2499_s26 = scalar_lea.vmem %s2687_s0, %s1696_s22  ;;  %s1699_s29 = sshll.u32 %s2706_s21, 2 }
  0x63   : > { %s2511_s15 = scalar_lea.vmem %s2690_s3, %s1699_s29  ;;  %540 = sbr.rel (%p1700_p12) target bundleno = 107 (0x6b), region = 59 }
  0x68   : > { %v2150_v0 = vmov 0.0  }
  0x69   : > { %541 = vst [vmem:[#allocation2 + $0x10] sm:$0xff] %v2150_v0  ;;  %542 = vst [vmem:[#allocation2] sm:$0xff] %v2150_v0 }
  0x6a   : > { %543 = vst [vmem:[#allocation2 + $0x18] sm:$0xff] %v2150_v0  ;;  %544 = vst [vmem:[#allocation2 + $0x8] sm:$0xff] %v2150_v0 }
  0x6b PF: > { %v1898_v1 = vld [vmem:[%s2513_s5 + $0xe4] ss:$16 sps:$4 sm:$0xff]   ;;  %v1902_v3 = vld [vmem:[%s2513_s5 + $0xe0] ss:$16 sps:$4 sm:$0xff]   ;;  %v550_v49 = vld [vmem:[%s2499_s26 + $0x8] sm:$0xff]  ;;  %p1833_p13 = scmp.ne.s32.totalorder %s2132_s14, 8 }
  0x6c   : > { %v1900_v2 = vld [vmem:[%s2513_s5 + $0x2e4] ss:$16 sps:$4 sm:$0xff]   ;;  %1333 = vmatprep.subr.bf16.mxu0 %v1898_v1  ;;  %v1903_v4 = vld [vmem:[%s2513_s5 + $0x2e0] ss:$16 sps:$4 sm:$0xff]   ;;  %v1704_v52 = vcombine.high %v550_v49, %v550_v49 }
  0x6d   : > { %1374 = vmatprep.subr.bf16.mxu1 %v1900_v2  ;;  %v1904_v5 = vld [vmem:[%s2513_s5 + $0xc4] ss:$16 sps:$4 sm:$0xff]   ;;  %1334 = vmatpush1.bf16.msra.mxu0 %v1902_v3  ;;  %v1908_v7 = vld [vmem:[%s2513_s5 + $0xc0] ss:$16 sps:$4 sm:$0xff]  }
  0x6e   : > { %1375 = vmatpush1.bf16.msra.mxu1 %v1903_v4  ;;  %v1906_v6 = vld [vmem:[%s2513_s5 + $0x2c4] ss:$16 sps:$4 sm:$0xff]   ;;  %1335 = vmatprep.subr.bf16.mxu0 %v1904_v5  ;;  %v1909_v8 = vld [vmem:[%s2513_s5 + $0x2c0] ss:$16 sps:$4 sm:$0xff]   ;;  %v2000_v5 = vld [vmem:[%s2513_s5 + $0xec] ss:$16 sps:$4 sm:$0xff]  }
  0x6f   : > { %1376 = vmatprep.subr.bf16.mxu1 %v1906_v6  ;;  %v1910_v9 = vld [vmem:[%s2513_s5 + $0xa4] ss:$16 sps:$4 sm:$0xff]   ;;  %v1914_v11 = vld [vmem:[%s2513_s5 + $0xa0] ss:$16 sps:$4 sm:$0xff]   ;;  %1406 = vmatprep.mubr.bf16.mxu1 %v1704_v52  ;;  %v2003_v6 = vld [vmem:[%s2513_s5 + $0x2ec] ss:$16 sps:$4 sm:$0xff]  }
  0x70   : > { %v1912_v10 = vld [vmem:[%s2513_s5 + $0x2a4] ss:$16 sps:$4 sm:$0xff]   ;;  %v1915_v12 = vld [vmem:[%s2513_s5 + $0x2a0] ss:$16 sps:$4 sm:$0xff]  }
  0x71   : > { %1336 = vmatpush1.bf16.msra.mxu0 %v1908_v7  ;;  %v1916_v13 = vld [vmem:[%s2513_s5 + $0x84] ss:$16 sps:$4 sm:$0xff]   ;;  %v1920_v15 = vld [vmem:[%s2513_s5 + $0x80] ss:$16 sps:$4 sm:$0xff]  }
  0x72   : > { %1377 = vmatpush1.bf16.msra.mxu1 %v1909_v8  ;;  %1337 = vmatprep.subr.bf16.mxu0 %v1910_v9  ;;  %v1918_v14 = vld [vmem:[%s2513_s5 + $0x284] ss:$16 sps:$4 sm:$0xff]   ;;  %v1921_v16 = vld [vmem:[%s2513_s5 + $0x280] ss:$16 sps:$4 sm:$0xff]   ;;  %v2589_v8 = vcombine.low %v550_v49, %v550_v49  ;;  %v1998_v9 = vld [vmem:[%s2513_s5 + $0xe8] ss:$16 sps:$4 sm:$0xff]  }
  0x73   : > { %1378 = vmatprep.subr.bf16.mxu1 %v1912_v10  ;;  %v1922_v17 = vld [vmem:[%s2513_s5 + $0x64] ss:$16 sps:$4 sm:$0xff]   ;;  %v1926_v19 = vld [vmem:[%s2513_s5 + $0x60] ss:$16 sps:$4 sm:$0xff]   ;;  %v2001_v10 = vld [vmem:[%s2513_s5 + $0x2e8] ss:$16 sps:$4 sm:$0xff]  }
  0x74   : > { %v1924_v18 = vld [vmem:[%s2513_s5 + $0x264] ss:$16 sps:$4 sm:$0xff]   ;;  %v1927_v20 = vld [vmem:[%s2513_s5 + $0x260] ss:$16 sps:$4 sm:$0xff]   ;;  %v2058_v49 = vld [vmem:[%s2513_s5 + $0x1a8] ss:$16 sps:$4 sm:$0xff]  }
  0x75   : > { %1338 = vmatpush1.bf16.msra.mxu0 %v1914_v11  ;;  %v1928_v21 = vld [vmem:[%s2513_s5 + $0x44] ss:$16 sps:$4 sm:$0xff]   ;;  %v1932_v23 = vld [vmem:[%s2513_s5 + $0x40] ss:$16 sps:$4 sm:$0xff]   ;;  %v2006_v11 = vld [vmem:[%s2513_s5 + $0xcc] ss:$16 sps:$4 sm:$0xff]  }
  0x76   : > { %1379 = vmatpush1.bf16.msra.mxu1 %v1915_v12  ;;  %1339 = vmatprep.subr.bf16.mxu0 %v1916_v13  ;;  %v1930_v22 = vld [vmem:[%s2513_s5 + $0x244] ss:$16 sps:$4 sm:$0xff]   ;;  %v1933_v24 = vld [vmem:[%s2513_s5 + $0x240] ss:$16 sps:$4 sm:$0xff]   ;;  %v2009_v12 = vld [vmem:[%s2513_s5 + $0x2cc] ss:$16 sps:$4 sm:$0xff]  }
  0x77   : > { %1380 = vmatprep.subr.bf16.mxu1 %v1918_v14  ;;  %v1934_v25 = vld [vmem:[%s2513_s5 + $0x24] ss:$16 sps:$4 sm:$0xff]   ;;  %v1938_v27 = vld [vmem:[%s2513_s5 + $0x20] ss:$16 sps:$4 sm:$0xff]   ;;  %v2004_v13 = vld [vmem:[%s2513_s5 + $0xc8] ss:$16 sps:$4 sm:$0xff]  }
  0x78   : > { %v1936_v26 = vld [vmem:[%s2513_s5 + $0x224] ss:$16 sps:$4 sm:$0xff]   ;;  %v1939_v28 = vld [vmem:[%s2513_s5 + $0x220] ss:$16 sps:$4 sm:$0xff]   ;;  %v2007_v14 = vld [vmem:[%s2513_s5 + $0x2c8] ss:$16 sps:$4 sm:$0xff]  }
  0x79   : > { %1340 = vmatpush1.bf16.msra.mxu0 %v1920_v15  ;;  %v1940_v29 = vld [vmem:[%s2513_s5 + $0x4] ss:$16 sps:$4 sm:$0xff]   ;;  %v1944_v31 = vld [vmem:[%s2513_s5] ss:$16 sps:$4 sm:$0xff]   ;;  %v2012_v15 = vld [vmem:[%s2513_s5 + $0xac] ss:$16 sps:$4 sm:$0xff]  }
  0x7a   : > { %1381 = vmatpush1.bf16.msra.mxu1 %v1921_v16  ;;  %1341 = vmatprep.subr.bf16.mxu0 %v1922_v17  ;;  %v1942_v30 = vld [vmem:[%s2513_s5 + $0x204] ss:$16 sps:$4 sm:$0xff]   ;;  %v1945_v32 = vld [vmem:[%s2513_s5 + $0x200] ss:$16 sps:$4 sm:$0xff]   ;;  %v2015_v16 = vld [vmem:[%s2513_s5 + $0x2ac] ss:$16 sps:$4 sm:$0xff]  }
  0x7b   : > { %1382 = vmatprep.subr.bf16.mxu1 %v1924_v18  ;;  %v1946_v33 = vld [vmem:[%s2513_s5 + $0x1e4] ss:$16 sps:$4 sm:$0xff]   ;;  %v1950_v35 = vld [vmem:[%s2513_s5 + $0x1e0] ss:$16 sps:$4 sm:$0xff]   ;;  %v2010_v17 = vld [vmem:[%s2513_s5 + $0xa8] ss:$16 sps:$4 sm:$0xff]  }
  0x7c   : > { %v1948_v34 = vld [vmem:[%s2513_s5 + $0x3e4] ss:$16 sps:$4 sm:$0xff]   ;;  %v1951_v36 = vld [vmem:[%s2513_s5 + $0x3e0] ss:$16 sps:$4 sm:$0xff]   ;;  %v2013_v18 = vld [vmem:[%s2513_s5 + $0x2a8] ss:$16 sps:$4 sm:$0xff]  }
  0x7d   : > { %1342 = vmatpush1.bf16.msra.mxu0 %v1926_v19  ;;  %v1952_v37 = vld [vmem:[%s2513_s5 + $0x1c4] ss:$16 sps:$4 sm:$0xff]   ;;  %v1956_v39 = vld [vmem:[%s2513_s5 + $0x1c0] ss:$16 sps:$4 sm:$0xff]   ;;  %v2018_v19 = vld [vmem:[%s2513_s5 + $0x8c] ss:$16 sps:$4 sm:$0xff]  }
  0x7e   : > { %1383 = vmatpush1.bf16.msra.mxu1 %v1927_v20  ;;  %1343 = vmatprep.subr.bf16.mxu0 %v1928_v21  ;;  %v1954_v38 = vld [vmem:[%s2513_s5 + $0x3c4] ss:$16 sps:$4 sm:$0xff]   ;;  %v1957_v40 = vld [vmem:[%s2513_s5 + $0x3c0] ss:$16 sps:$4 sm:$0xff]   ;;  %v2021_v20 = vld [vmem:[%s2513_s5 + $0x28c] ss:$16 sps:$4 sm:$0xff]  }
  0x7f   : > { %1384 = vmatprep.subr.bf16.mxu1 %v1930_v22  ;;  %v1958_v41 = vld [vmem:[%s2513_s5 + $0x1a4] ss:$16 sps:$4 sm:$0xff]   ;;  %v1962_v43 = vld [vmem:[%s2513_s5 + $0x1a0] ss:$16 sps:$4 sm:$0xff]   ;;  %v2016_v21 = vld [vmem:[%s2513_s5 + $0x88] ss:$16 sps:$4 sm:$0xff]  }
  0x80   : > { %v1960_v42 = vld [vmem:[%s2513_s5 + $0x3a4] ss:$16 sps:$4 sm:$0xff]   ;;  %v1963_v44 = vld [vmem:[%s2513_s5 + $0x3a0] ss:$16 sps:$4 sm:$0xff]   ;;  %v2019_v22 = vld [vmem:[%s2513_s5 + $0x288] ss:$16 sps:$4 sm:$0xff]  }
  0x81   : > { %1344 = vmatpush1.bf16.msra.mxu0 %v1932_v23  ;;  %v1964_v45 = vld [vmem:[%s2513_s5 + $0x184] ss:$16 sps:$4 sm:$0xff]   ;;  %v1968_v50 = vld [vmem:[%s2513_s5 + $0x180] ss:$16 sps:$4 sm:$0xff]   ;;  %v2024_v23 = vld [vmem:[%s2513_s5 + $0x6c] ss:$16 sps:$4 sm:$0xff]  }
  0x82   : > { %1385 = vmatpush1.bf16.msra.mxu1 %v1933_v24  ;;  %1345 = vmatprep.subr.bf16.mxu0 %v1934_v25  ;;  %v1966_v46 = vld [vmem:[%s2513_s5 + $0x384] ss:$16 sps:$4 sm:$0xff]   ;;  %v1969_v51 = vld [vmem:[%s2513_s5 + $0x380] ss:$16 sps:$4 sm:$0xff]   ;;  %v2027_v24 = vld [vmem:[%s2513_s5 + $0x26c] ss:$16 sps:$4 sm:$0xff]  }
  0x83   : > { %1386 = vmatprep.subr.bf16.mxu1 %v1936_v26  ;;  %v549_v47 = vld [vmem:[%s2499_s26] sm:$0xff]  ;;  %v2022_v25 = vld [vmem:[%s2513_s5 + $0x68] ss:$16 sps:$4 sm:$0xff]  }
  0x84   : > { %v2563_v48 = vcombine.high %v549_v47, %v549_v47  ;;  %v1970_v53 = vld [vmem:[%s2513_s5 + $0x164] ss:$16 sps:$4 sm:$0xff]   ;;  %v1974_v55 = vld [vmem:[%s2513_s5 + $0x160] ss:$16 sps:$4 sm:$0xff]   ;;  %v2587_v7 = vcombine.low %v549_v47, %v549_v47  ;;  %v2025_v26 = vld [vmem:[%s2513_s5 + $0x268] ss:$16 sps:$4 sm:$0xff]  }
  0x85   : > { %1346 = vmatpush1.bf16.msra.mxu0 %v1938_v27  ;;  %v1972_v54 = vld [vmem:[%s2513_s5 + $0x364] ss:$16 sps:$4 sm:$0xff]   ;;  %v1975_v56 = vld [vmem:[%s2513_s5 + $0x360] ss:$16 sps:$4 sm:$0xff]   ;;  %v2030_v27 = vld [vmem:[%s2513_s5 + $0x4c] ss:$16 sps:$4 sm:$0xff]  }
  0x86   : > { %1387 = vmatpush1.bf16.msra.mxu1 %v1939_v28  ;;  %1347 = vmatprep.subr.bf16.mxu0 %v1940_v29  ;;  %v1976_v57 = vld [vmem:[%s2513_s5 + $0x144] ss:$16 sps:$4 sm:$0xff]   ;;  %v1980_v59 = vld [vmem:[%s2513_s5 + $0x140] ss:$16 sps:$4 sm:$0xff]   ;;  %v2033_v28 = vld [vmem:[%s2513_s5 + $0x24c] ss:$16 sps:$4 sm:$0xff]  }
  0x87   : > { %1388 = vmatprep.subr.bf16.mxu1 %v1942_v30  ;;  %1365 = vmatprep.mubr.bf16.mxu0 %v2563_v48  ;;  %v1978_v58 = vld [vmem:[%s2513_s5 + $0x344] ss:$16 sps:$4 sm:$0xff]   ;;  %v1981_v60 = vld [vmem:[%s2513_s5 + $0x340] ss:$16 sps:$4 sm:$0xff]   ;;  %v2028_v29 = vld [vmem:[%s2513_s5 + $0x48] ss:$16 sps:$4 sm:$0xff]  }
  0x88   : > { %v1982_v61 = vld [vmem:[%s2513_s5 + $0x124] ss:$16 sps:$4 sm:$0xff]   ;;  %v1986_v63 = vld [vmem:[%s2513_s5 + $0x120] ss:$16 sps:$4 sm:$0xff]   ;;  %v2031_v30 = vld [vmem:[%s2513_s5 + $0x248] ss:$16 sps:$4 sm:$0xff]  }
  0x89   : > { %1348 = vmatpush1.bf16.msra.mxu0 %v1944_v31  ;;  %v1984_v62 = vld [vmem:[%s2513_s5 + $0x324] ss:$16 sps:$4 sm:$0xff]   ;;  %v1987_v0 = vld [vmem:[%s2513_s5 + $0x320] ss:$16 sps:$4 sm:$0xff]   ;;  %v2036_v31 = vld [vmem:[%s2513_s5 + $0x2c] ss:$16 sps:$4 sm:$0xff]  }
  0x8a   : > { %1389 = vmatpush1.bf16.msra.mxu1 %v1945_v32  ;;  %1349 = vmatprep.subr.bf16.mxu0 %v1946_v33  ;;  %v1988_v1 = vld [vmem:[%s2513_s5 + $0x104] ss:$16 sps:$4 sm:$0xff]   ;;  %v1992_v3 = vld [vmem:[%s2513_s5 + $0x100] ss:$16 sps:$4 sm:$0xff]   ;;  %v2039_v32 = vld [vmem:[%s2513_s5 + $0x22c] ss:$16 sps:$4 sm:$0xff]  }
  0x8b   : > { %1390 = vmatprep.subr.bf16.mxu1 %v1948_v34  ;;  %v1990_v2 = vld [vmem:[%s2513_s5 + $0x304] ss:$16 sps:$4 sm:$0xff]   ;;  %v1993_v4 = vld [vmem:[%s2513_s5 + $0x300] ss:$16 sps:$4 sm:$0xff]   ;;  %v2034_v33 = vld [vmem:[%s2513_s5 + $0x28] ss:$16 sps:$4 sm:$0xff]  }
  0x8c   : > { %v2037_v34 = vld [vmem:[%s2513_s5 + $0x228] ss:$16 sps:$4 sm:$0xff]   ;;  %v2060_v47 = vld [vmem:[%s2513_s5 + $0x1ac] ss:$16 sps:$4 sm:$0xff]  }
  0x8d   : > { %1350 = vmatpush2.bf16.msra.mxu0 %v1950_v35  ;;  %v2042_v35 = vld [vmem:[%s2513_s5 + $0xc] ss:$16 sps:$4 sm:$0xff]  }
  0x8e   : > { %1391 = vmatpush2.bf16.msra.mxu1 %v1951_v36  ;;  %1351 = vmatprep.subr.bf16.mxu0 %v1952_v37  ;;  %v2045_v36 = vld [vmem:[%s2513_s5 + $0x20c] ss:$16 sps:$4 sm:$0xff]   ;;  %v2040_v37 = vld [vmem:[%s2513_s5 + $0x8] ss:$16 sps:$4 sm:$0xff]  }
  0x8f   : > { %1392 = vmatprep.subr.bf16.mxu1 %v1954_v38  ;;  %v2043_v38 = vld [vmem:[%s2513_s5 + $0x208] ss:$16 sps:$4 sm:$0xff]  }
  0x91   : > { %1352 = vmatpush2.bf16.msra.mxu0 %v1956_v39  ;;  %v2048_v39 = vld [vmem:[%s2513_s5 + $0x1ec] ss:$16 sps:$4 sm:$0xff]  }
  0x92   : > { %1393 = vmatpush2.bf16.msra.mxu1 %v1957_v40  ;;  %1353 = vmatprep.subr.bf16.mxu0 %v1958_v41  ;;  %v2051_v40 = vld [vmem:[%s2513_s5 + $0x3ec] ss:$16 sps:$4 sm:$0xff]   ;;  %v2046_v41 = vld [vmem:[%s2513_s5 + $0x1e8] ss:$16 sps:$4 sm:$0xff]  }
  0x93   : > { %1394 = vmatprep.subr.bf16.mxu1 %v1960_v42  ;;  %v2049_v42 = vld [vmem:[%s2513_s5 + $0x3e8] ss:$16 sps:$4 sm:$0xff]  }
  0x95   : > { %1354 = vmatpush2.bf16.msra.mxu0 %v1962_v43  ;;  %v2054_v43 = vld [vmem:[%s2513_s5 + $0x1cc] ss:$16 sps:$4 sm:$0xff]  }
  0x96   : > { %1395 = vmatpush2.bf16.msra.mxu1 %v1963_v44  ;;  %1355 = vmatprep.subr.bf16.mxu0 %v1964_v45  ;;  %v2057_v44 = vld [vmem:[%s2513_s5 + $0x3cc] ss:$16 sps:$4 sm:$0xff]   ;;  %v2052_v45 = vld [vmem:[%s2513_s5 + $0x1c8] ss:$16 sps:$4 sm:$0xff]  }
  0x97   : > { %1396 = vmatprep.subr.bf16.mxu1 %v1966_v46  ;;  %v2055_v46 = vld [vmem:[%s2513_s5 + $0x3c8] ss:$16 sps:$4 sm:$0xff]  }
  0x99   : > { %1356 = vmatpush2.bf16.msra.mxu0 %v1968_v50  ;;  %v2061_v50 = vld [vmem:[%s2513_s5 + $0x3a8] ss:$16 sps:$4 sm:$0xff]  }
  0x9a   : > { %1397 = vmatpush2.bf16.msra.mxu1 %v1969_v51  ;;  %1357 = vmatprep.subr.bf16.mxu0 %v1970_v53  ;;  %v2066_v51 = vld [vmem:[%s2513_s5 + $0x18c] ss:$16 sps:$4 sm:$0xff]   ;;  %v2064_v53 = vld [vmem:[%s2513_s5 + $0x188] ss:$16 sps:$4 sm:$0xff]  }
  0x9b   : > { %1398 = vmatprep.subr.bf16.mxu1 %v1972_v54  ;;  %v2067_v54 = vld [vmem:[%s2513_s5 + $0x388] ss:$16 sps:$4 sm:$0xff]  }
  0x9d   : > { %1358 = vmatpush2.bf16.msra.mxu0 %v1974_v55  ;;  %v2072_v55 = vld [vmem:[%s2513_s5 + $0x16c] ss:$16 sps:$4 sm:$0xff]  }
  0x9e   : > { %1399 = vmatpush2.bf16.msra.mxu1 %v1975_v56  ;;  %1359 = vmatprep.subr.bf16.mxu0 %v1976_v57  ;;  %v2075_v56 = vld [vmem:[%s2513_s5 + $0x36c] ss:$16 sps:$4 sm:$0xff]   ;;  %v2070_v57 = vld [vmem:[%s2513_s5 + $0x168] ss:$16 sps:$4 sm:$0xff]  }
  0x9f   : > { %1400 = vmatprep.subr.bf16.mxu1 %v1978_v58  ;;  %v2073_v58 = vld [vmem:[%s2513_s5 + $0x368] ss:$16 sps:$4 sm:$0xff]  }
  0xa1   : > { %1360 = vmatpush2.bf16.msra.mxu0 %v1980_v59  ;;  %v2078_v59 = vld [vmem:[%s2513_s5 + $0x14c] ss:$16 sps:$4 sm:$0xff]  }
  0xa2   : > { %1401 = vmatpush2.bf16.msra.mxu1 %v1981_v60  ;;  %1361 = vmatprep.subr.bf16.mxu0 %v1982_v61  ;;  %v2081_v60 = vld [vmem:[%s2513_s5 + $0x34c] ss:$16 sps:$4 sm:$0xff]   ;;  %v2076_v61 = vld [vmem:[%s2513_s5 + $0x148] ss:$16 sps:$4 sm:$0xff]  }
  0xa3   : > { %1402 = vmatprep.subr.bf16.mxu1 %v1984_v62  ;;  %v2079_v62 = vld [vmem:[%s2513_s5 + $0x348] ss:$16 sps:$4 sm:$0xff]  }
  0xa5   : > { %1362 = vmatpush2.bf16.msra.mxu0 %v1986_v63  ;;  %v2084_v63 = vld [vmem:[%s2513_s5 + $0x12c] ss:$16 sps:$4 sm:$0xff]  }
  0xa6   : > { %1403 = vmatpush2.bf16.msra.mxu1 %v1987_v0  ;;  %1363 = vmatprep.subr.bf16.mxu0 %v1988_v1  ;;  %v2087_v0 = vld [vmem:[%s2513_s5 + $0x32c] ss:$16 sps:$4 sm:$0xff]   ;;  %v2082_v1 = vld [vmem:[%s2513_s5 + $0x128] ss:$16 sps:$4 sm:$0xff]  }
  0xa7   : > { %1404 = vmatprep.subr.bf16.mxu1 %v1990_v2  ;;  %v2085_v2 = vld [vmem:[%s2513_s5 + $0x328] ss:$16 sps:$4 sm:$0xff]  }
  0xa9   : > { %1364 = vmatpush2.bf16.msra.mxu0 %v1992_v3  ;;  %v2090_v3 = vld [vmem:[%s2513_s5 + $0x10c] ss:$16 sps:$4 sm:$0xff]  }
  0xaa   : > { %1405 = vmatpush2.bf16.msra.mxu1 %v1993_v4  ;;  %1415 = vmatprep.subr.bf16.mxu0 %v2000_v5  ;;  %v2093_v4 = vld [vmem:[%s2513_s5 + $0x30c] ss:$16 sps:$4 sm:$0xff]   ;;  %v2088_v5 = vld [vmem:[%s2513_s5 + $0x108] ss:$16 sps:$4 sm:$0xff]  }
  0xab   : > { %1456 = vmatprep.subr.bf16.mxu1 %v2003_v6  ;;  %v2091_v6 = vld [vmem:[%s2513_s5 + $0x308] ss:$16 sps:$4 sm:$0xff]  }
  0xac   : > { %1366 = vmatmul.mubr.bf16.vlgmr.msra.gmra.mxu0 %v2587_v7 }
  0xad   : > { %1407 = vmatmul.mubr.bf16.vlgmr.msra.gmra.mxu1 %v2589_v8  ;;  %1416 = vmatpush1.bf16.msra.mxu0 %v1998_v9 }
  0xae   : > { %1457 = vmatpush1.bf16.msra.mxu1 %v2001_v10  ;;  %1417 = vmatprep.subr.bf16.mxu0 %v2006_v11  ;;  %v545_v10 = vld [vmem:[#allocation2 + $0x10] sm:$0xff] }
  0xaf   : > { %1458 = vmatprep.subr.bf16.mxu1 %v2009_v12  ;;  %1447 = vmatprep.mubr.bf16.mxu0 %v2563_v48  ;;  %v2063_v48 = vld [vmem:[%s2513_s5 + $0x3ac] ss:$16 sps:$4 sm:$0xff]  }
  0xb0   : > { %1488 = vmatprep.mubr.bf16.mxu1 %v1704_v52  ;;  %v2069_v52 = vld [vmem:[%s2513_s5 + $0x38c] ss:$16 sps:$4 sm:$0xff]  }
  0xb1   : > { %1418 = vmatpush1.bf16.msra.mxu0 %v2004_v13 }
  0xb2   : > { %1459 = vmatpush1.bf16.msra.mxu1 %v2007_v14  ;;  %1419 = vmatprep.subr.bf16.mxu0 %v2012_v15  ;;  %v546_v14 = vld [vmem:[#allocation2] sm:$0xff] }
  0xb3   : > { %1460 = vmatprep.subr.bf16.mxu1 %v2015_v16 }
  0xb5   : > { %1420 = vmatpush1.bf16.msra.mxu0 %v2010_v17 }
  0xb6   : > { %1461 = vmatpush1.bf16.msra.mxu1 %v2013_v18  ;;  %1421 = vmatprep.subr.bf16.mxu0 %v2018_v19 }
  0xb7   : > { %1462 = vmatprep.subr.bf16.mxu1 %v2021_v20 }
  0xb9   : > { %1422 = vmatpush1.bf16.msra.mxu0 %v2016_v21 }
  0xba   : > { %1463 = vmatpush1.bf16.msra.mxu1 %v2019_v22  ;;  %1423 = vmatprep.subr.bf16.mxu0 %v2024_v23 }
  0xbb   : > { %1464 = vmatprep.subr.bf16.mxu1 %v2027_v24 }
  0xbd   : > { %1424 = vmatpush1.bf16.msra.mxu0 %v2022_v25 }
  0xbe   : > { %1465 = vmatpush1.bf16.msra.mxu1 %v2025_v26  ;;  %1425 = vmatprep.subr.bf16.mxu0 %v2030_v27  ;;  %v548_v26 = vld [vmem:[#allocation2 + $0x8] sm:$0xff] }
  0xbf   : > { %1466 = vmatprep.subr.bf16.mxu1 %v2033_v28 }
  0xc1   : > { %1426 = vmatpush1.bf16.msra.mxu0 %v2028_v29 }
  0xc2   : > { %1467 = vmatpush1.bf16.msra.mxu1 %v2031_v30  ;;  %1427 = vmatprep.subr.bf16.mxu0 %v2036_v31 }
  0xc3   : > { %1468 = vmatprep.subr.bf16.mxu1 %v2039_v32 }
  0xc5   : > { %1428 = vmatpush1.bf16.msra.mxu0 %v2034_v33 }
  0xc6   : > { %1469 = vmatpush1.bf16.msra.mxu1 %v2037_v34  ;;  %1429 = vmatprep.subr.bf16.mxu0 %v2042_v35 }
  0xc7   : > { %1470 = vmatprep.subr.bf16.mxu1 %v2045_v36 }
  0xc9   : > { %1430 = vmatpush1.bf16.msra.mxu0 %v2040_v37 }
  0xca   : > { %1471 = vmatpush1.bf16.msra.mxu1 %v2043_v38  ;;  %1431 = vmatprep.subr.bf16.mxu0 %v2048_v39 }
  0xcb   : > { %1472 = vmatprep.subr.bf16.mxu1 %v2051_v40 }
  0xcd   : > { %1432 = vmatpush2.bf16.msra.mxu0 %v2046_v41 }
  0xce   : > { %1473 = vmatpush2.bf16.msra.mxu1 %v2049_v42  ;;  %1433 = vmatprep.subr.bf16.mxu0 %v2054_v43 }
  0xcf   : > { %1474 = vmatprep.subr.bf16.mxu1 %v2057_v44 }
  0xd1   : > { %1434 = vmatpush2.bf16.msra.mxu0 %v2052_v45 }
  0xd2   : > { %1475 = vmatpush2.bf16.msra.mxu1 %v2055_v46  ;;  %1435 = vmatprep.subr.bf16.mxu0 %v2060_v47 }
  0xd3   : > { %1476 = vmatprep.subr.bf16.mxu1 %v2063_v48 }
  0xd5   : > { %1436 = vmatpush2.bf16.msra.mxu0 %v2058_v49 }
  0xd6   : > { %1477 = vmatpush2.bf16.msra.mxu1 %v2061_v50  ;;  %1437 = vmatprep.subr.bf16.mxu0 %v2066_v51 }
  0xd7   : > { %1478 = vmatprep.subr.bf16.mxu1 %v2069_v52 }
  0xd9   : > { %1438 = vmatpush2.bf16.msra.mxu0 %v2064_v53 }
  0xda   : > { %1479 = vmatpush2.bf16.msra.mxu1 %v2067_v54  ;;  %1439 = vmatprep.subr.bf16.mxu0 %v2072_v55 }
  0xdb   : > { %1480 = vmatprep.subr.bf16.mxu1 %v2075_v56 }
  0xdd   : > { %1440 = vmatpush2.bf16.msra.mxu0 %v2070_v57 }
  0xde   : > { %1481 = vmatpush2.bf16.msra.mxu1 %v2073_v58  ;;  %1441 = vmatprep.subr.bf16.mxu0 %v2078_v59 }
  0xdf   : > { %1482 = vmatprep.subr.bf16.mxu1 %v2081_v60 }
  0xe1   : > { %1442 = vmatpush2.bf16.msra.mxu0 %v2076_v61 }
  0xe2   : > { %1483 = vmatpush2.bf16.msra.mxu1 %v2079_v62  ;;  %1443 = vmatprep.subr.bf16.mxu0 %v2084_v63 }
  0xe3   : > { %1484 = vmatprep.subr.bf16.mxu1 %v2087_v0 }
  0xe5   : > { %1444 = vmatpush2.bf16.msra.mxu0 %v2082_v1 }
  0xe6   : > { %1485 = vmatpush2.bf16.msra.mxu1 %v2085_v2  ;;  %1445 = vmatprep.subr.bf16.mxu0 %v2090_v3 }
  0xe7   : > { %1486 = vmatprep.subr.bf16.mxu1 %v2093_v4 }
  0xe9   : > { %1446 = vmatpush2.bf16.msra.mxu0 %v2088_v5 }
  0xea   : > { %1487 = vmatpush2.bf16.msra.mxu1 %v2091_v6 }
  0xec   : > { %1448 = vmatmul.mubr.bf16.vlgmr.msra.gmra.mxu0 %v2587_v7  ;;  %v547_v7 = vld [vmem:[#allocation2 + $0x18] sm:$0xff] }
  0xed   : > { %1489 = vmatmul.mubr.bf16.vlgmr.msra.gmra.mxu1 %v2589_v8 }
 0x16c   : > { %v1367_v9 = vpop.f32.mrf.mxu0 }
 0x16d   : > { %v1408_v11 = vpop.f32.mrf.mxu1 }
 0x16e   : > { %v1409_v12 = vadd.f32 %v1408_v11, %v1367_v9  ;;  %v1369_v13 = vpop.f32.mrf.mxu0 }
 0x16f   : > { %v1410_v15 = vpop.f32.mrf.mxu1 }
 0x170   : > { %v1497_v16 = vadd.f32 %v1409_v12, %v545_v10  ;;  %v1411_v17 = vadd.f32 %v1410_v15, %v1369_v13  ;;  %v1371_v18 = vpop.f32.mrf.mxu0 }
 0x171   : > { %v1412_v19 = vpop.f32.mrf.mxu1 }
 0x172   : > { %1501 = vst [vmem:[#allocation2 + $0x10] sm:$0xff] %v1497_v16  ;;  %v1498_v20 = vadd.f32 %v1411_v17, %v546_v14  ;;  %v1372_v21 = vpop.f32.mrf.mxu0 }
 0x173   : > { %v1413_v22 = vpop.f32.mrf.mxu1 }
 0x174   : > { %1502 = vst [vmem:[#allocation2] sm:$0xff] %v1498_v20 }
 0x1ac   : > { %v1449_v23 = vpop.f32.mrf.mxu0 }
 0x1ad   : > { %v1490_v24 = vpop.f32.mrf.mxu1 }
 0x1ae   : > { %v1491_v8 = vadd.f32 %v1490_v24, %v1449_v23  ;;  %v1451_v25 = vpop.f32.mrf.mxu0 }
 0x1af   : > { %v1492_v27 = vpop.f32.mrf.mxu1 }
 0x1b0   : > { %v1499_v28 = vadd.f32 %v1491_v8, %v547_v7  ;;  %v1493_v29 = vadd.f32 %v1492_v27, %v1451_v25  ;;  %v1453_v30 = vpop.f32.mrf.mxu0  ;;  %1508 = sbr.rel (%p1833_p13) target bundleno = 452 (0x1c4), region = 63 }
 0x1b1   : > { %v1494_v31 = vpop.f32.mrf.mxu1 }
 0x1b2   : > { %1503 = vst [vmem:[#allocation2 + $0x18] sm:$0xff] %v1499_v28  ;;  %v1500_v32 = vadd.f32 %v1493_v29, %v548_v26  ;;  %v1454_v33 = vpop.f32.mrf.mxu0 }
 0x1b3   : > { %v1495_v34 = vpop.f32.mrf.mxu1 }
 0x1b4   : > { %1504 = vst [vmem:[#allocation2 + $0x8] sm:$0xff] %v1500_v32 }
 0x1b5   : > { %v1515_v35 = vlaneseq  ;;  %v1513_v37 = vld [vmem:[%s525_s12] sm:$0xf]  ;;  %v1509_v38 = vld [vmem:[#allocation2 + $0x10] sm:$0xff] }
 0x1b6   : > { %v1510_v43 = vld [vmem:[#allocation2] sm:$0xff] }
 0x1b7   : > { %v1516_v36 = vshrl.u32 %v1515_v35, 7 }
 0x1b9   : > { %v1517_v39 = vsub.s32 0, %v1516_v36  ;;  %v1521_v40 = vsub.s32 1, %v1516_v36  ;;  %v1525_v41 = vsub.s32 2, %v1516_v36  ;;  %v1529_v42 = vsub.s32 3, %v1516_v36  ;;  %v1511_v44 = vld [vmem:[#allocation2 + $0x18] sm:$0xff] }
 0x1bb   : > { %v1512_v45 = vld [vmem:[#allocation2 + $0x8] sm:$0xff]  ;;  %v1518_v46 = vrot.slane %v1513_v37, %v1517_v39  ;;  %v1522_v47 = vrot.slane %v1513_v37, %v1521_v40  ;;  %v1526_v48 = vrot.slane %v1513_v37, %v1525_v41  ;;  %v1530_v49 = vrot.slane %v1513_v37, %v1529_v42 }
 0x1bd   : > { %v1535_v50 = vadd.f32 %v1518_v46, %v1509_v38  ;;  %v1536_v51 = vadd.f32 %v1522_v47, %v1510_v43  ;;  %v1537_v52 = vadd.f32 %v1526_v48, %v1511_v44  ;;  %v1538_v53 = vadd.f32 %v1530_v49, %v1512_v45 }
 0x1bf   : > { %v1539_v54 = vmax.f32 %v1535_v50, 0.0  ;;  %v1540_v55 = vmax.f32 %v1536_v51, 0.0  ;;  %v1541_v56 = vmax.f32 %v1537_v52, 0.0  ;;  %v1542_v57 = vmax.f32 %v1538_v53, 0.0 }
 0x1c1   : > { %v1839_v58 = vpack.c.bf16 %v1540_v55, %v1539_v54  ;;  %v1840_v59 = vpack.c.bf16 %v1542_v57, %v1541_v56 }
 0x1c3   : > { %1559 = vst [vmem:[%s2511_s15] sm:$0xff] %v1839_v58  ;;  %1560 = vst [vmem:[%s2511_s15 + $0x8] sm:$0xff] %v1840_v59 }
 0x1c4 PF: > { %s13_s18 = sadd.s32 1, %s2148_s18   ;;  %s2691_s12 = smov %s2128_s13 }
 0x1c5   : > { %p10_p0 = scmp.ge.s32.totalorder %s13_s18, 20   ;;  %s2692_s13 = smov %s2222_s25 }
 0x1c6   : > { %s2693_s14 = smov %s2140_s16  ;;  %s2694_s15 = smov %s2144_s17 }
 0x1c7   : > { %s2695_s16 = smov %s2698_s19  ;;  %s2696_s17 = smov %s2702_s20 }
 0x1c8   :  { %12 = sbr.rel (!%p10_p0) target bundleno = 4 (0x4), region = 104 }

</bundles_post_ra>
